<compile_context>
chip_gen: v7x
topology: tpu7x:2x2x1
jax: 0.10.0
libtpu: 0.0.40
codegen_flags: <defaults>
</compile_context>

<pallas_src>
import functools

import jax
import jax.numpy as jnp
import numpy as np
from jax import lax
from jax.experimental import pallas as pl
from jax.experimental.pallas import tpu as pltpu

LANE = 128
_BN_EPS = 1e-5
_VMEM_BUDGET = 40 * 1024 * 1024   # per-step target; safe for v7x's 64 MiB VMEM


def _round_up(v, m):
    return ((v + m - 1) // m) * m


# ----------------------------------------------------------------------------
# Fused ResNetBlock kernel: relu(cv3(cv2(cv1(x))) + shortcut(x))
# ----------------------------------------------------------------------------
def _resnet_block_kernel(*refs, H, W, has_sc_conv):
    # refs:
    #   x_ref    (BB, H, W, Cin)   bf16 input batch block (channels zero-padded)
    #   w1,b1    cv1 1x1 weight (BN scale folded, bf16) / f32 shift
    #   w2,b2    cv2 3x3 weight as (9, Cmid, Cmid) bf16 / f32 shift
    #   w3,b3    cv3 1x1 weight (BN folded, bf16) / f32 shift
    #   [wsc,bsc] shortcut 1x1 conv (only when the shortcut is not identity)
    #   o_ref    (BB, H, W, Cout)  bf16 output
    #   ypad_ref VMEM scratch (BB, H+2, W, Cmid) f32: row-padded cv1 output
    if has_sc_conv:
        (x_ref, w1_ref, b1_ref, w2_ref, b2_ref, w3_ref, b3_ref,
         wsc_ref, bsc_ref, o_ref, ypad_ref) = refs
    else:
        (x_ref, w1_ref, b1_ref, w2_ref, b2_ref, w3_ref, b3_ref,
         o_ref, ypad_ref) = refs

    BB = x_ref.shape[0]
    Cin = x_ref.shape[3]
    Cmid = w1_ref.shape[1]
    Cout = o_ref.shape[3]
    M = BB * H * W
    f32 = jnp.float32
    bf16 = jnp.bfloat16

    # NOTE: the (BB,H,W,C)->(M,C) flatten is relayout-free only when W % 8 == 0
    # (true for the shapes exercised here); otherwise tile rows differently.

    # ---- cv1: 1x1 conv (BN scale folded into w1) + shift + SiLU (bf16 MXU) ---
    x2d = x_ref[...].reshape(M, Cin)                                   # bf16
    y1 = jnp.dot(x2d, w1_ref[...], preferred_element_type=f32) + b1_ref[...]
    y1 = y1 * jax.nn.sigmoid(y1)                                       # SiLU
    # x2d is intentionally not referenced again (shortcut re-reads x_ref late).

    # ---- row-padded cv2 input in VMEM scratch --------------------------------
    zero_row = jnp.zeros((BB, 1, W, Cmid), f32)
    # Re-zeroed every step on purpose: the grid axis is "parallel" (megacore),
    # so a pl.when(program_id == 0) one-time init would leave the second
    # core's scratch uninitialized.  Cost: two tiny row stores per step.
    ypad_ref[:, 0:1, :, :] = zero_row
    ypad_ref[:, H + 1:H + 2, :, :] = zero_row
    ypad_ref[:, 1:H + 1, :, :] = y1.reshape(BB, H, W, Cmid)

    # ---- cv2: 3x3 conv as 9 accumulated K = Cmid matmuls ---------------------
    # No (M, 9*Cmid) tensor is ever built; column shifts are zero-fill
    # concatenates on f32 windows (robust 32-bit sublane ops), then each tap
    # is cast to bf16 right before it hits the MXU.
    zero_col = jnp.zeros((BB, H, 1, Cmid), f32)
    acc = jnp.zeros((M, Cmid), f32)
    for dy in range(3):
        row_win = ypad_ref[:, dy:dy + H, :, :]                         # f32
        for dx in range(3):
            if dx == 0:      # needs column w-1; zero at w == 0
                tap = jnp.concatenate(
                    [zero_col, row_win[:, :, :W - 1, :]], axis=2)
            elif dx == 2:    # needs column w+1; zero at w == W-1
                tap = jnp.concatenate(
                    [row_win[:, :, 1:, :], zero_col], axis=2)
            else:            # dx == 1: centre column
                tap = row_win
            tap = tap.reshape(M, Cmid).astype(bf16)
            acc = acc + jnp.dot(tap, w2_ref[dy * 3 + dx],
                                preferred_element_type=f32)
    y2 = acc + b2_ref[...]
    y2 = y2 * jax.nn.sigmoid(y2)                                       # SiLU

    # ---- cv3: 1x1 conv (BN folded), no activation ----------------------------
    y3 = jnp.dot(y2.astype(bf16), w3_ref[...],
                 preferred_element_type=f32) + b3_ref[...]

    # ---- shortcut: re-read x late (its block is still resident in VMEM) ------
    xs = x_ref[...].reshape(M, Cin)
    if has_sc_conv:
        sc = jnp.dot(xs, wsc_ref[...], preferred_element_type=f32) + bsc_ref[...]
    else:
        sc = xs.astype(f32)   # identity: padded lanes of x are exactly zero

    out = jnp.maximum(y3 + sc, 0.0)
    o_ref[...] = out.reshape(BB, H, W, Cout).astype(o_ref.dtype)


# ----------------------------------------------------------------------------
# Wrapper glue: BN folding, channel padding, pallas_call construction
# ----------------------------------------------------------------------------
def _fold_bn(p):
    scale = p['gamma'] / jnp.sqrt(p['var'] + _BN_EPS)
    shift = p['beta'] - p['mean'] * scale
    return scale, shift


def _prep_1x1(p, cin, cout, cin_p, cout_p):
    """1x1 conv + BN -> lane-padded bf16 (cin_p, cout_p) weight, f32 shift."""
    scale, shift = _fold_bn(p)
    w = p['w'][:, :, 0, 0].T * scale[None, :]                      # (cin, cout)
    w = jnp.pad(w, ((0, cin_p - cin), (0, cout_p - cout)))
    b = jnp.pad(shift, (0, cout_p - cout)).reshape(1, cout_p)
    return w.astype(jnp.bfloat16), b.astype(jnp.float32)


def _prep_3x3(p, cin, cout, cin_p, cout_p):
    """3x3 conv + BN -> tap-major bf16 (9, cin_p, cout_p) weight, f32 shift."""
    scale, shift = _fold_bn(p)
    w = jnp.transpose(p['w'], (2, 3, 1, 0)).reshape(9, cin, cout)  # tap-major
    w = w * scale[None, None, :]
    w = jnp.pad(w, ((0, 0), (0, cin_p - cin), (0, cout_p - cout)))
    b = jnp.pad(shift, (0, cout_p - cout)).reshape(1, cout_p)
    return w.astype(jnp.bfloat16), b.astype(jnp.float32)


def _const_spec(shape):
    """BlockSpec for a grid-invariant operand; single-buffered when supported."""
    index_map = lambda i: (0,) * len(shape)
    buffered = getattr(pl, "Buffered", None)
    if buffered is not None:
        try:
            return pl.BlockSpec(shape, index_map,
                                pipeline_mode=buffered(buffer_count=1))
        except TypeError:
            pass
    return pl.BlockSpec(shape, index_map)


def _weight_bytes(cin_p, cmid_p, cout_p, has_sc_conv):
    wb = 2 * (cin_p * cmid_p + 9 * cmid_p * cmid_p + cmid_p * cout_p
              + (cin_p * cout_p if has_sc_conv else 0))             # bf16
    wb += 4 * (2 * cmid_p + 2 * cout_p)                             # f32 shifts
    return wb


def _per_batch_bytes(H, W, cin_p, cmid_p, cout_p):
    return (2 * H * W * cin_p * 2                       # x block, 2 bufs, bf16
            + 2 * H * W * cout_p * 2                    # out block, 2 bufs, bf16
            + (H + 2) * W * cmid_p * 4                  # ypad scratch, f32
            + H * W * 4 * (3 * cmid_p + 2 * cout_p))    # f32 intermediates


def _pick_block_batch(N, H, W, cin_p, cmid_p, cout_p, has_sc_conv,
                      budget_bytes=_VMEM_BUDGET):
    """VMEM-budgeted batch block; also keeps >= 2 grid steps when N >= 2."""
    per_b = _per_batch_bytes(H, W, cin_p, cmid_p, cout_p)
    # budget weights as if double-buffered, in case Buffered(1) is unsupported
    wb = 2 * _weight_bytes(cin_p, cmid_p, cout_p, has_sc_conv)
    avail = max(budget_bytes - wb, per_b)
    bb = int(max(1, min(N, avail // per_b)))
    if N >= 2:
        bb = min(bb, max(1, N // 2))   # >= 2 grid steps for megacore/pipelining
    while N % bb:
        bb -= 1
    return bb


def resnet_block_pallas(p, x_pad, c1, c2, s=1, e=4):
    """One fused ResNetBlock.  x_pad: (N, H, W, round_up(c1,128)) NHWC bf16."""
    if s != 1:
        # TODO(synk): strided ResNetBlock (s != 1) not implemented in Pallas.
        raise NotImplementedError("ResNetBlock stride != 1 not implemented")

    N, H, W, cin_p = x_pad.shape
    c3 = e * c2
    cmid_p = _round_up(c2, LANE)
    cout_p = _round_up(c3, LANE)
    has_sc_conv = (s != 1) or (c1 != c3)

    bb = _pick_block_batch(N, H, W, cin_p, cmid_p, cout_p, has_sc_conv)

    w1, b1 = _prep_1x1(p['cv1'], c1, c2, cin_p, cmid_p)
    w2, b2 = _prep_3x3(p['cv2'], c2, c2, cmid_p, cmid_p)
    w3, b3 = _prep_1x1(p['cv3'], c2, c3, cmid_p, cout_p)

    args = [x_pad, w1, b1, w2, b2, w3, b3]
    in_specs = [
        pl.BlockSpec((bb, H, W, cin_p), lambda i: (i, 0, 0, 0)),
        _const_spec((cin_p, cmid_p)),
        _const_spec((1, cmid_p)),
        _const_spec((9, cmid_p, cmid_p)),
        _const_spec((1, cmid_p)),
        _const_spec((cmid_p, cout_p)),
        _const_spec((1, cout_p)),
    ]
    if has_sc_conv:
        wsc, bsc = _prep_1x1(p['shortcut'], c1, c3, cin_p, cout_p)
        args += [wsc, bsc]
        in_specs += [_const_spec((cin_p, cout_p)), _const_spec((1, cout_p))]
    else:
        assert cin_p == cout_p  # identity shortcut requires matching widths

    # Explicit VMEM limit from the estimated per-step footprint (with slack),
    # clamped to the tightest chip (v7x: 64 MiB physical).
    wb = _weight_bytes(cin_p, cmid_p, cout_p, has_sc_conv)
    est = 2 * wb + bb * _per_batch_bytes(H, W, cin_p, cmid_p, cout_p)
    vmem_limit = int(min(max(int(est * 1.5), 32 * 1024 * 1024),
                         64 * 1024 * 1024))

    Mtot = N * H * W
    flops = 2 * Mtot * (cin_p * cmid_p + 9 * cmid_p * cmid_p + cmid_p * cout_p
                        + (cin_p * cout_p if has_sc_conv else 0))
    cost = pl.CostEstimate(
        flops=int(flops),
        transcendentals=int(2 * Mtot * cmid_p),
        bytes_accessed=int(Mtot * (cin_p + cout_p) * 2 + wb))

    kernel = functools.partial(_resnet_block_kernel, H=H, W=W,
                               has_sc_conv=has_sc_conv)
    return pl.pallas_call(
        kernel,
        out_shape=jax.ShapeDtypeStruct((N, H, W, cout_p), jnp.bfloat16),
        grid=(N // bb,),
        in_specs=in_specs,
        out_specs=pl.BlockSpec((bb, H, W, cout_p), lambda i: (i, 0, 0, 0)),
        scratch_shapes=[pltpu.VMEM((bb, H + 2, W, cmid_p), jnp.float32)],
        compiler_params=pltpu.CompilerParams(
            dimension_semantics=("parallel",),
            vmem_limit_bytes=vmem_limit),
        cost_estimate=cost,
    )(*args)


def resnet_layer_forward(params, x_nchw, c1, c2, s=1, is_first=False, n=1, e=4):
    """Pallas forward for ultralytics ResNetLayer (is_first=False path)."""
    if is_first:
        # TODO(synk): is_first path (7x7 s=2 Conv+BN+SiLU then MaxPool2d(3,2,1))
        # not implemented as a Pallas kernel.
        raise NotImplementedError("ResNetLayer(is_first=True) not implemented")

    N, C, H, W = x_nchw.shape
    assert C == c1
    cin_p = _round_up(c1, LANE)
    x = jnp.transpose(x_nchw, (0, 2, 3, 1))                       # NHWC
    x = jnp.pad(x, ((0, 0), (0, 0), (0, 0), (0, cin_p - c1)))     # lane-dense
    x = x.astype(jnp.bfloat16)                                    # bf16 MXU path

    in_c, stride = c1, s
    for i in range(n):
        x = resnet_block_pallas(params['blocks'][i], x, in_c, c2, s=stride, e=e)
        in_c, stride = e * c2, 1

    out = x[..., :e * c2].astype(jnp.float32)                     # drop padding
    return jnp.transpose(out, (0, 3, 1, 2))                       # back to NCHW


# ----------------------------------------------------------------------------
# Parameter init (matches ultralytics Conv = conv(bias=False) + BN + SiLU)
# ----------------------------------------------------------------------------
def init_conv_params(key, c_in, c_out, k):
    kw, k1, k2, k3, k4 = jax.random.split(key, 5)
    return dict(
        w=0.1 * jax.random.normal(kw, (c_out, c_in, k, k), jnp.float32),
        gamma=1.0 + 0.1 * jax.random.normal(k1, (c_out,), jnp.float32),
        beta=0.1 * jax.random.normal(k2, (c_out,), jnp.float32),
        mean=0.1 * jax.random.normal(k3, (c_out,), jnp.float32),
        var=1.0 + 0.1 * jax.random.uniform(k4, (c_out,), jnp.float32),
    )


def init_resnet_block_params(key, c1, c2, s=1, e=4):
    c3 = e * c2
    k1, k2, k3, k4 = jax.random.split(key, 4)
    p = dict(cv1=init_conv_params(k1, c1, c2, 1),
             cv2=init_conv_params(k2, c2, c2, 3),
             cv3=init_conv_params(k3, c2, c3, 1))
    if s != 1 or c1 != c3:
        p['shortcut'] = init_conv_params(k4, c1, c3, 1)
    return p


def init_resnet_layer_params(key, c1, c2, s=1, is_first=False, n=1, e=4):
    assert not is_first
    keys = jax.random.split(key, n)
    blocks = []
    in_c, stride = c1, s
    for i in range(n):
        blocks.append(init_resnet_block_params(keys[i], in_c, c2, s=stride, e=e))
        in_c, stride = e * c2, 1
    return dict(blocks=blocks)


# ----------------------------------------------------------------------------
# Pure-JAX reference (numerical sanity check, f32)
# ----------------------------------------------------------------------------
def _ref_conv_bn(x, p, s, pad, act):
    y = lax.conv_general_dilated(
        x, p['w'], window_strides=(s, s), padding=[(pad, pad), (pad, pad)],
        dimension_numbers=('NCHW', 'OIHW', 'NCHW'))
    scale = p['gamma'] / jnp.sqrt(p['var'] + _BN_EPS)
    y = ((y - p['mean'][None, :, None, None]) * scale[None, :, None, None]
         + p['beta'][None, :, None, None])
    if act:
        y = y * jax.nn.sigmoid(y)
    return y


def ref_resnet_block(p, x, c1, c2, s=1, e=4):
    y = _ref_conv_bn(x, p['cv1'], 1, 0, True)
    y = _ref_conv_bn(y, p['cv2'], s, 1, True)
    y = _ref_conv_bn(y, p['cv3'], 1, 0, False)
    sc = _ref_conv_bn(x, p['shortcut'], s, 0, False) if 'shortcut' in p else x
    return jax.nn.relu(y + sc)


def ref_resnet_layer(params, x, c1, c2, s=1, is_first=False, n=1, e=4):
    assert not is_first
    in_c, stride = c1, s
    for i in range(n):
        x = ref_resnet_block(params['blocks'][i], x, in_c, c2, s=stride, e=e)
        in_c, stride = e * c2, 1
    return x


# ----------------------------------------------------------------------------
if __name__ == "__main__":
    c1, c2, s, n, e = 8, 4, 1, 2, 4     # block0: conv shortcut, block1: identity
    N, H, W = 2, 16, 16

    key = jax.random.PRNGKey(0)
    kx, kp = jax.random.split(key)
    x = jax.random.normal(kx, (N, c1, H, W), jnp.float32)
    params = init_resnet_layer_params(kp, c1, c2, s=s, is_first=False, n=n, e=e)

    fwd = jax.jit(functools.partial(resnet_layer_forward, c1=c1, c2=c2, s=s,
                                    is_first=False, n=n, e=e))
    out = jax.block_until_ready(fwd(params, x))

    ref = jax.block_until_ready(
        ref_resnet_layer(params, x, c1, c2, s=s, is_first=False, n=n, e=e))

    assert out.shape == (N, e * c2, H, W), out.shape
    # bf16 matmul inputs -> looser tolerance than the old all-f32 version.
    np.testing.assert_allclose(np.asarray(out), np.asarray(ref),
                               rtol=5e-2, atol=5e-2)
    print("KERNEL_OK")
</pallas_src>

<mosaic_0001>
module attributes {stable_mosaic.version = 11 : i64} {
  func.func @_resnet_block_kernel(%arg0: i32, %arg1: memref<1x16x16x128xbf16, #tpu.memory_space<vmem>>, %arg2: memref<128x128xbf16, #tpu.memory_space<vmem>>, %arg3: memref<1x128xf32, #tpu.memory_space<vmem>>, %arg4: memref<9x128x128xbf16, #tpu.memory_space<vmem>>, %arg5: memref<1x128xf32, #tpu.memory_space<vmem>>, %arg6: memref<128x128xbf16, #tpu.memory_space<vmem>>, %arg7: memref<1x128xf32, #tpu.memory_space<vmem>>, %arg8: memref<128x128xbf16, #tpu.memory_space<vmem>>, %arg9: memref<1x128xf32, #tpu.memory_space<vmem>>, %arg10: memref<1x16x16x128xbf16, #tpu.memory_space<vmem>>, %arg11: memref<1x18x16x128xf32, #tpu.memory_space<vmem>>) attributes {dimension_semantics = [#tpu.dimension_semantics<parallel>], iteration_bounds = array<i64: 2>, scalar_prefetch = 0 : i64, scratch_operands = 1 : i64, tpu.core_type = #tpu.core_type<tc>, window_params = [{transform_indices = @transform_0, window_bounds = array<i64: 1, 16, 16, 128>}, {pipeline_mode = #tpu.pipeline_mode<synchronous>, transform_indices = @transform_1, window_bounds = array<i64: 128, 128>}, {pipeline_mode = #tpu.pipeline_mode<synchronous>, transform_indices = @transform_2, window_bounds = array<i64: 1, 128>}, {pipeline_mode = #tpu.pipeline_mode<synchronous>, transform_indices = @transform_3, window_bounds = array<i64: 9, 128, 128>}, {pipeline_mode = #tpu.pipeline_mode<synchronous>, transform_indices = @transform_4, window_bounds = array<i64: 1, 128>}, {pipeline_mode = #tpu.pipeline_mode<synchronous>, transform_indices = @transform_5, window_bounds = array<i64: 128, 128>}, {pipeline_mode = #tpu.pipeline_mode<synchronous>, transform_indices = @transform_6, window_bounds = array<i64: 1, 128>}, {pipeline_mode = #tpu.pipeline_mode<synchronous>, transform_indices = @transform_7, window_bounds = array<i64: 128, 128>}, {pipeline_mode = #tpu.pipeline_mode<synchronous>, transform_indices = @transform_8, window_bounds = array<i64: 1, 128>}, {transform_indices = @transform_9, window_bounds = array<i64: 1, 16, 16, 128>}]} {
    %c0 = arith.constant 0 : index
    %c0_0 = arith.constant 0 : index
    %c0_1 = arith.constant 0 : index
    %c0_2 = arith.constant 0 : index
    %0 = vector.load %arg1[%c0, %c0_0, %c0_1, %c0_2] : memref<1x16x16x128xbf16, #tpu.memory_space<vmem>>, vector<1x16x16x128xbf16>
    %1 = vector.shape_cast %0 : vector<1x16x16x128xbf16> to vector<256x128xbf16>
    %c0_3 = arith.constant 0 : index
    %c0_4 = arith.constant 0 : index
    %2 = vector.load %arg2[%c0_3, %c0_4] : memref<128x128xbf16, #tpu.memory_space<vmem>>, vector<128x128xbf16>
    %cst = arith.constant dense<0.000000e+00> : vector<256x128xf32>
    %3 = tpu.matmul %1, %2, %cst {dimension_numbers = #tpu.dot_dimension_numbers<[1], [0], [0], [1], [0, 0, 1, 1], [], []>} : vector<256x128xbf16>, vector<128x128xbf16>, vector<256x128xf32> -> vector<256x128xf32>
    %c0_5 = arith.constant 0 : index
    %c0_6 = arith.constant 0 : index
    %4 = vector.load %arg3[%c0_5, %c0_6] : memref<1x128xf32, #tpu.memory_space<vmem>>, vector<1x128xf32>
    %5 = vector.broadcast %4 : vector<1x128xf32> to vector<256x128xf32>
    %6 = arith.addf %3, %5 : vector<256x128xf32>
    %7 = arith.negf %6 : vector<256x128xf32>
    %8 = math.exp %7 : vector<256x128xf32>
    %cst_7 = arith.constant 1.000000e+00 : f32
    %9 = vector.broadcast %cst_7 : f32 to vector<256x128xf32>
    %10 = arith.addf %9, %8 : vector<256x128xf32>
    %11 = arith.divf %9, %10 : vector<256x128xf32>
    %12 = arith.mulf %6, %11 : vector<256x128xf32>
    %cst_8 = arith.constant 0.000000e+00 : f32
    %13 = vector.broadcast %cst_8 : f32 to vector<1x1x16x128xf32>
    %c0_9 = arith.constant 0 : index
    %c0_10 = arith.constant 0 : index
    %c0_11 = arith.constant 0 : index
    %c0_12 = arith.constant 0 : index
    %14 = vector.load %arg11[%c0_9, %c0_10, %c0_11, %c0_12] : memref<1x18x16x128xf32, #tpu.memory_space<vmem>>, vector<1x1x16x128xf32>
    tpu.vector_store %arg11[%c0_9, %c0_10, %c0_11, %c0_12], %13 {strides = array<i32>} : memref<1x18x16x128xf32, #tpu.memory_space<vmem>>, vector<1x1x16x128xf32>,
    %c0_13 = arith.constant 0 : index
    %c17 = arith.constant 17 : index
    %c0_14 = arith.constant 0 : index
    %c0_15 = arith.constant 0 : index
    %15 = vector.load %arg11[%c0_13, %c17, %c0_14, %c0_15] : memref<1x18x16x128xf32, #tpu.memory_space<vmem>>, vector<1x1x16x128xf32>
    tpu.vector_store %arg11[%c0_13, %c17, %c0_14, %c0_15], %13 {strides = array<i32>} : memref<1x18x16x128xf32, #tpu.memory_space<vmem>>, vector<1x1x16x128xf32>,
    %16 = vector.shape_cast %12 : vector<256x128xf32> to vector<1x16x16x128xf32>
    %c0_16 = arith.constant 0 : index
    %c1 = arith.constant 1 : index
    %c0_17 = arith.constant 0 : index
    %c0_18 = arith.constant 0 : index
    %17 = vector.load %arg11[%c0_16, %c1, %c0_17, %c0_18] : memref<1x18x16x128xf32, #tpu.memory_space<vmem>>, vector<1x16x16x128xf32>
    tpu.vector_store %arg11[%c0_16, %c1, %c0_17, %c0_18], %16 {strides = array<i32>} : memref<1x18x16x128xf32, #tpu.memory_space<vmem>>, vector<1x16x16x128xf32>,
    %cst_19 = arith.constant 0.000000e+00 : f32
    %18 = vector.broadcast %cst_19 : f32 to vector<1x16x1x128xf32>
    %cst_20 = arith.constant 0.000000e+00 : f32
    %19 = vector.broadcast %cst_20 : f32 to vector<256x128xf32>
    %c0_21 = arith.constant 0 : index
    %c0_22 = arith.constant 0 : index
    %c0_23 = arith.constant 0 : index
    %c0_24 = arith.constant 0 : index
    %20 = vector.load %arg11[%c0_21, %c0_22, %c0_23, %c0_24] : memref<1x18x16x128xf32, #tpu.memory_space<vmem>>, vector<1x16x16x128xf32>
    %21 = vector.extract_strided_slice %20 {offsets = [0, 0, 0, 0], sizes = [1, 16, 15, 128], strides = [1, 1, 1, 1]} : vector<1x16x16x128xf32> to vector<1x16x15x128xf32>
    %22 = tpu.concatenate %18, %21 in 2 : vector<1x16x1x128xf32>, vector<1x16x15x128xf32> -> vector<1x16x16x128xf32>
    %23 = vector.shape_cast %22 : vector<1x16x16x128xf32> to vector<256x128xf32>
    %24 = arith.truncf %23 : vector<256x128xf32> to vector<256x128xbf16>
    %c0_25 = arith.constant 0 : index
    %c0_26 = arith.constant 0 : index
    %c0_27 = arith.constant 0 : index
    %25 = vector.load %arg4[%c0_25, %c0_26, %c0_27] : memref<9x128x128xbf16, #tpu.memory_space<vmem>>, vector<1x128x128xbf16>
    %26 = vector.shape_cast %25 : vector<1x128x128xbf16> to vector<128x128xbf16>
    %cst_28 = arith.constant dense<0.000000e+00> : vector<256x128xf32>
    %27 = tpu.matmul %24, %26, %cst_28 {dimension_numbers = #tpu.dot_dimension_numbers<[1], [0], [0], [1], [0, 0, 1, 1], [], []>} : vector<256x128xbf16>, vector<128x128xbf16>, vector<256x128xf32> -> vector<256x128xf32>
    %28 = arith.addf %19, %27 : vector<256x128xf32>
    %29 = vector.shape_cast %20 : vector<1x16x16x128xf32> to vector<256x128xf32>
    %30 = arith.truncf %29 : vector<256x128xf32> to vector<256x128xbf16>
    %c1_29 = arith.constant 1 : index
    %c0_30 = arith.constant 0 : index
    %c0_31 = arith.constant 0 : index
    %31 = vector.load %arg4[%c1_29, %c0_30, %c0_31] : memref<9x128x128xbf16, #tpu.memory_space<vmem>>, vector<1x128x128xbf16>
    %32 = vector.shape_cast %31 : vector<1x128x128xbf16> to vector<128x128xbf16>
    %cst_32 = arith.constant dense<0.000000e+00> : vector<256x128xf32>
    %33 = tpu.matmul %30, %32, %cst_32 {dimension_numbers = #tpu.dot_dimension_numbers<[1], [0], [0], [1], [0, 0, 1, 1], [], []>} : vector<256x128xbf16>, vector<128x128xbf16>, vector<256x128xf32> -> vector<256x128xf32>
    %34 = arith.addf %28, %33 : vector<256x128xf32>
    %35 = vector.extract_strided_slice %20 {offsets = [0, 0, 1, 0], sizes = [1, 16, 15, 128], strides = [1, 1, 1, 1]} : vector<1x16x16x128xf32> to vector<1x16x15x128xf32>
    %36 = tpu.concatenate %35, %18 in 2 : vector<1x16x15x128xf32>, vector<1x16x1x128xf32> -> vector<1x16x16x128xf32>
    %37 = vector.shape_cast %36 : vector<1x16x16x128xf32> to vector<256x128xf32>
    %38 = arith.truncf %37 : vector<256x128xf32> to vector<256x128xbf16>
    %c2 = arith.constant 2 : index
    %c0_33 = arith.constant 0 : index
    %c0_34 = arith.constant 0 : index
    %39 = vector.load %arg4[%c2, %c0_33, %c0_34] : memref<9x128x128xbf16, #tpu.memory_space<vmem>>, vector<1x128x128xbf16>
    %40 = vector.shape_cast %39 : vector<1x128x128xbf16> to vector<128x128xbf16>
    %cst_35 = arith.constant dense<0.000000e+00> : vector<256x128xf32>
    %41 = tpu.matmul %38, %40, %cst_35 {dimension_numbers = #tpu.dot_dimension_numbers<[1], [0], [0], [1], [0, 0, 1, 1], [], []>} : vector<256x128xbf16>, vector<128x128xbf16>, vector<256x128xf32> -> vector<256x128xf32>
    %42 = arith.addf %34, %41 : vector<256x128xf32>
    %c0_36 = arith.constant 0 : index
    %c1_37 = arith.constant 1 : index
    %c0_38 = arith.constant 0 : index
    %c0_39 = arith.constant 0 : index
    %43 = vector.load %arg11[%c0_36, %c1_37, %c0_38, %c0_39] : memref<1x18x16x128xf32, #tpu.memory_space<vmem>>, vector<1x16x16x128xf32>
    %44 = vector.extract_strided_slice %43 {offsets = [0, 0, 0, 0], sizes = [1, 16, 15, 128], strides = [1, 1, 1, 1]} : vector<1x16x16x128xf32> to vector<1x16x15x128xf32>
    %45 = tpu.concatenate %18, %44 in 2 : vector<1x16x1x128xf32>, vector<1x16x15x128xf32> -> vector<1x16x16x128xf32>
    %46 = vector.shape_cast %45 : vector<1x16x16x128xf32> to vector<256x128xf32>
    %47 = arith.truncf %46 : vector<256x128xf32> to vector<256x128xbf16>
    %c3 = arith.constant 3 : index
    %c0_40 = arith.constant 0 : index
    %c0_41 = arith.constant 0 : index
    %48 = vector.load %arg4[%c3, %c0_40, %c0_41] : memref<9x128x128xbf16, #tpu.memory_space<vmem>>, vector<1x128x128xbf16>
    %49 = vector.shape_cast %48 : vector<1x128x128xbf16> to vector<128x128xbf16>
    %cst_42 = arith.constant dense<0.000000e+00> : vector<256x128xf32>
    %50 = tpu.matmul %47, %49, %cst_42 {dimension_numbers = #tpu.dot_dimension_numbers<[1], [0], [0], [1], [0, 0, 1, 1], [], []>} : vector<256x128xbf16>, vector<128x128xbf16>, vector<256x128xf32> -> vector<256x128xf32>
    %51 = arith.addf %42, %50 : vector<256x128xf32>
    %52 = vector.shape_cast %43 : vector<1x16x16x128xf32> to vector<256x128xf32>
    %53 = arith.truncf %52 : vector<256x128xf32> to vector<256x128xbf16>
    %c4 = arith.constant 4 : index
    %c0_43 = arith.constant 0 : index
    %c0_44 = arith.constant 0 : index
    %54 = vector.load %arg4[%c4, %c0_43, %c0_44] : memref<9x128x128xbf16, #tpu.memory_space<vmem>>, vector<1x128x128xbf16>
    %55 = vector.shape_cast %54 : vector<1x128x128xbf16> to vector<128x128xbf16>
    %cst_45 = arith.constant dense<0.000000e+00> : vector<256x128xf32>
    %56 = tpu.matmul %53, %55, %cst_45 {dimension_numbers = #tpu.dot_dimension_numbers<[1], [0], [0], [1], [0, 0, 1, 1], [], []>} : vector<256x128xbf16>, vector<128x128xbf16>, vector<256x128xf32> -> vector<256x128xf32>
    %57 = arith.addf %51, %56 : vector<256x128xf32>
    %58 = vector.extract_strided_slice %43 {offsets = [0, 0, 1, 0], sizes = [1, 16, 15, 128], strides = [1, 1, 1, 1]} : vector<1x16x16x128xf32> to vector<1x16x15x128xf32>
    %59 = tpu.concatenate %58, %18 in 2 : vector<1x16x15x128xf32>, vector<1x16x1x128xf32> -> vector<1x16x16x128xf32>
    %60 = vector.shape_cast %59 : vector<1x16x16x128xf32> to vector<256x128xf32>
    %61 = arith.truncf %60 : vector<256x128xf32> to vector<256x128xbf16>
    %c5 = arith.constant 5 : index
    %c0_46 = arith.constant 0 : index
    %c0_47 = arith.constant 0 : index
    %62 = vector.load %arg4[%c5, %c0_46, %c0_47] : memref<9x128x128xbf16, #tpu.memory_space<vmem>>, vector<1x128x128xbf16>
    %63 = vector.shape_cast %62 : vector<1x128x128xbf16> to vector<128x128xbf16>
    %cst_48 = arith.constant dense<0.000000e+00> : vector<256x128xf32>
    %64 = tpu.matmul %61, %63, %cst_48 {dimension_numbers = #tpu.dot_dimension_numbers<[1], [0], [0], [1], [0, 0, 1, 1], [], []>} : vector<256x128xbf16>, vector<128x128xbf16>, vector<256x128xf32> -> vector<256x128xf32>
    %65 = arith.addf %57, %64 : vector<256x128xf32>
    %c0_49 = arith.constant 0 : index
    %c2_50 = arith.constant 2 : index
    %c0_51 = arith.constant 0 : index
    %c0_52 = arith.constant 0 : index
    %66 = vector.load %arg11[%c0_49, %c2_50, %c0_51, %c0_52] : memref<1x18x16x128xf32, #tpu.memory_space<vmem>>, vector<1x16x16x128xf32>
    %67 = vector.extract_strided_slice %66 {offsets = [0, 0, 0, 0], sizes = [1, 16, 15, 128], strides = [1, 1, 1, 1]} : vector<1x16x16x128xf32> to vector<1x16x15x128xf32>
    %68 = tpu.concatenate %18, %67 in 2 : vector<1x16x1x128xf32>, vector<1x16x15x128xf32> -> vector<1x16x16x128xf32>
    %69 = vector.shape_cast %68 : vector<1x16x16x128xf32> to vector<256x128xf32>
    %70 = arith.truncf %69 : vector<256x128xf32> to vector<256x128xbf16>
    %c6 = arith.constant 6 : index
    %c0_53 = arith.constant 0 : index
    %c0_54 = arith.constant 0 : index
    %71 = vector.load %arg4[%c6, %c0_53, %c0_54] : memref<9x128x128xbf16, #tpu.memory_space<vmem>>, vector<1x128x128xbf16>
    %72 = vector.shape_cast %71 : vector<1x128x128xbf16> to vector<128x128xbf16>
    %cst_55 = arith.constant dense<0.000000e+00> : vector<256x128xf32>
    %73 = tpu.matmul %70, %72, %cst_55 {dimension_numbers = #tpu.dot_dimension_numbers<[1], [0], [0], [1], [0, 0, 1, 1], [], []>} : vector<256x128xbf16>, vector<128x128xbf16>, vector<256x128xf32> -> vector<256x128xf32>
    %74 = arith.addf %65, %73 : vector<256x128xf32>
    %75 = vector.shape_cast %66 : vector<1x16x16x128xf32> to vector<256x128xf32>
    %76 = arith.truncf %75 : vector<256x128xf32> to vector<256x128xbf16>
    %c7 = arith.constant 7 : index
    %c0_56 = arith.constant 0 : index
    %c0_57 = arith.constant 0 : index
    %77 = vector.load %arg4[%c7, %c0_56, %c0_57] : memref<9x128x128xbf16, #tpu.memory_space<vmem>>, vector<1x128x128xbf16>
    %78 = vector.shape_cast %77 : vector<1x128x128xbf16> to vector<128x128xbf16>
    %cst_58 = arith.constant dense<0.000000e+00> : vector<256x128xf32>
    %79 = tpu.matmul %76, %78, %cst_58 {dimension_numbers = #tpu.dot_dimension_numbers<[1], [0], [0], [1], [0, 0, 1, 1], [], []>} : vector<256x128xbf16>, vector<128x128xbf16>, vector<256x128xf32> -> vector<256x128xf32>
    %80 = arith.addf %74, %79 : vector<256x128xf32>
    %81 = vector.extract_strided_slice %66 {offsets = [0, 0, 1, 0], sizes = [1, 16, 15, 128], strides = [1, 1, 1, 1]} : vector<1x16x16x128xf32> to vector<1x16x15x128xf32>
    %82 = tpu.concatenate %81, %18 in 2 : vector<1x16x15x128xf32>, vector<1x16x1x128xf32> -> vector<1x16x16x128xf32>
    %83 = vector.shape_cast %82 : vector<1x16x16x128xf32> to vector<256x128xf32>
    %84 = arith.truncf %83 : vector<256x128xf32> to vector<256x128xbf16>
    %c8 = arith.constant 8 : index
    %c0_59 = arith.constant 0 : index
    %c0_60 = arith.constant 0 : index
    %85 = vector.load %arg4[%c8, %c0_59, %c0_60] : memref<9x128x128xbf16, #tpu.memory_space<vmem>>, vector<1x128x128xbf16>
    %86 = vector.shape_cast %85 : vector<1x128x128xbf16> to vector<128x128xbf16>
    %cst_61 = arith.constant dense<0.000000e+00> : vector<256x128xf32>
    %87 = tpu.matmul %84, %86, %cst_61 {dimension_numbers = #tpu.dot_dimension_numbers<[1], [0], [0], [1], [0, 0, 1, 1], [], []>} : vector<256x128xbf16>, vector<128x128xbf16>, vector<256x128xf32> -> vector<256x128xf32>
    %88 = arith.addf %80, %87 : vector<256x128xf32>
    %c0_62 = arith.constant 0 : index
    %c0_63 = arith.constant 0 : index
    %89 = vector.load %arg5[%c0_62, %c0_63] : memref<1x128xf32, #tpu.memory_space<vmem>>, vector<1x128xf32>
    %90 = vector.broadcast %89 : vector<1x128xf32> to vector<256x128xf32>
    %91 = arith.addf %88, %90 : vector<256x128xf32>
    %92 = arith.negf %91 : vector<256x128xf32>
    %93 = math.exp %92 : vector<256x128xf32>
    %cst_64 = arith.constant 1.000000e+00 : f32
    %94 = vector.broadcast %cst_64 : f32 to vector<256x128xf32>
    %95 = arith.addf %94, %93 : vector<256x128xf32>
    %96 = arith.divf %94, %95 : vector<256x128xf32>
    %97 = arith.mulf %91, %96 : vector<256x128xf32>
    %98 = arith.truncf %97 : vector<256x128xf32> to vector<256x128xbf16>
    %c0_65 = arith.constant 0 : index
    %c0_66 = arith.constant 0 : index
    %99 = vector.load %arg6[%c0_65, %c0_66] : memref<128x128xbf16, #tpu.memory_space<vmem>>, vector<128x128xbf16>
    %cst_67 = arith.constant dense<0.000000e+00> : vector<256x128xf32>
    %100 = tpu.matmul %98, %99, %cst_67 {dimension_numbers = #tpu.dot_dimension_numbers<[1], [0], [0], [1], [0, 0, 1, 1], [], []>} : vector<256x128xbf16>, vector<128x128xbf16>, vector<256x128xf32> -> vector<256x128xf32>
    %c0_68 = arith.constant 0 : index
    %c0_69 = arith.constant 0 : index
    %101 = vector.load %arg7[%c0_68, %c0_69] : memref<1x128xf32, #tpu.memory_space<vmem>>, vector<1x128xf32>
    %102 = vector.broadcast %101 : vector<1x128xf32> to vector<256x128xf32>
    %103 = arith.addf %100, %102 : vector<256x128xf32>
    %c0_70 = arith.constant 0 : index
    %c0_71 = arith.constant 0 : index
    %c0_72 = arith.constant 0 : index
    %c0_73 = arith.constant 0 : index
    %104 = vector.load %arg1[%c0_70, %c0_71, %c0_72, %c0_73] : memref<1x16x16x128xbf16, #tpu.memory_space<vmem>>, vector<1x16x16x128xbf16>
    %105 = vector.shape_cast %104 : vector<1x16x16x128xbf16> to vector<256x128xbf16>
    %c0_74 = arith.constant 0 : index
    %c0_75 = arith.constant 0 : index
    %106 = vector.load %arg8[%c0_74, %c0_75] : memref<128x128xbf16, #tpu.memory_space<vmem>>, vector<128x128xbf16>
    %cst_76 = arith.constant dense<0.000000e+00> : vector<256x128xf32>
    %107 = tpu.matmul %105, %106, %cst_76 {dimension_numbers = #tpu.dot_dimension_numbers<[1], [0], [0], [1], [0, 0, 1, 1], [], []>} : vector<256x128xbf16>, vector<128x128xbf16>, vector<256x128xf32> -> vector<256x128xf32>
    %c0_77 = arith.constant 0 : index
    %c0_78 = arith.constant 0 : index
    %108 = vector.load %arg9[%c0_77, %c0_78] : memref<1x128xf32, #tpu.memory_space<vmem>>, vector<1x128xf32>
    %109 = vector.broadcast %108 : vector<1x128xf32> to vector<256x128xf32>
    %110 = arith.addf %107, %109 : vector<256x128xf32>
    %111 = arith.addf %103, %110 : vector<256x128xf32>
    %cst_79 = arith.constant 0.000000e+00 : f32
    %112 = vector.broadcast %cst_79 : f32 to vector<256x128xf32>
    %113 = arith.maximumf %111, %112 : vector<256x128xf32>
    %114 = vector.shape_cast %113 : vector<256x128xf32> to vector<1x16x16x128xf32>
    %115 = arith.truncf %114 : vector<1x16x16x128xf32> to vector<1x16x16x128xbf16>
    %c0_80 = arith.constant 0 : index
    %c0_81 = arith.constant 0 : index
    %c0_82 = arith.constant 0 : index
    %c0_83 = arith.constant 0 : index
    %116 = vector.load %arg10[%c0_80, %c0_81, %c0_82, %c0_83] : memref<1x16x16x128xbf16, #tpu.memory_space<vmem>>, vector<1x16x16x128xbf16>
    tpu.vector_store %arg10[%c0_80, %c0_81, %c0_82, %c0_83], %115 {strides = array<i32>} : memref<1x16x16x128xbf16, #tpu.memory_space<vmem>>, vector<1x16x16x128xbf16>,
    return
  }
  func.func @transform_0(%arg0: i32) -> (i32, i32, i32, i32) {
    %c0_i32 = arith.constant 0 : i32
    %c0_i32_0 = arith.constant 0 : i32
    %c0_i32_1 = arith.constant 0 : i32
    %c0_i32_2 = arith.constant 0 : i32
    return %arg0, %c0_i32, %c0_i32_0, %c0_i32_1 : i32, i32, i32, i32
  }
  func.func @transform_1(%arg0: i32) -> (i32, i32) {
    %c0_i32 = arith.constant 0 : i32
    %c0_i32_0 = arith.constant 0 : i32
    %c0_i32_1 = arith.constant 0 : i32
    return %c0_i32, %c0_i32_0 : i32, i32
  }
  func.func @transform_2(%arg0: i32) -> (i32, i32) {
    %c0_i32 = arith.constant 0 : i32
    %c0_i32_0 = arith.constant 0 : i32
    %c0_i32_1 = arith.constant 0 : i32
    return %c0_i32, %c0_i32_0 : i32, i32
  }
  func.func @transform_3(%arg0: i32) -> (i32, i32, i32) {
    %c0_i32 = arith.constant 0 : i32
    %c0_i32_0 = arith.constant 0 : i32
    %c0_i32_1 = arith.constant 0 : i32
    %c0_i32_2 = arith.constant 0 : i32
    return %c0_i32, %c0_i32_0, %c0_i32_1 : i32, i32, i32
  }
  func.func @transform_4(%arg0: i32) -> (i32, i32) {
    %c0_i32 = arith.constant 0 : i32
    %c0_i32_0 = arith.constant 0 : i32
    %c0_i32_1 = arith.constant 0 : i32
    return %c0_i32, %c0_i32_0 : i32, i32
  }
  func.func @transform_5(%arg0: i32) -> (i32, i32) {
    %c0_i32 = arith.constant 0 : i32
    %c0_i32_0 = arith.constant 0 : i32
    %c0_i32_1 = arith.constant 0 : i32
    return %c0_i32, %c0_i32_0 : i32, i32
  }
  func.func @transform_6(%arg0: i32) -> (i32, i32) {
    %c0_i32 = arith.constant 0 : i32
    %c0_i32_0 = arith.constant 0 : i32
    %c0_i32_1 = arith.constant 0 : i32
    return %c0_i32, %c0_i32_0 : i32, i32
  }
  func.func @transform_7(%arg0: i32) -> (i32, i32) {
    %c0_i32 = arith.constant 0 : i32
    %c0_i32_0 = arith.constant 0 : i32
    %c0_i32_1 = arith.constant 0 : i32
    return %c0_i32, %c0_i32_0 : i32, i32
  }
  func.func @transform_8(%arg0: i32) -> (i32, i32) {
    %c0_i32 = arith.constant 0 : i32
    %c0_i32_0 = arith.constant 0 : i32
    %c0_i32_1 = arith.constant 0 : i32
    return %c0_i32, %c0_i32_0 : i32, i32
  }
  func.func @transform_9(%arg0: i32) -> (i32, i32, i32, i32) {
    %c0_i32 = arith.constant 0 : i32
    %c0_i32_0 = arith.constant 0 : i32
    %c0_i32_1 = arith.constant 0 : i32
    %c0_i32_2 = arith.constant 0 : i32
    return %arg0, %c0_i32, %c0_i32_0, %c0_i32_1 : i32, i32, i32, i32
  }
}

module attributes {stable_mosaic.version = 11 : i64} {
  func.func @_resnet_block_kernel(%arg0: i32, %arg1: memref<1x16x16x128xbf16, #tpu.memory_space<vmem>>, %arg2: memref<128x128xbf16, #tpu.memory_space<vmem>>, %arg3: memref<1x128xf32, #tpu.memory_space<vmem>>, %arg4: memref<9x128x128xbf16, #tpu.memory_space<vmem>>, %arg5: memref<1x128xf32, #tpu.memory_space<vmem>>, %arg6: memref<128x128xbf16, #tpu.memory_space<vmem>>, %arg7: memref<1x128xf32, #tpu.memory_space<vmem>>, %arg8: memref<1x16x16x128xbf16, #tpu.memory_space<vmem>>, %arg9: memref<1x18x16x128xf32, #tpu.memory_space<vmem>>) attributes {dimension_semantics = [#tpu.dimension_semantics<parallel>], iteration_bounds = array<i64: 2>, scalar_prefetch = 0 : i64, scratch_operands = 1 : i64, tpu.core_type = #tpu.core_type<tc>, window_params = [{transform_indices = @transform_0, window_bounds = array<i64: 1, 16, 16, 128>}, {pipeline_mode = #tpu.pipeline_mode<synchronous>, transform_indices = @transform_1, window_bounds = array<i64: 128, 128>}, {pipeline_mode = #tpu.pipeline_mode<synchronous>, transform_indices = @transform_2, window_bounds = array<i64: 1, 128>}, {pipeline_mode = #tpu.pipeline_mode<synchronous>, transform_indices = @transform_3, window_bounds = array<i64: 9, 128, 128>}, {pipeline_mode = #tpu.pipeline_mode<synchronous>, transform_indices = @transform_4, window_bounds = array<i64: 1, 128>}, {pipeline_mode = #tpu.pipeline_mode<synchronous>, transform_indices = @transform_5, window_bounds = array<i64: 128, 128>}, {pipeline_mode = #tpu.pipeline_mode<synchronous>, transform_indices = @transform_6, window_bounds = array<i64: 1, 128>}, {transform_indices = @transform_7, window_bounds = array<i64: 1, 16, 16, 128>}]} {
    %c0 = arith.constant 0 : index
    %c0_0 = arith.constant 0 : index
    %c0_1 = arith.constant 0 : index
    %c0_2 = arith.constant 0 : index
    %0 = vector.load %arg1[%c0, %c0_0, %c0_1, %c0_2] : memref<1x16x16x128xbf16, #tpu.memory_space<vmem>>, vector<1x16x16x128xbf16>
    %1 = vector.shape_cast %0 : vector<1x16x16x128xbf16> to vector<256x128xbf16>
    %c0_3 = arith.constant 0 : index
    %c0_4 = arith.constant 0 : index
    %2 = vector.load %arg2[%c0_3, %c0_4] : memref<128x128xbf16, #tpu.memory_space<vmem>>, vector<128x128xbf16>
    %cst = arith.constant dense<0.000000e+00> : vector<256x128xf32>
    %3 = tpu.matmul %1, %2, %cst {dimension_numbers = #tpu.dot_dimension_numbers<[1], [0], [0], [1], [0, 0, 1, 1], [], []>} : vector<256x128xbf16>, vector<128x128xbf16>, vector<256x128xf32> -> vector<256x128xf32>
    %c0_5 = arith.constant 0 : index
    %c0_6 = arith.constant 0 : index
    %4 = vector.load %arg3[%c0_5, %c0_6] : memref<1x128xf32, #tpu.memory_space<vmem>>, vector<1x128xf32>
    %5 = vector.broadcast %4 : vector<1x128xf32> to vector<256x128xf32>
    %6 = arith.addf %3, %5 : vector<256x128xf32>
    %7 = arith.negf %6 : vector<256x128xf32>
    %8 = math.exp %7 : vector<256x128xf32>
    %cst_7 = arith.constant 1.000000e+00 : f32
    %9 = vector.broadcast %cst_7 : f32 to vector<256x128xf32>
    %10 = arith.addf %9, %8 : vector<256x128xf32>
    %11 = arith.divf %9, %10 : vector<256x128xf32>
    %12 = arith.mulf %6, %11 : vector<256x128xf32>
    %cst_8 = arith.constant 0.000000e+00 : f32
    %13 = vector.broadcast %cst_8 : f32 to vector<1x1x16x128xf32>
    %c0_9 = arith.constant 0 : index
    %c0_10 = arith.constant 0 : index
    %c0_11 = arith.constant 0 : index
    %c0_12 = arith.constant 0 : index
    %14 = vector.load %arg9[%c0_9, %c0_10, %c0_11, %c0_12] : memref<1x18x16x128xf32, #tpu.memory_space<vmem>>, vector<1x1x16x128xf32>
    tpu.vector_store %arg9[%c0_9, %c0_10, %c0_11, %c0_12], %13 {strides = array<i32>} : memref<1x18x16x128xf32, #tpu.memory_space<vmem>>, vector<1x1x16x128xf32>,
    %c0_13 = arith.constant 0 : index
    %c17 = arith.constant 17 : index
    %c0_14 = arith.constant 0 : index
    %c0_15 = arith.constant 0 : index
    %15 = vector.load %arg9[%c0_13, %c17, %c0_14, %c0_15] : memref<1x18x16x128xf32, #tpu.memory_space<vmem>>, vector<1x1x16x128xf32>
    tpu.vector_store %arg9[%c0_13, %c17, %c0_14, %c0_15], %13 {strides = array<i32>} : memref<1x18x16x128xf32, #tpu.memory_space<vmem>>, vector<1x1x16x128xf32>,
    %16 = vector.shape_cast %12 : vector<256x128xf32> to vector<1x16x16x128xf32>
    %c0_16 = arith.constant 0 : index
    %c1 = arith.constant 1 : index
    %c0_17 = arith.constant 0 : index
    %c0_18 = arith.constant 0 : index
    %17 = vector.load %arg9[%c0_16, %c1, %c0_17, %c0_18] : memref<1x18x16x128xf32, #tpu.memory_space<vmem>>, vector<1x16x16x128xf32>
    tpu.vector_store %arg9[%c0_16, %c1, %c0_17, %c0_18], %16 {strides = array<i32>} : memref<1x18x16x128xf32, #tpu.memory_space<vmem>>, vector<1x16x16x128xf32>,
    %cst_19 = arith.constant 0.000000e+00 : f32
    %18 = vector.broadcast %cst_19 : f32 to vector<1x16x1x128xf32>
    %cst_20 = arith.constant 0.000000e+00 : f32
    %19 = vector.broadcast %cst_20 : f32 to vector<256x128xf32>
    %c0_21 = arith.constant 0 : index
    %c0_22 = arith.constant 0 : index
    %c0_23 = arith.constant 0 : index
    %c0_24 = arith.constant 0 : index
    %20 = vector.load %arg9[%c0_21, %c0_22, %c0_23, %c0_24] : memref<1x18x16x128xf32, #tpu.memory_space<vmem>>, vector<1x16x16x128xf32>
    %21 = vector.extract_strided_slice %20 {offsets = [0, 0, 0, 0], sizes = [1, 16, 15, 128], strides = [1, 1, 1, 1]} : vector<1x16x16x128xf32> to vector<1x16x15x128xf32>
    %22 = tpu.concatenate %18, %21 in 2 : vector<1x16x1x128xf32>, vector<1x16x15x128xf32> -> vector<1x16x16x128xf32>
    %23 = vector.shape_cast %22 : vector<1x16x16x128xf32> to vector<256x128xf32>
    %24 = arith.truncf %23 : vector<256x128xf32> to vector<256x128xbf16>
    %c0_25 = arith.constant 0 : index
    %c0_26 = arith.constant 0 : index
    %c0_27 = arith.constant 0 : index
    %25 = vector.load %arg4[%c0_25, %c0_26, %c0_27] : memref<9x128x128xbf16, #tpu.memory_space<vmem>>, vector<1x128x128xbf16>
    %26 = vector.shape_cast %25 : vector<1x128x128xbf16> to vector<128x128xbf16>
    %cst_28 = arith.constant dense<0.000000e+00> : vector<256x128xf32>
    %27 = tpu.matmul %24, %26, %cst_28 {dimension_numbers = #tpu.dot_dimension_numbers<[1], [0], [0], [1], [0, 0, 1, 1], [], []>} : vector<256x128xbf16>, vector<128x128xbf16>, vector<256x128xf32> -> vector<256x128xf32>
    %28 = arith.addf %19, %27 : vector<256x128xf32>
    %29 = vector.shape_cast %20 : vector<1x16x16x128xf32> to vector<256x128xf32>
    %30 = arith.truncf %29 : vector<256x128xf32> to vector<256x128xbf16>
    %c1_29 = arith.constant 1 : index
    %c0_30 = arith.constant 0 : index
    %c0_31 = arith.constant 0 : index
    %31 = vector.load %arg4[%c1_29, %c0_30, %c0_31] : memref<9x128x128xbf16, #tpu.memory_space<vmem>>, vector<1x128x128xbf16>
    %32 = vector.shape_cast %31 : vector<1x128x128xbf16> to vector<128x128xbf16>
    %cst_32 = arith.constant dense<0.000000e+00> : vector<256x128xf32>
    %33 = tpu.matmul %30, %32, %cst_32 {dimension_numbers = #tpu.dot_dimension_numbers<[1], [0], [0], [1], [0, 0, 1, 1], [], []>} : vector<256x128xbf16>, vector<128x128xbf16>, vector<256x128xf32> -> vector<256x128xf32>
    %34 = arith.addf %28, %33 : vector<256x128xf32>
    %35 = vector.extract_strided_slice %20 {offsets = [0, 0, 1, 0], sizes = [1, 16, 15, 128], strides = [1, 1, 1, 1]} : vector<1x16x16x128xf32> to vector<1x16x15x128xf32>
    %36 = tpu.concatenate %35, %18 in 2 : vector<1x16x15x128xf32>, vector<1x16x1x128xf32> -> vector<1x16x16x128xf32>
    %37 = vector.shape_cast %36 : vector<1x16x16x128xf32> to vector<256x128xf32>
    %38 = arith.truncf %37 : vector<256x128xf32> to vector<256x128xbf16>
    %c2 = arith.constant 2 : index
    %c0_33 = arith.constant 0 : index
    %c0_34 = arith.constant 0 : index
    %39 = vector.load %arg4[%c2, %c0_33, %c0_34] : memref<9x128x128xbf16, #tpu.memory_space<vmem>>, vector<1x128x128xbf16>
    %40 = vector.shape_cast %39 : vector<1x128x128xbf16> to vector<128x128xbf16>
    %cst_35 = arith.constant dense<0.000000e+00> : vector<256x128xf32>
    %41 = tpu.matmul %38, %40, %cst_35 {dimension_numbers = #tpu.dot_dimension_numbers<[1], [0], [0], [1], [0, 0, 1, 1], [], []>} : vector<256x128xbf16>, vector<128x128xbf16>, vector<256x128xf32> -> vector<256x128xf32>
    %42 = arith.addf %34, %41 : vector<256x128xf32>
    %c0_36 = arith.constant 0 : index
    %c1_37 = arith.constant 1 : index
    %c0_38 = arith.constant 0 : index
    %c0_39 = arith.constant 0 : index
    %43 = vector.load %arg9[%c0_36, %c1_37, %c0_38, %c0_39] : memref<1x18x16x128xf32, #tpu.memory_space<vmem>>, vector<1x16x16x128xf32>
    %44 = vector.extract_strided_slice %43 {offsets = [0, 0, 0, 0], sizes = [1, 16, 15, 128], strides = [1, 1, 1, 1]} : vector<1x16x16x128xf32> to vector<1x16x15x128xf32>
    %45 = tpu.concatenate %18, %44 in 2 : vector<1x16x1x128xf32>, vector<1x16x15x128xf32> -> vector<1x16x16x128xf32>
    %46 = vector.shape_cast %45 : vector<1x16x16x128xf32> to vector<256x128xf32>
    %47 = arith.truncf %46 : vector<256x128xf32> to vector<256x128xbf16>
    %c3 = arith.constant 3 : index
    %c0_40 = arith.constant 0 : index
    %c0_41 = arith.constant 0 : index
    %48 = vector.load %arg4[%c3, %c0_40, %c0_41] : memref<9x128x128xbf16, #tpu.memory_space<vmem>>, vector<1x128x128xbf16>
    %49 = vector.shape_cast %48 : vector<1x128x128xbf16> to vector<128x128xbf16>
    %cst_42 = arith.constant dense<0.000000e+00> : vector<256x128xf32>
    %50 = tpu.matmul %47, %49, %cst_42 {dimension_numbers = #tpu.dot_dimension_numbers<[1], [0], [0], [1], [0, 0, 1, 1], [], []>} : vector<256x128xbf16>, vector<128x128xbf16>, vector<256x128xf32> -> vector<256x128xf32>
    %51 = arith.addf %42, %50 : vector<256x128xf32>
    %52 = vector.shape_cast %43 : vector<1x16x16x128xf32> to vector<256x128xf32>
    %53 = arith.truncf %52 : vector<256x128xf32> to vector<256x128xbf16>
    %c4 = arith.constant 4 : index
    %c0_43 = arith.constant 0 : index
    %c0_44 = arith.constant 0 : index
    %54 = vector.load %arg4[%c4, %c0_43, %c0_44] : memref<9x128x128xbf16, #tpu.memory_space<vmem>>, vector<1x128x128xbf16>
    %55 = vector.shape_cast %54 : vector<1x128x128xbf16> to vector<128x128xbf16>
    %cst_45 = arith.constant dense<0.000000e+00> : vector<256x128xf32>
    %56 = tpu.matmul %53, %55, %cst_45 {dimension_numbers = #tpu.dot_dimension_numbers<[1], [0], [0], [1], [0, 0, 1, 1], [], []>} : vector<256x128xbf16>, vector<128x128xbf16>, vector<256x128xf32> -> vector<256x128xf32>
    %57 = arith.addf %51, %56 : vector<256x128xf32>
    %58 = vector.extract_strided_slice %43 {offsets = [0, 0, 1, 0], sizes = [1, 16, 15, 128], strides = [1, 1, 1, 1]} : vector<1x16x16x128xf32> to vector<1x16x15x128xf32>
    %59 = tpu.concatenate %58, %18 in 2 : vector<1x16x15x128xf32>, vector<1x16x1x128xf32> -> vector<1x16x16x128xf32>
    %60 = vector.shape_cast %59 : vector<1x16x16x128xf32> to vector<256x128xf32>
    %61 = arith.truncf %60 : vector<256x128xf32> to vector<256x128xbf16>
    %c5 = arith.constant 5 : index
    %c0_46 = arith.constant 0 : index
    %c0_47 = arith.constant 0 : index
    %62 = vector.load %arg4[%c5, %c0_46, %c0_47] : memref<9x128x128xbf16, #tpu.memory_space<vmem>>, vector<1x128x128xbf16>
    %63 = vector.shape_cast %62 : vector<1x128x128xbf16> to vector<128x128xbf16>
    %cst_48 = arith.constant dense<0.000000e+00> : vector<256x128xf32>
    %64 = tpu.matmul %61, %63, %cst_48 {dimension_numbers = #tpu.dot_dimension_numbers<[1], [0], [0], [1], [0, 0, 1, 1], [], []>} : vector<256x128xbf16>, vector<128x128xbf16>, vector<256x128xf32> -> vector<256x128xf32>
    %65 = arith.addf %57, %64 : vector<256x128xf32>
    %c0_49 = arith.constant 0 : index
    %c2_50 = arith.constant 2 : index
    %c0_51 = arith.constant 0 : index
    %c0_52 = arith.constant 0 : index
    %66 = vector.load %arg9[%c0_49, %c2_50, %c0_51, %c0_52] : memref<1x18x16x128xf32, #tpu.memory_space<vmem>>, vector<1x16x16x128xf32>
    %67 = vector.extract_strided_slice %66 {offsets = [0, 0, 0, 0], sizes = [1, 16, 15, 128], strides = [1, 1, 1, 1]} : vector<1x16x16x128xf32> to vector<1x16x15x128xf32>
    %68 = tpu.concatenate %18, %67 in 2 : vector<1x16x1x128xf32>, vector<1x16x15x128xf32> -> vector<1x16x16x128xf32>
    %69 = vector.shape_cast %68 : vector<1x16x16x128xf32> to vector<256x128xf32>
    %70 = arith.truncf %69 : vector<256x128xf32> to vector<256x128xbf16>
    %c6 = arith.constant 6 : index
    %c0_53 = arith.constant 0 : index
    %c0_54 = arith.constant 0 : index
    %71 = vector.load %arg4[%c6, %c0_53, %c0_54] : memref<9x128x128xbf16, #tpu.memory_space<vmem>>, vector<1x128x128xbf16>
    %72 = vector.shape_cast %71 : vector<1x128x128xbf16> to vector<128x128xbf16>
    %cst_55 = arith.constant dense<0.000000e+00> : vector<256x128xf32>
    %73 = tpu.matmul %70, %72, %cst_55 {dimension_numbers = #tpu.dot_dimension_numbers<[1], [0], [0], [1], [0, 0, 1, 1], [], []>} : vector<256x128xbf16>, vector<128x128xbf16>, vector<256x128xf32> -> vector<256x128xf32>
    %74 = arith.addf %65, %73 : vector<256x128xf32>
    %75 = vector.shape_cast %66 : vector<1x16x16x128xf32> to vector<256x128xf32>
    %76 = arith.truncf %75 : vector<256x128xf32> to vector<256x128xbf16>
    %c7 = arith.constant 7 : index
    %c0_56 = arith.constant 0 : index
    %c0_57 = arith.constant 0 : index
    %77 = vector.load %arg4[%c7, %c0_56, %c0_57] : memref<9x128x128xbf16, #tpu.memory_space<vmem>>, vector<1x128x128xbf16>
    %78 = vector.shape_cast %77 : vector<1x128x128xbf16> to vector<128x128xbf16>
    %cst_58 = arith.constant dense<0.000000e+00> : vector<256x128xf32>
    %79 = tpu.matmul %76, %78, %cst_58 {dimension_numbers = #tpu.dot_dimension_numbers<[1], [0], [0], [1], [0, 0, 1, 1], [], []>} : vector<256x128xbf16>, vector<128x128xbf16>, vector<256x128xf32> -> vector<256x128xf32>
    %80 = arith.addf %74, %79 : vector<256x128xf32>
    %81 = vector.extract_strided_slice %66 {offsets = [0, 0, 1, 0], sizes = [1, 16, 15, 128], strides = [1, 1, 1, 1]} : vector<1x16x16x128xf32> to vector<1x16x15x128xf32>
    %82 = tpu.concatenate %81, %18 in 2 : vector<1x16x15x128xf32>, vector<1x16x1x128xf32> -> vector<1x16x16x128xf32>
    %83 = vector.shape_cast %82 : vector<1x16x16x128xf32> to vector<256x128xf32>
    %84 = arith.truncf %83 : vector<256x128xf32> to vector<256x128xbf16>
    %c8 = arith.constant 8 : index
    %c0_59 = arith.constant 0 : index
    %c0_60 = arith.constant 0 : index
    %85 = vector.load %arg4[%c8, %c0_59, %c0_60] : memref<9x128x128xbf16, #tpu.memory_space<vmem>>, vector<1x128x128xbf16>
    %86 = vector.shape_cast %85 : vector<1x128x128xbf16> to vector<128x128xbf16>
    %cst_61 = arith.constant dense<0.000000e+00> : vector<256x128xf32>
    %87 = tpu.matmul %84, %86, %cst_61 {dimension_numbers = #tpu.dot_dimension_numbers<[1], [0], [0], [1], [0, 0, 1, 1], [], []>} : vector<256x128xbf16>, vector<128x128xbf16>, vector<256x128xf32> -> vector<256x128xf32>
    %88 = arith.addf %80, %87 : vector<256x128xf32>
    %c0_62 = arith.constant 0 : index
    %c0_63 = arith.constant 0 : index
    %89 = vector.load %arg5[%c0_62, %c0_63] : memref<1x128xf32, #tpu.memory_space<vmem>>, vector<1x128xf32>
    %90 = vector.broadcast %89 : vector<1x128xf32> to vector<256x128xf32>
    %91 = arith.addf %88, %90 : vector<256x128xf32>
    %92 = arith.negf %91 : vector<256x128xf32>
    %93 = math.exp %92 : vector<256x128xf32>
    %cst_64 = arith.constant 1.000000e+00 : f32
    %94 = vector.broadcast %cst_64 : f32 to vector<256x128xf32>
    %95 = arith.addf %94, %93 : vector<256x128xf32>
    %96 = arith.divf %94, %95 : vector<256x128xf32>
    %97 = arith.mulf %91, %96 : vector<256x128xf32>
    %98 = arith.truncf %97 : vector<256x128xf32> to vector<256x128xbf16>
    %c0_65 = arith.constant 0 : index
    %c0_66 = arith.constant 0 : index
    %99 = vector.load %arg6[%c0_65, %c0_66] : memref<128x128xbf16, #tpu.memory_space<vmem>>, vector<128x128xbf16>
    %cst_67 = arith.constant dense<0.000000e+00> : vector<256x128xf32>
    %100 = tpu.matmul %98, %99, %cst_67 {dimension_numbers = #tpu.dot_dimension_numbers<[1], [0], [0], [1], [0, 0, 1, 1], [], []>} : vector<256x128xbf16>, vector<128x128xbf16>, vector<256x128xf32> -> vector<256x128xf32>
    %c0_68 = arith.constant 0 : index
    %c0_69 = arith.constant 0 : index
    %101 = vector.load %arg7[%c0_68, %c0_69] : memref<1x128xf32, #tpu.memory_space<vmem>>, vector<1x128xf32>
    %102 = vector.broadcast %101 : vector<1x128xf32> to vector<256x128xf32>
    %103 = arith.addf %100, %102 : vector<256x128xf32>
    %c0_70 = arith.constant 0 : index
    %c0_71 = arith.constant 0 : index
    %c0_72 = arith.constant 0 : index
    %c0_73 = arith.constant 0 : index
    %104 = vector.load %arg1[%c0_70, %c0_71, %c0_72, %c0_73] : memref<1x16x16x128xbf16, #tpu.memory_space<vmem>>, vector<1x16x16x128xbf16>
    %105 = vector.shape_cast %104 : vector<1x16x16x128xbf16> to vector<256x128xbf16>
    %106 = arith.extf %105 : vector<256x128xbf16> to vector<256x128xf32>
    %107 = arith.addf %103, %106 : vector<256x128xf32>
    %cst_74 = arith.constant 0.000000e+00 : f32
    %108 = vector.broadcast %cst_74 : f32 to vector<256x128xf32>
    %109 = arith.maximumf %107, %108 : vector<256x128xf32>
    %110 = vector.shape_cast %109 : vector<256x128xf32> to vector<1x16x16x128xf32>
    %111 = arith.truncf %110 : vector<1x16x16x128xf32> to vector<1x16x16x128xbf16>
    %c0_75 = arith.constant 0 : index
    %c0_76 = arith.constant 0 : index
    %c0_77 = arith.constant 0 : index
    %c0_78 = arith.constant 0 : index
    %112 = vector.load %arg8[%c0_75, %c0_76, %c0_77, %c0_78] : memref<1x16x16x128xbf16, #tpu.memory_space<vmem>>, vector<1x16x16x128xbf16>
    tpu.vector_store %arg8[%c0_75, %c0_76, %c0_77, %c0_78], %111 {strides = array<i32>} : memref<1x16x16x128xbf16, #tpu.memory_space<vmem>>, vector<1x16x16x128xbf16>,
    return
  }
  func.func @transform_0(%arg0: i32) -> (i32, i32, i32, i32) {
    %c0_i32 = arith.constant 0 : i32
    %c0_i32_0 = arith.constant 0 : i32
    %c0_i32_1 = arith.constant 0 : i32
    %c0_i32_2 = arith.constant 0 : i32
    return %arg0, %c0_i32, %c0_i32_0, %c0_i32_1 : i32, i32, i32, i32
  }
  func.func @transform_1(%arg0: i32) -> (i32, i32) {
    %c0_i32 = arith.constant 0 : i32
    %c0_i32_0 = arith.constant 0 : i32
    %c0_i32_1 = arith.constant 0 : i32
    return %c0_i32, %c0_i32_0 : i32, i32
  }
  func.func @transform_2(%arg0: i32) -> (i32, i32) {
    %c0_i32 = arith.constant 0 : i32
    %c0_i32_0 = arith.constant 0 : i32
    %c0_i32_1 = arith.constant 0 : i32
    return %c0_i32, %c0_i32_0 : i32, i32
  }
  func.func @transform_3(%arg0: i32) -> (i32, i32, i32) {
    %c0_i32 = arith.constant 0 : i32
    %c0_i32_0 = arith.constant 0 : i32
    %c0_i32_1 = arith.constant 0 : i32
    %c0_i32_2 = arith.constant 0 : i32
    return %c0_i32, %c0_i32_0, %c0_i32_1 : i32, i32, i32
  }
  func.func @transform_4(%arg0: i32) -> (i32, i32) {
    %c0_i32 = arith.constant 0 : i32
    %c0_i32_0 = arith.constant 0 : i32
    %c0_i32_1 = arith.constant 0 : i32
    return %c0_i32, %c0_i32_0 : i32, i32
  }
  func.func @transform_5(%arg0: i32) -> (i32, i32) {
    %c0_i32 = arith.constant 0 : i32
    %c0_i32_0 = arith.constant 0 : i32
    %c0_i32_1 = arith.constant 0 : i32
    return %c0_i32, %c0_i32_0 : i32, i32
  }
  func.func @transform_6(%arg0: i32) -> (i32, i32) {
    %c0_i32 = arith.constant 0 : i32
    %c0_i32_0 = arith.constant 0 : i32
    %c0_i32_1 = arith.constant 0 : i32
    return %c0_i32, %c0_i32_0 : i32, i32
  }
  func.func @transform_7(%arg0: i32) -> (i32, i32, i32, i32) {
    %c0_i32 = arith.constant 0 : i32
    %c0_i32_0 = arith.constant 0 : i32
    %c0_i32_1 = arith.constant 0 : i32
    %c0_i32_2 = arith.constant 0 : i32
    return %arg0, %c0_i32, %c0_i32_0, %c0_i32_1 : i32, i32, i32, i32
  }
}

</mosaic_0001>

<bundles_post_ra>
// kernel: resnet_layer_forward.3
= control target key start
LH: loop header
LB: loop body
LE: loop exit
PB: predicated region body
PF: predicated region fallthrough
CT: control target
= control target key end

     0   :  { %s7308_s24 = smov 0   ;;  %s8876_s0 = inlined_call_operand.vmem [shape: bf16[2,16,16,128], index: 0, kind: input, shape index: {}]   ;;  %s8877_s1 = inlined_call_operand.vmem [shape: bf16[128,128], index: 1, kind: input, shape index: {}]   ;;  %s8878_s2 = inlined_call_operand.vmem [shape: f32[1,128], index: 2, kind: input, shape index: {}]   ;;  %s8879_s3 = inlined_call_operand.vmem [shape: bf16[9,128,128], index: 3, kind: input, shape index: {}]   ;;  %s8880_s4 = inlined_call_operand.vmem [shape: f32[1,128], index: 4, kind: input, shape index: {}]   ;;  %s8881_s5 = inlined_call_operand.vmem [shape: bf16[128,128], index: 5, kind: input, shape index: {}]   ;;  %s8882_s6 = inlined_call_operand.vmem [shape: f32[1,128], index: 6, kind: input, shape index: {}]   ;;  %s8883_s7 = inlined_call_operand.vmem [shape: bf16[2,16,16,128], index: 7, kind: output, shape index: {}]  }
   0x1 LB: > { %s4928_s25 = sadd.s32 4294967295, %s7263_s24   ;;  %p4932_p0 = scmp.ge.s32.totalorder %s7263_s24, 1  ;;  %s7263_s24 = sphi %s7308_s24, %s17_s24  }
   0x2   : > { %p237_p1 = scmp.lt.s32.totalorder %s7263_s24, 3 }
   0x4   : > { %p238_p2 = pnand %p4932_p0, %p237_p1 }
   0x6   : > { %241 = sbr.rel (%p238_p2) target bundleno = 1163 (0x48b), region = 48 }
   0xd   : > { %v6889_v0 = vld [vmem:[%s8877_s1] sm:$0xff]   ;;  %p269_p3 = scmp.lt.s32.totalorder %s4928_s25, 1  ;;  %v6890_v1 = vld [vmem:[%s8877_s1 + $0x8] sm:$0xff]   ;;  %v6891_v2 = vld [vmem:[%s8877_s1 + $0x10] sm:$0xff]   ;;  %v8884_v32 = vmov 0.0|0.0   ;;  %vm966_vm0 = vcmask 1040384  }
   0xe   : > { %6078 = vmatprep.subr.bf16.mxu0 %v6889_v0  ;;  %v6892_v3 = vld [vmem:[%s8877_s1 + $0x18] sm:$0xff]   ;;  %v6893_v5 = vld [vmem:[%s8877_s1 + $0x20] sm:$0xff]   ;;  %v6894_v6 = vld [vmem:[%s8877_s1 + $0x28] sm:$0xff]   ;;  %vm1546_vm2 = vcmask 1046528   ;;  %vm7267_vm3 = vmmov 1  }
   0xf   : > { %s8996_s25 = smov (!%p269_p3, %s4928_s25), 1  ;;  %6079 = vmatpush3.bf16.msra.mxu0 %v6889_v0  ;;  %v6895_v7 = vld [vmem:[%s8877_s1 + $0x30] sm:$0xff]   ;;  %v6896_v8 = vld [vmem:[%s8877_s1 + $0x38] sm:$0xff]   ;;  %v6913_v24 = vld [vmem:[%s8879_s3 + $0x40] sm:$0xff]  }
  0x10   : > { %6080 = vmatprep.subr.bf16.mxu0 %v6890_v1  ;;  %s5606_s9 = sshll.u32 %s8996_s25, 7  ;;  %v6914_v25 = vld [vmem:[%s8879_s3 + $0x48] sm:$0xff]   ;;  %v6915_v26 = vld [vmem:[%s8879_s3 + $0x50] sm:$0xff]   ;;  %v6916_v27 = vld [vmem:[%s8879_s3 + $0x58] sm:$0xff]  }
  0x11   : > { %s7333_s12 = scalar_lea.vmem %s8876_s0, %s5606_s9  ;;  %v6917_v28 = vld [vmem:[%s8879_s3 + $0x60] sm:$0xff]   ;;  %v6918_v29 = vld [vmem:[%s8879_s3 + $0x68] sm:$0xff]   ;;  %v6919_v30 = vld [vmem:[%s8879_s3 + $0x70] sm:$0xff]   ;;  %s8815_s17 = scalar_lea.vmem %s8883_s7, %s5606_s9 }
  0x12   : > { %v6897_v4 = vld [vmem:[%s7333_s12] sm:$0xff]   ;;  %v6898_v9 = vld [vmem:[%s7333_s12 + $0x8] sm:$0xff]   ;;  %v6899_v10 = vld [vmem:[%s7333_s12 + $0x10] sm:$0xff]  }
  0x13   : > { %6081 = vmatpush3.bf16.msra.mxu0 %v6890_v1  ;;  %6094 = vmatprep.mubr.bf16.mxu0 %v6897_v4  ;;  %v6900_v11 = vld [vmem:[%s7333_s12 + $0x18] sm:$0xff]   ;;  %v6901_v12 = vld [vmem:[%s7333_s12 + $0x20] sm:$0xff]   ;;  %v6902_v13 = vld [vmem:[%s7333_s12 + $0x28] sm:$0xff]  }
  0x14   : > { %6082 = vmatprep.subr.bf16.mxu0 %v6891_v2  ;;  %v6903_v14 = vld [vmem:[%s7333_s12 + $0x30] sm:$0xff]   ;;  %v6904_v15 = vld [vmem:[%s7333_s12 + $0x38] sm:$0xff]   ;;  %v6905_v16 = vld [vmem:[%s7333_s12 + $0x40] sm:$0xff]  }
  0x15   : > { %v6906_v17 = vld [vmem:[%s7333_s12 + $0x48] sm:$0xff]   ;;  %v6907_v18 = vld [vmem:[%s7333_s12 + $0x50] sm:$0xff]   ;;  %v6908_v19 = vld [vmem:[%s7333_s12 + $0x58] sm:$0xff]  }
  0x16   : > { %v6909_v20 = vld [vmem:[%s7333_s12 + $0x60] sm:$0xff]   ;;  %v6910_v21 = vld [vmem:[%s7333_s12 + $0x68] sm:$0xff]   ;;  %v6911_v22 = vld [vmem:[%s7333_s12 + $0x70] sm:$0xff]  }
  0x17   : > { %6083 = vmatpush3.bf16.msra.mxu0 %v6891_v2  ;;  %v6912_v23 = vld [vmem:[%s7333_s12 + $0x78] sm:$0xff]   ;;  %v6921_v33 = vld [vmem:[%s8879_s3 + $0xc0] sm:$0xff]   ;;  %v6922_v34 = vld [vmem:[%s8879_s3 + $0xc8] sm:$0xff]  }
  0x18   : > { %6084 = vmatprep.subr.bf16.mxu0 %v6892_v3  ;;  %v6920_v31 = vld [vmem:[%s8879_s3 + $0x78] sm:$0xff]   ;;  %6606 = vmatprep.subr.bf16.mxu1 %v6921_v33  ;;  %v6923_v35 = vld [vmem:[%s8879_s3 + $0xd0] sm:$0xff]   ;;  %v6925_v37 = vld [vmem:[%s8879_s3 + $0xe0] sm:$0xff]  }
  0x19   : > { %6614 = vmatpush3.bf16.msra.mxu1 %v6921_v33  ;;  %v6924_v36 = vld [vmem:[%s8879_s3 + $0xd8] sm:$0xff]   ;;  %v6926_v38 = vld [vmem:[%s8879_s3 + $0xe8] sm:$0xff]   ;;  %v6927_v39 = vld [vmem:[%s8879_s3 + $0xf0] sm:$0xff]  }
  0x1a   : > { %6607 = vmatprep.subr.bf16.mxu1 %v6922_v34  ;;  %v6928_v40 = vld [vmem:[%s8879_s3 + $0xf8] sm:$0xff]   ;;  %v7418_v41 = vld [vmem:[%s8879_s3] sm:$0xff]   ;;  %vm7761_vm1 = vmneg %vm966_vm0 }
  0x1b   : > { %6085 = vmatpush3.bf16.msra.mxu0 %v6892_v3  ;;  %v7424_v42 = vld [vmem:[%s8879_s3 + $0x100] sm:$0xff]   ;;  %vm7798_vm4 = vmpackc.low %vm7267_vm3, %vm7761_vm1 }
  0x1c   : > { %6086 = vmatprep.subr.bf16.mxu0 %v6893_v5  ;;  %v7430_v43 = vld [vmem:[%s8878_s2] ss:$0 sm:$0xff]  ;;  %vm8206_vm5 = vmpackc.low %vm1546_vm2, %vm7267_vm3 }
  0x1d   : > { %6615 = vmatpush3.bf16.msra.mxu1 %v6922_v34 }
  0x1e   : > { %6608 = vmatprep.subr.bf16.mxu1 %v6923_v35 }
  0x1f   : > { %6087 = vmatpush3.bf16.msra.mxu0 %v6893_v5 }
  0x20   : > { %6088 = vmatprep.subr.bf16.mxu0 %v6894_v6 }
  0x21   : > { %6616 = vmatpush3.bf16.msra.mxu1 %v6923_v35 }
  0x22   : > { %6609 = vmatprep.subr.bf16.mxu1 %v6924_v36 }
  0x23   : > { %6089 = vmatpush3.bf16.msra.mxu0 %v6894_v6 }
  0x24   : > { %6090 = vmatprep.subr.bf16.mxu0 %v6895_v7 }
  0x25   : > { %6617 = vmatpush3.bf16.msra.mxu1 %v6924_v36 }
  0x26   : > { %6610 = vmatprep.subr.bf16.mxu1 %v6925_v37 }
  0x27   : > { %6091 = vmatpush3.bf16.msra.mxu0 %v6895_v7 }
  0x28   : > { %6092 = vmatprep.subr.bf16.mxu0 %v6896_v8 }
  0x29   : > { %6618 = vmatpush3.bf16.msra.mxu1 %v6925_v37  ;;  %v8885_v37 = vmov 0.0  }
  0x2a   : > { %6611 = vmatprep.subr.bf16.mxu1 %v6926_v38 }
  0x2b   : > { %6093 = vmatpush3.bf16.msra.mxu0 %v6896_v8 }
  0x2c   : > { %6126 = vmatprep.subr.bf16.mxu0 %v6913_v24 }
  0x2d   : > { %6619 = vmatpush3.bf16.msra.mxu1 %v6926_v38  ;;  %v967_v38 = vrot.slane %v8885_v37, 7 }
  0x2e   : > { %6095 = vmatmul.mubr.bf16.vlgmr.msra.gmra.mrb[0].mxu0 %v6898_v9  ;;  %6612 = vmatprep.subr.bf16.mxu1 %v6927_v39 }
  0x2f   : > { %6098 = vmatprep.mubr.bf16.mxu0 %v6899_v10  ;;  %6127 = vmatpush3.bf16.msra.mxu0 %v6913_v24 }
  0x30   : > { %6128 = vmatprep.subr.bf16.mxu0 %v6914_v25 }
  0x31   : > { %6620 = vmatpush3.bf16.msra.mxu1 %v6927_v39 }
  0x32   : > { %6613 = vmatprep.subr.bf16.mxu1 %v6928_v40 }
  0x33   : > { %6129 = vmatpush3.bf16.msra.mxu0 %v6914_v25 }
  0x34   : > { %6130 = vmatprep.subr.bf16.mxu0 %v6915_v26 }
  0x35   : > { %6621 = vmatpush3.bf16.msra.mxu1 %v6928_v40 }
  0x36   : > { %6099 = vmatmul.mubr.bf16.gmra.mrb[4].mxu0 %v6900_v11  ;;  %6318 = vmatprep.subr.bf16.mxu1 %v7424_v42 }
  0x37   : > { %6102 = vmatprep.mubr.bf16.mxu0 %v6901_v12  ;;  %6131 = vmatpush3.bf16.msra.mxu0 %v6915_v26 }
  0x38   : > { %6132 = vmatprep.subr.bf16.mxu0 %v6916_v27 }
  0x3b   : > { %6133 = vmatpush3.bf16.msra.mxu0 %v6916_v27 }
  0x3c   : > { %6134 = vmatprep.subr.bf16.mxu0 %v6917_v28 }
  0x3e   : > { %6103 = vmatmul.mubr.bf16.gmra.mrb[8].mxu0 %v6902_v13 }
  0x3f   : > { %6106 = vmatprep.mubr.bf16.mxu0 %v6903_v14  ;;  %6135 = vmatpush3.bf16.msra.mxu0 %v6917_v28 }
  0x40   : > { %6136 = vmatprep.subr.bf16.mxu0 %v6918_v29 }
  0x43   : > { %6137 = vmatpush3.bf16.msra.mxu0 %v6918_v29 }
  0x44   : > { %6138 = vmatprep.subr.bf16.mxu0 %v6919_v30 }
  0x46   : > { %6107 = vmatmul.mubr.bf16.gmra.mrb[12].mxu0 %v6904_v15 }
  0x47   : > { %6110 = vmatprep.mubr.bf16.mxu0 %v6905_v16  ;;  %6139 = vmatpush3.bf16.msra.mxu0 %v6919_v30 }
  0x48   : > { %6140 = vmatprep.subr.bf16.mxu0 %v6920_v31 }
  0x4b   : > { %6141 = vmatpush3.bf16.msra.mxu0 %v6920_v31 }
  0x4c   : > { %6174 = vmatprep.subr.bf16.mxu0 %v7418_v41 }
  0x4e   : > { %6111 = vmatmul.mubr.bf16.gmra.mrb[16].mxu0 %v6906_v17 }
  0x4f   : > { %6114 = vmatprep.mubr.bf16.mxu0 %v6907_v18 }
  0x56   : > { %6115 = vmatmul.mubr.bf16.gmra.mrb[20].mxu0 %v6908_v19 }
  0x57   : > { %6118 = vmatprep.mubr.bf16.mxu0 %v6909_v20 }
  0x5e   : > { %6119 = vmatmul.mubr.bf16.gmra.mrb[24].mxu0 %v6910_v21 }
  0x5f   : > { %6122 = vmatprep.mubr.bf16.mxu0 %v6911_v22 }
  0x66   : > { %6123 = vmatmul.mubr.bf16.gmra.mrb[28].mxu0 %v6912_v23 }
  0x67   : > { %6142 = vmatprep.mubr.bf16.mxu0 %v8884_v32  ;;  %v6939_v32 = vld [vmem:[%s8879_s3 + $0x28] sm:$0xff]  }
 0x101   : > { %v6096_v44 = vpop.f32.mrb[0].mxu0 }
 0x102   : > { %v7433_v45 = vadd.f32 %v6096_v44, %v7430_v43  ;;  %v513_v46 = vpop.f32.mrb[1].mxu0 }
 0x103   : > { %v7436_v47 = vadd.f32 %v7430_v43, %v513_v46  ;;  %v6097_v48 = vpop.f32.mrb[2].mxu0 }
 0x104   : > { %v4964_v49 = vmul.f32 -1.442695, %v7433_v45  ;;  %v7440_v50 = vadd.f32 %v6097_v48, %v7430_v43  ;;  %v516_v51 = vpop.f32.mrb[3].mxu0 }
 0x105   : > { %v4962_v52 = vmul.f32 -1.442695, %v7436_v47  ;;  %v7444_v53 = vadd.f32 %v7430_v43, %v516_v51 }
 0x106   : > { %6993 = vpow2.f32 %v4964_v49  ;;  %v4965_v54 = vmul.f32 -1.442695, %v7440_v50 }
 0x107   : > { %6995 = vpow2.f32 %v4962_v52  ;;  %v4963_v55 = vmul.f32 -1.442695, %v7444_v53 }
 0x108   : > { %6997 = vpow2.f32 %v4965_v54 }
 0x109   : > { %6999 = vpow2.f32 %v4963_v55  ;;  %v6100_v56 = vpop.f32.mrb[4].mxu0 }
 0x10a   : > { %v7449_v57 = vadd.f32 %v6100_v56, %v7430_v43  ;;  %v529_v58 = vpop.f32.mrb[5].mxu0 }
 0x10b   : > { %v7452_v59 = vadd.f32 %v7430_v43, %v529_v58  ;;  %v6101_v60 = vpop.f32.mrb[6].mxu0 }
 0x10c   : > { %v4968_v61 = vmul.f32 -1.442695, %v7449_v57  ;;  %v7456_v62 = vadd.f32 %v6101_v60, %v7430_v43  ;;  %v532_v63 = vpop.f32.mrb[7].mxu0 }
 0x10d   : > { %v4966_v0 = vmul.f32 -1.442695, %v7452_v59  ;;  %v7460_v1 = vadd.f32 %v7430_v43, %v532_v63 }
 0x10e   : > { %7001 = vpow2.f32 %v4968_v61  ;;  %v4969_v2 = vmul.f32 -1.442695, %v7456_v62 }
 0x10f   : > { %7003 = vpow2.f32 %v4966_v0  ;;  %v4967_v3 = vmul.f32 -1.442695, %v7460_v1  ;;  %v7506_v0 = vpack.c.bf16 %v967_v38, %v967_v38 }
 0x110   : > { %v6994_v4 = vpop.eup %6993  ;;  %7005 = vpow2.f32 %v4969_v2 }
 0x111   : > { %v6996_v5 = vpop.eup %6995  ;;  %v738_v6 = vadd.f32 1.0, %v6994_v4  ;;  %7007 = vpow2.f32 %v4967_v3  ;;  %v6104_v7 = vpop.f32.mrb[8].mxu0 }
 0x112   : > { %v6998_v8 = vpop.eup %6997  ;;  %v736_v9 = vadd.f32 1.0, %v6996_v5  ;;  %v7465_v10 = vadd.f32 %v6104_v7, %v7430_v43  ;;  %v545_v11 = vpop.f32.mrb[9].mxu0 }
 0x113   : > { %v7000_v12 = vpop.eup %6999  ;;  %7009 = vrcp.f32 %v738_v6  ;;  %v739_v13 = vadd.f32 1.0, %v6998_v8  ;;  %v7468_v14 = vadd.f32 %v7430_v43, %v545_v11  ;;  %v6105_v15 = vpop.f32.mrb[10].mxu0 }
 0x114   : > { %7011 = vrcp.f32 %v736_v9  ;;  %v737_v16 = vadd.f32 1.0, %v7000_v12  ;;  %v4972_v17 = vmul.f32 -1.442695, %v7465_v10  ;;  %v7472_v18 = vadd.f32 %v6105_v15, %v7430_v43  ;;  %v548_v19 = vpop.f32.mrb[11].mxu0 }
 0x115   : > { %7013 = vrcp.f32 %v739_v13  ;;  %v4970_v20 = vmul.f32 -1.442695, %v7468_v14  ;;  %v7476_v21 = vadd.f32 %v7430_v43, %v548_v19 }
 0x116   : > { %7015 = vrcp.f32 %v737_v16  ;;  %v4973_v22 = vmul.f32 -1.442695, %v7472_v18  ;;  %v6931_v16 = vld [vmem:[%s8879_s3 + $0x8] sm:$0xff]  }
 0x117   : > { %7017 = vpow2.f32 %v4972_v17  ;;  %v4971_v23 = vmul.f32 -1.442695, %v7476_v21 }
 0x118   : > { %v7002_v24 = vpop.eup %7001  ;;  %7019 = vpow2.f32 %v4970_v20 }
 0x119   : > { %v7004_v25 = vpop.eup %7003  ;;  %v742_v26 = vadd.f32 1.0, %v7002_v24  ;;  %7021 = vpow2.f32 %v4973_v22  ;;  %v6108_v27 = vpop.f32.mrb[12].mxu0 }
 0x11a   : > { %v7006_v28 = vpop.eup %7005  ;;  %v740_v29 = vadd.f32 1.0, %v7004_v25  ;;  %7023 = vpow2.f32 %v4971_v23  ;;  %v7481_v30 = vadd.f32 %v6108_v27, %v7430_v43  ;;  %v561_v31 = vpop.f32.mrb[13].mxu0 }
 0x11b   : > { %v7008_v33 = vpop.eup %7007  ;;  %7025 = vrcp.f32 %v742_v26  ;;  %v743_v34 = vadd.f32 1.0, %v7006_v28  ;;  %v7484_v35 = vadd.f32 %v7430_v43, %v561_v31  ;;  %v6109_v36 = vpop.f32.mrb[14].mxu0 }
 0x11c   : > { %7027 = vrcp.f32 %v740_v29  ;;  %v741_v39 = vadd.f32 1.0, %v7008_v33  ;;  %v4976_v40 = vmul.f32 -1.442695, %v7481_v30  ;;  %v7489_v44 = vadd.f32 %v6109_v36, %v7430_v43  ;;  %v564_v46 = vpop.f32.mrb[15].mxu0 }
 0x11d   : > { %v7010_v48 = vpop.eup %7009  ;;  %7029 = vrcp.f32 %v743_v34  ;;  %v4974_v49 = vmul.f32 -1.442695, %v7484_v35  ;;  %v7493_v51 = vadd.f32 %v7430_v43, %v564_v46 }
 0x11e   : > { %v7012_v52 = vpop.eup %7011  ;;  %v7496_v54 = vmul.f32 %v7010_v48, %v7433_v45  ;;  %7031 = vrcp.f32 %v741_v39  ;;  %v4977_v55 = vmul.f32 -1.442695, %v7489_v44 }
 0x11f   : > { %v7014_v56 = vpop.eup %7013  ;;  %v7500_v58 = vmul.f32 %v7012_v52, %v7436_v47  ;;  %7033 = vpow2.f32 %v4976_v40  ;;  %v4975_v60 = vmul.f32 -1.442695, %v7493_v51 }
 0x120   : > { %v7016_v61 = vpop.eup %7015  ;;  %v7504_v63 = vmul.f32 %v7014_v56, %v7440_v50  ;;  %7035 = vpow2.f32 %v4974_v49  ;;  %v973_v2 = vrot.slane %v7496_v54, 7 }
 0x121   : > { %v7018_v45 = vpop.eup %7017  ;;  %v7511_v4 = vmul.f32 %v7016_v61, %v7444_v53  ;;  %7037 = vpow2.f32 %v4977_v55  ;;  %v6112_v47 = vpop.f32.mrb[16].mxu0  ;;  %v970_v6 = vrot.slane %v7500_v58, 7 }
 0x122   : > { %v7020_v5 = vpop.eup %7019  ;;  %v746_v7 = vadd.f32 1.0, %v7018_v45  ;;  %7039 = vpow2.f32 %v4975_v60  ;;  %v577_v8 = vpop.f32.mrb[17].mxu0  ;;  %v974_v11 = vrot.slane %v7504_v63, 7  ;;  %v7525_v20 = vadd.f32 %v6112_v47, %v7430_v43 }
 0x123   : > { %v7022_v9 = vpop.eup %7021  ;;  %v971_v12 = vrot.slane %v7511_v4, 7  ;;  %v7519_v13 = vpack.c.bf16 %v7511_v4, %v7500_v58  ;;  %v744_v53 = vadd.f32 1.0, %v7020_v5  ;;  %v6113_v15 = vpop.f32.mrb[18].mxu0  ;;  %v7528_v22 = vadd.f32 %v7430_v43, %v577_v8 }
 0x124   : > { %v7024_v17 = vpop.eup %7023  ;;  %7041 = vrcp.f32 %v746_v7  ;;  %v747_v19 = vadd.f32 1.0, %v7022_v9  ;;  %v580_v23 = vpop.f32.mrb[19].mxu0  ;;  %v7532_v27 = vadd.f32 %v6113_v15, %v7430_v43  ;;  %v4980_v33 = vmul.f32 -1.442695, %v7525_v20 }
 0x125   : > { %v7026_v24 = vpop.eup %7025  ;;  %v972_v25 = vsel %vm966_vm0, %v970_v6, %v971_v12  ;;  %7043 = vrcp.f32 %v744_v53  ;;  %v745_v26 = vadd.f32 1.0, %v7024_v17  ;;  %6143 = vmatmul.mubr.bf16.vlgmr.msra.gmra.mrb[32].mxu0 %v7519_v13  ;;  %v4978_v38 = vmul.f32 -1.442695, %v7528_v22 }
 0x126   : > { %v7028_v28 = vpop.eup %7027  ;;  %v7535_v29 = vpack.c.bf16 %v972_v25, %v970_v6  ;;  %v7538_v31 = vmul.f32 %v7026_v24, %v7449_v57  ;;  %7045 = vrcp.f32 %v747_v19  ;;  %6175 = vmatpush3.bf16.msra.mxu0 %v7418_v41  ;;  %v4981_v39 = vmul.f32 -1.442695, %v7532_v27  ;;  %v6933_v57 = vld [vmem:[%s8879_s3 + $0x10] sm:$0xff]  }
 0x127   : > { %v7030_v34 = vpop.eup %7029  ;;  %v7543_v36 = vmul.f32 %v7028_v28, %v7452_v59  ;;  %7047 = vrcp.f32 %v745_v26  ;;  %6176 = vmatprep.subr.bf16.mxu0 %v6931_v16  ;;  %v7565_v9 = vadd.f32 %v7430_v43, %v580_v23 }
 0x128   : > { %v7032_v40 = vpop.eup %7031  ;;  %v7553_v41 = vmul.f32 %v7030_v34, %v7456_v62  ;;  %7049 = vpow2.f32 %v4980_v33 }
 0x129   : > { %v7034_v59 = vpop.eup %7033  ;;  %v976_v55 = vrot.slane %v7543_v36, 7  ;;  %7051 = vpow2.f32 %v4978_v38  ;;  %v6116_v56 = vpop.f32.mrb[20].mxu0  ;;  %v7560_v45 = vmul.f32 %v7032_v40, %v7460_v1  ;;  %v6935_v1 = vld [vmem:[%s8879_s3 + $0x18] sm:$0xff]   ;;  %v4979_v24 = vmul.f32 -1.442695, %v7565_v9 }
 0x12a   : > { %v7036_v60 = vpop.eup %7035  ;;  %v750_v47 = vadd.f32 1.0, %v7034_v59  ;;  %7053 = vpow2.f32 %v4981_v39  ;;  %v593_v62 = vpop.f32.mrb[21].mxu0  ;;  %6177 = vmatpush3.bf16.msra.mxu0 %v6931_v16  ;;  %v980_v6 = vrot.slane %v7553_v41, 7  ;;  %v7572_v16 = vpack.c.bf16 %v7504_v63, %v7496_v54 }
 0x12b   : > { %v7038_v5 = vpop.eup %7037  ;;  %v748_v8 = vadd.f32 1.0, %v7036_v60  ;;  %v6117_v12 = vpop.f32.mrb[22].mxu0  ;;  %6178 = vmatprep.subr.bf16.mxu0 %v6933_v57  ;;  %v7575_v17 = vadd.f32 %v6116_v56, %v7430_v43  ;;  %v7579_v25 = vadd.f32 %v7430_v43, %v593_v62  ;;  %v7595_v59 = vpack.c.bf16 %v7560_v45, %v7543_v36  ;;  %v6937_v56 = vld [vmem:[%s8879_s3 + $0x20] sm:$0xff]  }
 0x12c   : > { %v7040_v53 = vpop.eup %7039  ;;  %7055 = vrcp.f32 %v750_v47  ;;  %v751_v15 = vadd.f32 1.0, %v7038_v5  ;;  %v596_v19 = vpop.f32.mrb[23].mxu0  ;;  %6146 = vmatprep.mubr.bf16.mxu0 %v7572_v16  ;;  %v7584_v33 = vadd.f32 %v6117_v12, %v7430_v43  ;;  %v977_v5 = vrot.slane %v7560_v45, 7 }
 0x12d   : > { %7057 = vrcp.f32 %v748_v8  ;;  %v749_v23 = vadd.f32 1.0, %v7040_v53  ;;  %v4984_v28 = vmul.f32 -1.442695, %v7575_v17  ;;  %v7587_v34 = vadd.f32 %v7430_v43, %v596_v19  ;;  %6147 = vmatmul.mubr.bf16.gmra.mrb[36].mxu0 %v7595_v59 }
 0x12e   : > { %v7042_v26 = vpop.eup %7041  ;;  %7059 = vrcp.f32 %v751_v15  ;;  %6179 = vmatpush3.bf16.msra.mxu0 %v6933_v57  ;;  %v4982_v40 = vmul.f32 -1.442695, %v7579_v25 }
 0x12f   : > { %v7044_v38 = vpop.eup %7043  ;;  %v7590_v39 = vmul.f32 %v7042_v26, %v7465_v10  ;;  %7061 = vrcp.f32 %v749_v23  ;;  %6180 = vmatprep.subr.bf16.mxu0 %v6935_v1  ;;  %v4985_v10 = vmul.f32 -1.442695, %v7584_v33  ;;  %v4983_v57 = vmul.f32 -1.442695, %v7587_v34 }
 0x130   : > { %v7046_v60 = vpop.eup %7045  ;;  %v7601_v47 = vmul.f32 %v7044_v38, %v7468_v14  ;;  %7063 = vpow2.f32 %v4979_v24 }
 0x131   : > { %v7048_v62 = vpop.eup %7047  ;;  %v7608_v12 = vmul.f32 %v7046_v60, %v7472_v18  ;;  %7065 = vpow2.f32 %v4984_v28  ;;  %v6120_v53 = vpop.f32.mrb[24].mxu0 }
 0x132   : > { %v7050_v15 = vpop.eup %7049  ;;  %7067 = vpow2.f32 %v4982_v40  ;;  %v609_v24 = vpop.f32.mrb[25].mxu0  ;;  %6181 = vmatpush3.bf16.msra.mxu0 %v6935_v1  ;;  %v7616_v18 = vmul.f32 %v7048_v62, %v7476_v21  ;;  %v7625_v21 = vpack.c.bf16 %v7553_v41, %v7538_v31 }
 0x133   : > { %v7052_v26 = vpop.eup %7051  ;;  %v754_v28 = vadd.f32 1.0, %v7050_v15  ;;  %7069 = vpow2.f32 %v4985_v10  ;;  %v6121_v60 = vpop.f32.mrb[26].mxu0  ;;  %6182 = vmatprep.subr.bf16.mxu0 %v6937_v56  ;;  %v7628_v10 = vadd.f32 %v6120_v53, %v7430_v43  ;;  %v7631_v15 = vadd.f32 %v7430_v43, %v609_v24 }
 0x134   : > { %v7054_v37 = vpop.eup %7053  ;;  %v752_v1 = vadd.f32 1.0, %v7052_v26  ;;  %7071 = vpow2.f32 %v4983_v57  ;;  %v612_v52 = vpop.f32.mrb[27].mxu0  ;;  %v7634_v7 = vadd.f32 %v6121_v60, %v7430_v43  ;;  %6150 = vmatprep.mubr.bf16.mxu0 %v7625_v21  ;;  %v7646_v24 = vpack.c.bf16 %v7616_v18, %v7601_v47 }
 0x135   : > { %7073 = vrcp.f32 %v754_v28  ;;  %v755_v38 = vadd.f32 1.0, %v7054_v37  ;;  %v7637_v57 = vadd.f32 %v7430_v43, %v612_v52  ;;  %v4988_v53 = vmul.f32 -1.442695, %v7628_v10  ;;  %v6941_v52 = vld [vmem:[%s8879_s3 + $0x30] sm:$0xff]  }
 0x136   : > { %v7056_v62 = vpop.eup %7055  ;;  %7075 = vrcp.f32 %v752_v1  ;;  %6183 = vmatpush3.bf16.msra.mxu0 %v6937_v56 }
 0x137   : > { %v7058_v37 = vpop.eup %7057  ;;  %v7640_v26 = vmul.f32 %v7056_v62, %v7481_v30  ;;  %7077 = vrcp.f32 %v755_v38  ;;  %6184 = vmatprep.subr.bf16.mxu0 %v6939_v32  ;;  %v4986_v30 = vmul.f32 -1.442695, %v7631_v15  ;;  %v4989_v38 = vmul.f32 -1.442695, %v7634_v7  ;;  %6151 = vmatmul.mubr.bf16.gmra.mrb[40].mxu0 %v7646_v24 }
 0x138   : > { %v7060_v28 = vpop.eup %7059  ;;  %v7652_v56 = vmul.f32 %v7058_v37, %v7484_v35  ;;  %v4987_v60 = vmul.f32 -1.442695, %v7637_v57  ;;  %7079 = vpow2.f32 %v4988_v53  ;;  %v6943_v37 = vld [vmem:[%s8879_s3 + $0x38] sm:$0xff]  }
 0x139   : > { %v7062_v1 = vpop.eup %7061  ;;  %v7660_v61 = vmul.f32 %v7060_v28, %v7489_v44  ;;  %v6124_v8 = vpop.f32.mrb[28].mxu0  ;;  %7081 = vpow2.f32 %v4986_v30 }
 0x13a   : > { %v7064_v35 = vpop.eup %7063  ;;  %v625_v50 = vpop.f32.mrb[29].mxu0  ;;  %6185 = vmatpush3.bf16.msra.mxu0 %v6939_v32  ;;  %v7668_v44 = vmul.f32 %v7062_v1, %v7493_v51  ;;  %7083 = vpow2.f32 %v4989_v38  ;;  %v7677_v38 = vpack.c.bf16 %v7608_v12, %v7590_v39  ;;  %v7680_v1 = vadd.f32 %v6124_v8, %v7430_v43 }
 0x13b   : > { %v7066_v48 = vpop.eup %7065  ;;  %v753_v53 = vadd.f32 1.0, %v7064_v35  ;;  %v6125_v28 = vpop.f32.mrb[30].mxu0  ;;  %6186 = vmatprep.subr.bf16.mxu0 %v6941_v52  ;;  %7085 = vpow2.f32 %v4987_v60  ;;  %v7683_v46 = vadd.f32 %v7430_v43, %v625_v50  ;;  %v7696_v50 = vld [vmem:[%s8879_s3 + $0x80] sm:$0xff]  }
 0x13c   : > { %v7068_v3 = vpop.eup %7067  ;;  %v758_v32 = vadd.f32 1.0, %v7066_v48  ;;  %v628_v14 = vpop.f32.mrb[31].mxu0  ;;  %8909 = vst [vmem:[#allocation3_spill] sm:$0xff] %v7677_v38  ;;  %v7686_v48 = vadd.f32 %v6125_v28, %v7430_v43  ;;  %6154 = vmatprep.mubr.bf16.mxu0 %v7677_v38 }
 0x13d   : > { %v7070_v40 = vpop.eup %7069  ;;  %7087 = vrcp.f32 %v753_v53  ;;  %v756_v51 = vadd.f32 1.0, %v7068_v3  ;;  %v4992_v53 = vmul.f32 -1.442695, %v7680_v1  ;;  %v7691_v8 = vadd.f32 %v7430_v43, %v628_v14 }
 0x13e   : > { %v7072_v35 = vpop.eup %7071  ;;  %7089 = vrcp.f32 %v758_v32  ;;  %v759_v19 = vadd.f32 1.0, %v7070_v40  ;;  %6187 = vmatpush3.bf16.msra.mxu0 %v6941_v52  ;;  %v4990_v52 = vmul.f32 -1.442695, %v7683_v46  ;;  %v4993_v32 = vmul.f32 -1.442695, %v7686_v48 }
 0x13f   : > { %v7074_v60 = vpop.eup %7073  ;;  %7091 = vrcp.f32 %v756_v51  ;;  %v757_v3 = vadd.f32 1.0, %v7072_v35  ;;  %6188 = vmatprep.subr.bf16.mxu0 %v6943_v37  ;;  %v4991_v43 = vmul.f32 -1.442695, %v7691_v8  ;;  %v7709_v14 = vpack.c.bf16 %v7668_v44, %v7652_v56 }
 0x140   : > { %v7076_v40 = vpop.eup %7075  ;;  %v7699_v28 = vmul.f32 %v7074_v60, %v7525_v20  ;;  %7093 = vrcp.f32 %v759_v19 }
 0x141   : > { %v7078_v51 = vpop.eup %7077  ;;  %v7704_v35 = vmul.f32 %v7076_v40, %v7528_v22  ;;  %7095 = vrcp.f32 %v757_v3  ;;  %8910 = vst [vmem:[#allocation4_spill] sm:$0xff] %v7709_v14  ;;  %6155 = vmatmul.mubr.bf16.gmra.mrb[44].mxu0 %v7709_v14  ;;  %v7721_v40 = vpack.c.bf16 %v7660_v61, %v7640_v26  ;;  %v975_v3 = vsel %vm966_vm0, %v973_v2, %v974_v11 }
 0x142   : > { %v7714_v19 = vmul.f32 %v7078_v51, %v7532_v27  ;;  %7097 = vpow2.f32 %v4992_v53  ;;  %6189 = vmatpush3.bf16.msra.mxu0 %v6943_v37  ;;  %v7080_v60 = vpop.eup %7079  ;;  %v997_v22 = vrot.slane %v7699_v28, 7  ;;  %v978_v11 = vsel %vm966_vm0, %v976_v55, %v977_v5 }
 0x143   : > { %7099 = vpow2.f32 %v4990_v52  ;;  %8911 = vst [vmem:[#allocation5_spill] sm:$0xff] %v7721_v40  ;;  %6222 = vmatprep.subr.bf16.mxu0 %v7696_v50  ;;  %v7082_v20 = vpop.eup %7081  ;;  %v762_v37 = vadd.f32 1.0, %v7080_v60  ;;  %6158 = vmatprep.mubr.bf16.mxu0 %v7721_v40 }
 0x144   : > { %v998_v53 = vrot.slane %v7714_v19, 7  ;;  %7101 = vpow2.f32 %v4993_v32  ;;  %v7084_v51 = vpop.eup %7083  ;;  %v760_v30 = vadd.f32 1.0, %v7082_v20  ;;  %v7729_v52 = vpack.c.bf16 %v7714_v19, %v7699_v28 }
 0x145   : > { %7103 = vpow2.f32 %v4991_v43  ;;  %v7086_v27 = vpop.eup %7085  ;;  %v763_v23 = vadd.f32 1.0, %v7084_v51  ;;  %v7739_v43 = vpack.c.bf16 %v975_v3, %v973_v2  ;;  %v7753_v2 = vpack.c.bf16 %v978_v11, %v976_v55 }
 0x146   : > { %8912 = vst [vmem:[#allocation6_spill] sm:$0xff] %v7729_v52  ;;  %7105 = vrcp.f32 %v762_v37  ;;  %v999_v32 = vsel %vm966_vm0, %v997_v22, %v998_v53  ;;  %v761_v60 = vadd.f32 1.0, %v7086_v27  ;;  %v8919_v53 = vrot.slane %v7601_v47, 7 }
 0x147   : > { %v7088_v20 = vpop.eup %7087  ;;  %7107 = vrcp.f32 %v760_v30  ;;  %v7741_v62 = vpack.c.bf16 %v999_v32, %v997_v22  ;;  %v8914_v30 = vrot.slane %v7538_v31, 7 }
 0x148   : > { %v7090_v49 = vpop.eup %7089  ;;  %v7749_v37 = vmul.f32 %v7088_v20, %v7565_v9  ;;  %7109 = vrcp.f32 %v763_v23  ;;  %v8918_v23 = vrot.slane %v7616_v18, 7 }
 0x149   : > { %8913 = vst [vmem:[#allocation7_spill] sm:$0xff] %v7741_v62  ;;  %v981_v22 = vsel %vm966_vm0, %v8914_v30, %v980_v6  ;;  %v7092_v3 = vpop.eup %7091  ;;  %v7766_v9 = vmul.f32 %v7090_v49, %v7575_v17  ;;  %7111 = vrcp.f32 %v761_v60  ;;  %v8917_v5 = vmov %v8914_v30 }
 0x14a   : > { %v7770_v55 = vpack.c.bf16 %v981_v22, %v8917_v5  ;;  %v984_v6 = vsel %vm966_vm0, %v8919_v53, %v8918_v23  ;;  %v7094_v51 = vpop.eup %7093  ;;  %v995_v32 = vrot.slane %v7749_v37, 7  ;;  %v7779_v20 = vmul.f32 %v7092_v3, %v7579_v25 }
 0x14b   : > { %v7783_v49 = vpack.c.bf16 %v7749_v37, %v7704_v35  ;;  %v994_v17 = vrot.slane %v7704_v35, 7  ;;  %v7096_v60 = vpop.eup %7095  ;;  %v7789_v22 = vmul.f32 %v7094_v51, %v7584_v33  ;;  %v8921_v5 = vmov %v8919_v53 }
 0x14c   : > { %v7793_v23 = vpack.c.bf16 %v984_v6, %v8921_v5  ;;  %v7098_v25 = vpop.eup %7097  ;;  %v1003_v53 = vrot.slane %v7766_v9, 7  ;;  %v7805_v33 = vmul.f32 %v7096_v60, %v7587_v34  ;;  %v1000_v5 = vrot.slane %v7779_v20, 7 }
 0x14d   : > { %8920 = vst [vmem:[#allocation8_spill] sm:$0xff] %v7783_v49  ;;  %6159 = vmatmul.mubr.bf16.gmra.mrb[48].mxu0 %v7783_v49  ;;  %v996_v6 = vsel %vm966_vm0, %v994_v17, %v995_v32  ;;  %v7100_v51 = vpop.eup %7099  ;;  %v1004_v27 = vrot.slane %v7789_v22, 7  ;;  %v766_v30 = vadd.f32 1.0, %v7098_v25  ;;  %v6932_v32 = vld [vmem:[%s8879_s3 + $0x108] sm:$0xff]   ;;  %v8994_v3 = vmov 0.0|0.0  }
 0x14e   : > { %8922 = vst [vmem:[#allocation9_spill] sm:$0xff] %v7793_v23  ;;  %6162 = vmatprep.mubr.bf16.mxu0 %v7729_v52  ;;  %v7812_v40 = vpack.c.bf16 %v996_v6, %v994_v17  ;;  %v7102_v14 = vpop.eup %7101  ;;  %v1001_v34 = vrot.slane %v7805_v33, 7  ;;  %v764_v60 = vadd.f32 1.0, %v7100_v51  ;;  %v7821_v49 = vpack.c.bf16 %v7805_v33, %v7779_v20 }
 0x14f   : > { %v7104_v38 = vpop.eup %7103  ;;  %7113 = vrcp.f32 %v766_v30  ;;  %v767_v25 = vadd.f32 1.0, %v7102_v14  ;;  %v7828_v17 = vpack.c.bf16 %v7789_v22, %v7766_v9  ;;  %v1005_v6 = vsel %vm966_vm0, %v1003_v53, %v1004_v27 }
 0x150   : > { %8925 = vst [vmem:[#allocation10_spill] sm:$0xff] %v7812_v40  ;;  %8926 = vst [vmem:[#allocation11_spill] sm:$0xff] %v7821_v49  ;;  %6302 = vmatprep.mubr.msk.bf16.mxu1 %vm7798_vm4, %v7812_v40  ;;  %v7106_v51 = vpop.eup %7105  ;;  %7115 = vrcp.f32 %v764_v60  ;;  %v765_v11 = vadd.f32 1.0, %v7104_v38  ;;  %v1002_v30 = vsel %vm966_vm0, %v1000_v5, %v1001_v34  ;;  %v7835_v14 = vpack.c.bf16 %v1005_v6, %v1003_v53 }
 0x151   : > { %8927 = vst [vmem:[#allocation12_spill] sm:$0xff] %v7828_v17  ;;  %6303 = vmatmul.mubr.msk.bf16.vlgmr.msra.gmra.mrb[0].mxu1 %vm7798_vm4, %v7741_v62  ;;  %v7108_v52 = vpop.eup %7107  ;;  %v7838_v40 = vmul.f32 %v7106_v51, %v7628_v10  ;;  %7117 = vrcp.f32 %v767_v25  ;;  %v7841_v23 = vpack.c.bf16 %v1002_v30, %v1000_v5  ;;  %v8929_v27 = vrot.slane %v7608_v12, 7  ;;  %v6934_v10 = vld [vmem:[%s8879_s3 + $0x110] sm:$0xff]  }
 0x152   : > { %6319 = vmatpush3.bf16.msra.mxu1 %v7424_v42  ;;  %v8930_v38 = vrot.slane %v7590_v39, 7  ;;  %v7110_v62 = vpop.eup %7109  ;;  %v7849_v34 = vmul.f32 %v7108_v52, %v7631_v15  ;;  %7119 = vrcp.f32 %v765_v11  ;;  %v8932_v5 = vrot.slane %v7668_v44, 7 }
 0x153   : > { %8928 = vst [vmem:[#allocation13_spill] sm:$0xff] %v7841_v23  ;;  %6320 = vmatprep.subr.bf16.mxu1 %v6932_v32  ;;  %v8933_v25 = vrot.slane %v7652_v56, 7  ;;  %v7112_v51 = vpop.eup %7111  ;;  %v7866_v11 = vmul.f32 %v7110_v62, %v7634_v7  ;;  %6306 = vmatprep.mubr.msk.bf16.mxu1 %vm7798_vm4, %v7841_v23  ;;  %v8936_v7 = vrot.slane %v7660_v61, 7  ;;  %v8937_v62 = vrot.slane %v7640_v26, 7 }
 0x154   : > { %v987_v60 = vsel %vm966_vm0, %v8930_v38, %v8929_v27  ;;  %v8931_v42 = vmov %v8930_v38  ;;  %v1009_v38 = vrot.slane %v7838_v40, 7  ;;  %v8941_v52 = vrot.slane %v7500_v58, 1 }
 0x155   : > { %v7856_v53 = vpack.c.bf16 %v987_v60, %v8931_v42  ;;  %v990_v6 = vsel %vm966_vm0, %v8933_v25, %v8932_v5  ;;  %v8934_v30 = vmov %v8933_v25  ;;  %v7878_v42 = vmul.f32 %v7112_v51, %v7637_v57  ;;  %6163 = vmatmul.mubr.bf16.gmra.mrb[52].mxu0 %v7821_v49 }
 0x156   : > { %v7873_v27 = vpack.c.bf16 %v990_v6, %v8934_v30  ;;  %v993_v5 = vsel %vm966_vm0, %v8937_v62, %v8936_v7  ;;  %v1006_v25 = vrot.slane %v7849_v34, 7  ;;  %v1010_v6 = vrot.slane %v7866_v11, 7  ;;  %6321 = vmatpush3.bf16.msra.mxu1 %v6932_v32  ;;  %6166 = vmatprep.mubr.bf16.mxu0 %v7828_v17  ;;  %v6936_v7 = vld [vmem:[%s8879_s3 + $0x118] sm:$0xff]  }
 0x157   : > { %v7891_v30 = vpack.c.bf16 %v7866_v11, %v7838_v40  ;;  %v8938_v57 = vmov %v8937_v62  ;;  %v1007_v15 = vrot.slane %v7878_v42, 7  ;;  %6322 = vmatprep.subr.bf16.mxu1 %v6934_v10  ;;  %v7904_v32 = vpack.c.bf16 %v7878_v42, %v7849_v34 }
 0x158   : > { %8935 = vst [vmem:[#allocation14_spill] sm:$0xff] %v7873_v27  ;;  %v7895_v51 = vpack.c.bf16 %v993_v5, %v8938_v57  ;;  %v8940_v62 = vrot.slane %v7511_v4, 1  ;;  %v1590_v57 = vrot.slane %v7866_v11, 1  ;;  %v1011_v60 = vsel %vm966_vm0, %v1009_v38, %v1010_v6 }
 0x159   : > { %v8943_v49 = vrot.slane %v7504_v63, 1  ;;  %6307 = vmatmul.mubr.msk.bf16.gmra.mrb[4].mxu1 %vm7798_vm4, %v7835_v14  ;;  %v1008_v58 = vsel %vm966_vm0, %v1006_v25, %v1007_v15  ;;  %v8946_v4 = vrot.slane %v7560_v45, 1  ;;  %v8949_v63 = vrot.slane %v7553_v41, 1 }
 0x15a   : > { %8939 = vst [vmem:[#allocation15_spill] sm:$0xff] %v7895_v51  ;;  %v1552_v5 = vsel %vm1546_vm2, %v8941_v52, %v8940_v62  ;;  %v8942_v17 = vmov %v8940_v62  ;;  %v8944_v51 = vrot.slane %v7496_v54, 1  ;;  %v7926_v52 = vpack.c.bf16 %v1011_v60, %v1009_v38  ;;  %6323 = vmatpush3.bf16.msra.mxu1 %v6934_v10  ;;  %v6938_v10 = vld [vmem:[%s8879_s3 + $0x120] sm:$0xff]  }
 0x15b   : > { %v7915_v23 = vpack.c.bf16 %v8942_v17, %v1552_v5  ;;  %v8945_v6 = vmov %v8943_v49  ;;  %v8947_v17 = vrot.slane %v7543_v36, 1  ;;  %v7114_v5 = vpop.eup %7113  ;;  %v8948_v15 = vmov %v8946_v4  ;;  %6324 = vmatprep.subr.bf16.mxu1 %v6936_v7 }
 0x15c   : > { %v1555_v27 = vsel %vm1546_vm2, %v8944_v51, %v8943_v49  ;;  %v1587_v49 = vrot.slane %v7878_v42, 1  ;;  %v7938_v51 = vpack.c.bf16 %v1008_v58, %v1006_v25  ;;  %v862_v36 = vmul.f32 %v7114_v5, %v7680_v1 }
 0x15d   : > { %v7930_v62 = vpack.c.bf16 %v8945_v6, %v1555_v27  ;;  %v1558_v54 = vsel %vm1546_vm2, %v8947_v17, %v8946_v4  ;;  %v8950_v27 = vrot.slane %v7538_v31, 1  ;;  %v7116_v6 = vpop.eup %7115  ;;  %v8951_v42 = vmov %v8949_v63  ;;  %6167 = vmatmul.mubr.bf16.gmra.mrb[56].mxu0 %v7904_v32 }
 0x15e   : > { %v7942_v38 = vpack.c.bf16 %v8948_v15, %v1558_v54  ;;  %v8952_v45 = vrot.slane %v7616_v18, 1  ;;  %v8953_v58 = vrot.slane %v7601_v47, 1  ;;  %v8954_v4 = vrot.slane %v7608_v12, 1  ;;  %v7118_v54 = vpop.eup %7117  ;;  %6310 = vmatprep.mubr.msk.bf16.mxu1 %vm7798_vm4, %v7938_v51  ;;  %6325 = vmatpush3.bf16.msra.mxu1 %v6936_v7 }
 0x15f   : > { %v1561_v60 = vsel %vm1546_vm2, %v8950_v27, %v8949_v63  ;;  %v8955_v17 = vrot.slane %v7590_v39, 1  ;;  %v860_v5 = vmul.f32 %v7116_v6, %v7683_v46  ;;  %v8958_v27 = vrot.slane %v7668_v44, 1  ;;  %6170 = vmatprep.mubr.bf16.mxu0 %v7891_v30  ;;  %6326 = vmatprep.subr.bf16.mxu1 %v6938_v10  ;;  %v6940_v44 = vld [vmem:[%s8879_s3 + $0x128] sm:$0xff]  }
 0x160   : > { %v7955_v25 = vpack.c.bf16 %v8951_v42, %v1561_v60  ;;  %v1564_v31 = vsel %vm1546_vm2, %v8953_v58, %v8952_v45  ;;  %v8956_v41 = vmov %v8952_v45  ;;  %v8957_v47 = vmov %v8954_v4  ;;  %v7120_v42 = vpop.eup %7119 }
 0x161   : > { %v1567_v1 = vsel %vm1546_vm2, %v8955_v17, %v8954_v4  ;;  %v7973_v15 = vpack.c.bf16 %v8956_v41, %v1564_v31  ;;  %v8959_v39 = vrot.slane %v7652_v56, 1  ;;  %v2026_v46 = vrot.slane %v862_v36, 7  ;;  %6311 = vmatmul.mubr.msk.bf16.gmra.mrb[8].mxu1 %vm7798_vm4, %v7926_v52 }
 0x162   : > { %v7977_v63 = vpack.c.bf16 %v8957_v47, %v1567_v1  ;;  %v2670_v6 = vrot.slane %v862_v36, 1  ;;  %v863_v45 = vmul.f32 %v7118_v54, %v7686_v48  ;;  %v8960_v18 = vmov %v8958_v27  ;;  %6327 = vmatpush3.bf16.msra.mxu1 %v6938_v10 }
 0x163   : > { %v1570_v60 = vsel %vm1546_vm2, %v8959_v39, %v8958_v27  ;;  %v1012_v12 = vrot.slane %v860_v5, 7  ;;  %v1592_v31 = vrot.slane %v860_v5, 1  ;;  %v861_v4 = vmul.f32 %v7120_v42, %v7691_v8  ;;  %6328 = vmatprep.subr.bf16.mxu1 %v6940_v44 }
 0x164   : > { %v7988_v58 = vpack.c.bf16 %v8960_v18, %v1570_v60  ;;  %v8961_v56 = vrot.slane %v7660_v61, 1  ;;  %v8962_v17 = vrot.slane %v7640_v26, 1  ;;  %v2027_v48 = vrot.slane %v863_v45, 7 }
 0x165   : > { %v2671_v54 = vrot.slane %v863_v45, 1  ;;  %v8000_v41 = vpack.c.bf16 %v863_v45, %v862_v36  ;;  %v1013_v47 = vrot.slane %v861_v4, 7  ;;  %v1593_v27 = vrot.slane %v861_v4, 1 }
 0x166   : > { %v1573_v1 = vsel %vm1546_vm2, %v8962_v17, %v8961_v56  ;;  %v8963_v8 = vmov %v8961_v56  ;;  %v8006_v39 = vpack.c.bf16 %v861_v4, %v860_v5  ;;  %v8964_v26 = vrot.slane %v7749_v37, 1  ;;  %6329 = vmatpush3.bf16.msra.mxu1 %v6940_v44  ;;  %v6948_v44 = vld [vmem:[%s8879_s3 + $0x158] sm:$0xff]  }
 0x167   : > { %v8004_v7 = vpack.c.bf16 %v8963_v8, %v1573_v1  ;;  %v8965_v60 = vrot.slane %v7704_v35, 1  ;;  %v2028_v36 = vsel %vm966_vm0, %v2026_v46, %v2027_v48  ;;  %v8967_v18 = vrot.slane %v7714_v19, 1 }
 0x168   : > { %v8966_v61 = vmov %v8964_v26  ;;  %v8968_v5 = vrot.slane %v7699_v28, 1  ;;  %v8969_v35 = vrot.slane %v7805_v33, 1  ;;  %v8970_v56 = vrot.slane %v7779_v20, 1  ;;  %v6942_v20 = vld [vmem:[%s8879_s3 + $0x130] sm:$0xff]   ;;  %6171 = vmatmul.mubr.bf16.gmra.mrb[60].mxu0 %v8006_v39 }
 0x169   : > { %v1576_v42 = vsel %vm1546_vm2, %v8965_v60, %v8964_v26  ;;  %v1014_v1 = vsel %vm966_vm0, %v1012_v12, %v1013_v47  ;;  %v8032_v48 = vpack.c.bf16 %v2028_v36, %v2026_v46  ;;  %v8971_v37 = vmov %v8967_v18  ;;  %6190 = vmatprep.mubr.msk.bf16.mxu0 %vm7798_vm4, %v7506_v0 }
 0x16a   : > { %v8019_v45 = vpack.c.bf16 %v8966_v61, %v1576_v42  ;;  %v1579_v4 = vsel %vm1546_vm2, %v8968_v5, %v8967_v18  ;;  %v1582_v17 = vsel %vm1546_vm2, %v8970_v56, %v8969_v35  ;;  %v8972_v26 = vmov %v8969_v35  ;;  %6330 = vmatprep.subr.bf16.mxu1 %v6942_v20  ;;  %v6950_v5 = vld [vmem:[%s8879_s3 + $0x160] sm:$0xff]   ;;  %v8978_v35 = vld [vmem:[#allocation9_spill] sm:$0xff]  ;;  %v6953_v56 = vld [vmem:[%s8879_s3 + $0x168] sm:$0xff]  }
 0x16b   : > { %v8036_v8 = vpack.c.bf16 %v8971_v37, %v1579_v4  ;;  %v8040_v28 = vpack.c.bf16 %v8972_v26, %v1582_v17  ;;  %v8042_v60 = vpack.c.bf16 %v1014_v1, %v1012_v12  ;;  %v8973_v10 = vrot.slane %v7789_v22, 1  ;;  %6331 = vmatpush3.bf16.msra.mxu1 %v6942_v20  ;;  %v6957_v4 = vld [vmem:[%s8879_s3 + $0xa8] sm:$0xff]   ;;  %v6958_v17 = vld [vmem:[%s8879_s3 + $0xb0] sm:$0xff]   ;;  %v8979_v1 = vld [vmem:[#allocation3_spill] sm:$0xff] }
 0x16c   : > { %v8974_v46 = vrot.slane %v7766_v9, 1  ;;  %v8975_v19 = vrot.slane %v7849_v34, 1  ;;  %v8976_v33 = vrot.slane %v7838_v40, 1  ;;  %v1594_v34 = vsel %vm1546_vm2, %v1592_v31, %v1593_v27  ;;  %v6952_v31 = vld [vmem:[%s8879_s3 + $0x90] sm:$0xff]   ;;  %v8980_v37 = vld [vmem:[#allocation4_spill] sm:$0xff]  ;;  %v6960_v20 = vld [vmem:[%s8879_s3 + $0xb8] sm:$0xff]  }
 0x16d   : > { %v8977_v36 = vmov %v8973_v10  ;;  %6314 = vmatprep.mubr.msk.bf16.mxu1 %vm7798_vm4, %v8042_v60  ;;  %v8075_v40 = vpack.c.bf16 %v1593_v27, %v1594_v34  ;;  %v2672_v22 = vsel %vm1546_vm2, %v2670_v6, %v2671_v54  ;;  %v6951_v6 = vld [vmem:[%s8879_s3 + $0x88] sm:$0xff]   ;;  %v6955_v27 = vld [vmem:[%s8879_s3 + $0xa0] sm:$0xff]   ;;  %v6956_v26 = vld [vmem:[%s8879_s3 + $0x170] sm:$0xff]  }
 0x16e   : > { %v1585_v47 = vsel %vm1546_vm2, %v8974_v46, %v8973_v10  ;;  %v1588_v42 = vsel %vm1546_vm2, %v8975_v19, %v1587_v49  ;;  %v1591_v12 = vsel %vm1546_vm2, %v8976_v33, %v1590_v57  ;;  %v8081_v11 = vpack.c.bf16 %v2671_v54, %v2672_v22  ;;  %6315 = vmatmul.mubr.msk.bf16.gmra.mrb[12].mxu1 %vm7798_vm4, %v8032_v48  ;;  %v6947_v54 = vld [vmem:[%s8879_s3 + $0x150] sm:$0xff]   ;;  %v8981_v10 = vld [vmem:[#allocation14_spill] sm:$0xff]  ;;  %v8982_v46 = vld [vmem:[#allocation15_spill] sm:$0xff] }
 0x16f   : > { %v8062_v61 = vpack.c.bf16 %v8977_v36, %v1585_v47  ;;  %v8064_v18 = vpack.c.bf16 %v1587_v49, %v1588_v42  ;;  %v8068_v9 = vpack.c.bf16 %v1590_v57, %v1591_v12  ;;  %v6944_v57 = vld [vmem:[%s8879_s3 + $0x138] sm:$0xff]   ;;  %6334 = vmatprep.mubr.bf16.mxu1 %v7519_v13  ;;  %v6945_v49 = vld [vmem:[%s8879_s3 + $0x140] sm:$0xff]   ;;  %v6946_v13 = vld [vmem:[%s8879_s3 + $0x148] sm:$0xff]  }
 0x170   : > { %6332 = vmatprep.subr.bf16.mxu1 %v6944_v57  ;;  %6191 = vmatmul.mubr.msk.bf16.vlgmr.msra.gmra.mrb[32].mxu0 %vm7798_vm4, %v7535_v29  ;;  %v6959_v47 = vld [vmem:[%s8879_s3 + $0x178] sm:$0xff]   ;;  %v8983_v19 = vld [vmem:[#allocation5_spill] sm:$0xff]  ;;  %v8984_v42 = vld [vmem:[#allocation8_spill] sm:$0xff] }
 0x171   : > { %6333 = vmatpush3.bf16.msra.mxu1 %v6944_v57  ;;  %6194 = vmatprep.mubr.msk.bf16.mxu0 %vm7798_vm4, %v7739_v43  ;;  %v6961_v33 = vld [vmem:[%s8879_s3 + $0x180] sm:$0xff]   ;;  %v8985_v36 = vld [vmem:[#allocation10_spill] sm:$0xff] }
 0x172   : > { %6366 = vmatprep.subr.bf16.mxu1 %v6945_v49  ;;  %6223 = vmatpush3.bf16.msra.mxu0 %v7696_v50  ;;  %v6954_v50 = vld [vmem:[%s8879_s3 + $0x98] sm:$0xff]   ;;  %v7249_v12 = vld [vmem:[%s8879_s3 + $0xc0] sm:$0xff]  }
 0x173   : > { %6224 = vmatprep.subr.bf16.mxu0 %v6951_v6  ;;  %v8986_v34 = vld [vmem:[#allocation7_spill] sm:$0xff]  ;;  %v8987_v22 = vld [vmem:[#allocation6_spill] sm:$0xff] }
 0x174   : > { %v8988_v57 = vld [vmem:[#allocation11_spill] sm:$0xff] }
 0x176   : > { %6335 = vmatmul.mubr.bf16.vlgmr.msra.gmra.mrb[16].mxu1 %v7572_v16  ;;  %6225 = vmatpush3.bf16.msra.mxu0 %v6951_v6  ;;  %v8990_v6 = vld [vmem:[#allocation12_spill] sm:$0xff] }
 0x177   : > { %6367 = vmatpush3.bf16.msra.mxu1 %v6945_v49  ;;  %6338 = vmatprep.mubr.bf16.mxu1 %v7595_v59  ;;  %v8989_v49 = vld [vmem:[#allocation13_spill] sm:$0xff] }
 0x178   : > { %6368 = vmatprep.subr.bf16.mxu1 %v6946_v13  ;;  %6226 = vmatprep.subr.bf16.mxu0 %v6952_v31 }
 0x179   : > { %6195 = vmatmul.mubr.msk.bf16.gmra.mrb[36].mxu0 %vm7798_vm4, %v7753_v2 }
 0x17a   : > { %6198 = vmatprep.mubr.msk.bf16.mxu0 %vm7798_vm4, %v7770_v55  ;;  %6227 = vmatpush3.bf16.msra.mxu0 %v6952_v31 }
 0x17b   : > { %6369 = vmatpush3.bf16.msra.mxu1 %v6946_v13  ;;  %6228 = vmatprep.subr.bf16.mxu0 %v6954_v50  ;;  %v8991_v13 = vmov 0.0  }
 0x17c   : > { %6370 = vmatprep.subr.bf16.mxu1 %v6947_v54  ;;  %v1547_v31 = vrot.slane %v8991_v13, 1  ;;  %v6968_v13 = vld [vmem:[%s8879_s3 + $0x1b8] sm:$0xff]  }
 0x17e   : > { %6339 = vmatmul.mubr.bf16.gmra.mrb[20].mxu1 %v7625_v21  ;;  %6229 = vmatpush3.bf16.msra.mxu0 %v6954_v50  ;;  %v6986_v50 = vld [vmem:[%s8881_s5 + $0x8] sm:$0xff]  }
 0x17f   : > { %6342 = vmatprep.mubr.bf16.mxu1 %v7646_v24  ;;  %6371 = vmatpush3.bf16.msra.mxu1 %v6947_v54  ;;  %v8199_v54 = vpack.c.bf16 %v1547_v31, %v1547_v31  ;;  %v7256_v31 = vld [vmem:[%s8879_s3 + $0xf8] sm:$0xff]  }
 0x180   : > { %6372 = vmatprep.subr.bf16.mxu1 %v6948_v44  ;;  %6230 = vmatprep.subr.bf16.mxu0 %v6955_v27 }
 0x181   : > { %6199 = vmatmul.mubr.msk.bf16.gmra.mrb[40].mxu0 %vm7798_vm4, %v8978_v35 }
 0x182   : > { %6202 = vmatprep.mubr.msk.bf16.mxu0 %vm7798_vm4, %v7856_v53  ;;  %6231 = vmatpush3.bf16.msra.mxu0 %v6955_v27  ;;  %v7250_v27 = vld [vmem:[%s8879_s3 + $0xc8] sm:$0xff]  }
 0x183   : > { %6373 = vmatpush3.bf16.msra.mxu1 %v6948_v44  ;;  %6232 = vmatprep.subr.bf16.mxu0 %v6957_v4  ;;  %v6962_v44 = vld [vmem:[%s8879_s3 + $0x188] sm:$0xff]  }
 0x184   : > { %6374 = vmatprep.subr.bf16.mxu1 %v6950_v5 }
 0x186   : > { %6343 = vmatmul.mubr.bf16.gmra.mrb[24].mxu1 %v8979_v1  ;;  %6233 = vmatpush3.bf16.msra.mxu0 %v6957_v4  ;;  %v6964_v4 = vld [vmem:[%s8879_s3 + $0x198] sm:$0xff]  }
 0x187   : > { %6346 = vmatprep.mubr.bf16.mxu1 %v8980_v37  ;;  %6375 = vmatpush3.bf16.msra.mxu1 %v6950_v5  ;;  %v7251_v5 = vld [vmem:[%s8879_s3 + $0xd0] sm:$0xff]  }
 0x188   : > { %6376 = vmatprep.subr.bf16.mxu1 %v6953_v56  ;;  %6234 = vmatprep.subr.bf16.mxu0 %v6958_v17 }
 0x189   : > { %6203 = vmatmul.mubr.msk.bf16.gmra.mrb[44].mxu0 %vm7798_vm4, %v8981_v10 }
 0x18a   : > { %6206 = vmatprep.mubr.msk.bf16.mxu0 %vm7798_vm4, %v8982_v46  ;;  %6235 = vmatpush3.bf16.msra.mxu0 %v6958_v17  ;;  %v6965_v17 = vld [vmem:[%s8879_s3 + $0x1a0] sm:$0xff]  }
 0x18b   : > { %6377 = vmatpush3.bf16.msra.mxu1 %v6953_v56  ;;  %6236 = vmatprep.subr.bf16.mxu0 %v6960_v20  ;;  %v7252_v56 = vld [vmem:[%s8879_s3 + $0xd8] sm:$0xff]  }
 0x18c   : > { %6378 = vmatprep.subr.bf16.mxu1 %v6956_v26 }
 0x18e   : > { %6347 = vmatmul.mubr.bf16.gmra.mrb[28].mxu1 %v8983_v19  ;;  %6237 = vmatpush3.bf16.msra.mxu0 %v6960_v20  ;;  %v6966_v20 = vld [vmem:[%s8879_s3 + $0x1a8] sm:$0xff]  }
 0x18f   : > { %6350 = vmatprep.mubr.bf16.mxu1 %v8984_v42  ;;  %6379 = vmatpush3.bf16.msra.mxu1 %v6956_v26  ;;  %v7253_v26 = vld [vmem:[%s8879_s3 + $0xe0] sm:$0xff]  }
 0x190   : > { %6380 = vmatprep.subr.bf16.mxu1 %v6959_v47  ;;  %6270 = vmatprep.subr.bf16.mxu0 %v7249_v12 }
 0x191   : > { %6207 = vmatmul.mubr.msk.bf16.gmra.mrb[48].mxu0 %vm7798_vm4, %v8985_v36 }
 0x192   : > { %6210 = vmatprep.mubr.msk.bf16.mxu0 %vm7798_vm4, %v8986_v34 }
 0x193   : > { %6381 = vmatpush3.bf16.msra.mxu1 %v6959_v47  ;;  %v7254_v47 = vld [vmem:[%s8879_s3 + $0xe8] sm:$0xff]  }
 0x194   : > { %6414 = vmatprep.subr.bf16.mxu1 %v6961_v33 }
 0x196   : > { %6351 = vmatmul.mubr.bf16.gmra.mrb[0].mxu1 %v8987_v22 }
 0x197   : > { %6354 = vmatprep.mubr.bf16.mxu1 %v8988_v57 }
 0x199   : > { %6211 = vmatmul.mubr.msk.bf16.gmra.mrb[52].mxu0 %vm7798_vm4, %v8989_v49 }
 0x19a   : > { %6214 = vmatprep.mubr.msk.bf16.mxu0 %vm7798_vm4, %v7835_v14 }
 0x19e   : > { %6355 = vmatmul.mubr.bf16.gmra.mrb[4].mxu1 %v8990_v6 }
 0x19f   : > { %6358 = vmatprep.mubr.bf16.mxu1 %v7904_v32 }
 0x1a1   : > { %6215 = vmatmul.mubr.msk.bf16.gmra.mrb[56].mxu0 %vm7798_vm4, %v7938_v51 }
 0x1a2   : > { %6218 = vmatprep.mubr.msk.bf16.mxu0 %vm7798_vm4, %v7926_v52 }
 0x1a6   : > { %6359 = vmatmul.mubr.bf16.gmra.mrb[8].mxu1 %v7891_v30 }
 0x1a7   : > { %6362 = vmatprep.mubr.bf16.mxu1 %v8006_v39 }
 0x1a9   : > { %6219 = vmatmul.mubr.msk.bf16.gmra.mrb[60].mxu0 %vm7798_vm4, %v8042_v60 }
 0x1aa   : > { %6238 = vmatprep.mubr.msk.bf16.mxu0 %vm8206_vm5, %v8199_v54 }
 0x1ae   : > { %6363 = vmatmul.mubr.bf16.gmra.mrb[12].mxu1 %v8000_v41 }
 0x1af   : > { %6382 = vmatprep.mubr.msk.bf16.mxu1 %vm8206_vm5, %v7915_v23 }
 0x1b1   : > { %6239 = vmatmul.mubr.msk.bf16.vlgmr.msra.gmra.mrb[32].mxu0 %vm8206_vm5, %v7915_v23  ;;  %v6963_v23 = vld [vmem:[%s8879_s3 + $0x190] sm:$0xff]  }
 0x1b2   : > { %6242 = vmatprep.mubr.msk.bf16.mxu0 %vm8206_vm5, %v7930_v62  ;;  %6271 = vmatpush3.bf16.msra.mxu0 %v7249_v12  ;;  %v7255_v12 = vld [vmem:[%s8879_s3 + $0xf0] sm:$0xff]  }
 0x1b3   : > { %6272 = vmatprep.subr.bf16.mxu0 %v7250_v27 }
 0x1b6   : > { %6383 = vmatmul.mubr.msk.bf16.vlgmr.msra.gmra.mrb[16].mxu1 %vm8206_vm5, %v7930_v62  ;;  %6273 = vmatpush3.bf16.msra.mxu0 %v7250_v27  ;;  %v6987_v27 = vld [vmem:[%s8881_s5 + $0x10] sm:$0xff]  }
 0x1b7   : > { %6415 = vmatpush3.bf16.msra.mxu1 %v6961_v33  ;;  %6386 = vmatprep.mubr.msk.bf16.mxu1 %vm8206_vm5, %v7942_v38  ;;  %v6967_v33 = vld [vmem:[%s8879_s3 + $0x1b0] sm:$0xff]  }
 0x1b8   : > { %6416 = vmatprep.subr.bf16.mxu1 %v6962_v44  ;;  %6274 = vmatprep.subr.bf16.mxu0 %v7251_v5 }
 0x1b9   : > { %6243 = vmatmul.mubr.msk.bf16.gmra.mrb[36].mxu0 %vm8206_vm5, %v7942_v38 }
 0x1ba   : > { %6246 = vmatprep.mubr.msk.bf16.mxu0 %vm8206_vm5, %v7955_v25  ;;  %6275 = vmatpush3.bf16.msra.mxu0 %v7251_v5  ;;  %v6989_v5 = vld [vmem:[%s8881_s5 + $0x20] sm:$0xff]  }
 0x1bb   : > { %6417 = vmatpush3.bf16.msra.mxu1 %v6962_v44  ;;  %6276 = vmatprep.subr.bf16.mxu0 %v7252_v56  ;;  %v6969_v44 = vld [vmem:[%s8879_s3 + $0x1c0] sm:$0xff]  }
 0x1bc   : > { %6418 = vmatprep.subr.bf16.mxu1 %v6963_v23 }
 0x1be   : > { %6387 = vmatmul.mubr.msk.bf16.gmra.mrb[20].mxu1 %vm8206_vm5, %v7955_v25  ;;  %6277 = vmatpush3.bf16.msra.mxu0 %v7252_v56  ;;  %v6991_v56 = vld [vmem:[%s8881_s5 + $0x30] sm:$0xff]  }
 0x1bf   : > { %6390 = vmatprep.mubr.msk.bf16.mxu1 %vm8206_vm5, %v7973_v15  ;;  %6419 = vmatpush3.bf16.msra.mxu1 %v6963_v23  ;;  %v6988_v23 = vld [vmem:[%s8881_s5 + $0x18] sm:$0xff]  }
 0x1c0   : > { %6420 = vmatprep.subr.bf16.mxu1 %v6964_v4  ;;  %6278 = vmatprep.subr.bf16.mxu0 %v7253_v26 }
 0x1c1   : > { %6247 = vmatmul.mubr.msk.bf16.gmra.mrb[40].mxu0 %vm8206_vm5, %v7973_v15 }
 0x1c2   : > { %6250 = vmatprep.mubr.msk.bf16.mxu0 %vm8206_vm5, %v7977_v63  ;;  %6279 = vmatpush3.bf16.msra.mxu0 %v7253_v26 }
 0x1c3   : > { %6421 = vmatpush3.bf16.msra.mxu1 %v6964_v4  ;;  %6280 = vmatprep.subr.bf16.mxu0 %v7254_v47  ;;  %v6990_v4 = vld [vmem:[%s8881_s5 + $0x28] sm:$0xff]  }
 0x1c4   : > { %6422 = vmatprep.subr.bf16.mxu1 %v6965_v17 }
 0x1c6   : > { %6391 = vmatmul.mubr.msk.bf16.gmra.mrb[24].mxu1 %vm8206_vm5, %v7977_v63  ;;  %6281 = vmatpush3.bf16.msra.mxu0 %v7254_v47 }
 0x1c7   : > { %6394 = vmatprep.mubr.msk.bf16.mxu1 %vm8206_vm5, %v7988_v58  ;;  %6423 = vmatpush3.bf16.msra.mxu1 %v6965_v17  ;;  %v6992_v17 = vld [vmem:[%s8881_s5 + $0x38] sm:$0xff]  }
 0x1c8   : > { %6424 = vmatprep.subr.bf16.mxu1 %v6966_v20  ;;  %6282 = vmatprep.subr.bf16.mxu0 %v7255_v12 }
 0x1c9   : > { %6251 = vmatmul.mubr.msk.bf16.gmra.mrb[44].mxu0 %vm8206_vm5, %v7988_v58 }
 0x1ca   : > { %6254 = vmatprep.mubr.msk.bf16.mxu0 %vm8206_vm5, %v8004_v7  ;;  %6283 = vmatpush3.bf16.msra.mxu0 %v7255_v12 }
 0x1cb   : > { %6425 = vmatpush3.bf16.msra.mxu1 %v6966_v20  ;;  %6284 = vmatprep.subr.bf16.mxu0 %v7256_v31  ;;  %v8610_v20 = vld [vmem:[%s8880_s4] ss:$0 sm:$0xff] }
 0x1cc   : > { %6426 = vmatprep.subr.bf16.mxu1 %v6967_v33 }
 0x1ce   : > { %6395 = vmatmul.mubr.msk.bf16.gmra.mrb[28].mxu1 %vm8206_vm5, %v8004_v7  ;;  %6285 = vmatpush3.bf16.msra.mxu0 %v7256_v31 }
 0x1cf   : > { %6398 = vmatprep.mubr.msk.bf16.mxu1 %vm8206_vm5, %v8019_v45  ;;  %6427 = vmatpush3.bf16.msra.mxu1 %v6967_v33 }
 0x1d0   : > { %6428 = vmatprep.subr.bf16.mxu1 %v6968_v13 }
 0x1d1   : > { %6255 = vmatmul.mubr.msk.bf16.gmra.mrb[48].mxu0 %vm8206_vm5, %v8019_v45 }
 0x1d2   : > { %6258 = vmatprep.mubr.msk.bf16.mxu0 %vm8206_vm5, %v8036_v8 }
 0x1d3   : > { %6429 = vmatpush3.bf16.msra.mxu1 %v6968_v13 }
 0x1d4   : > { %6462 = vmatprep.subr.bf16.mxu1 %v6969_v44 }
 0x1d6   : > { %6399 = vmatmul.mubr.msk.bf16.gmra.mrb[0].mxu1 %vm8206_vm5, %v8036_v8 }
 0x1d7   : > { %6402 = vmatprep.mubr.msk.bf16.mxu1 %vm8206_vm5, %v8040_v28 }
 0x1d9   : > { %6259 = vmatmul.mubr.msk.bf16.gmra.mrb[52].mxu0 %vm8206_vm5, %v8040_v28 }
 0x1da   : > { %6262 = vmatprep.mubr.msk.bf16.mxu0 %vm8206_vm5, %v8062_v61 }
 0x1de   : > { %6403 = vmatmul.mubr.msk.bf16.gmra.mrb[4].mxu1 %vm8206_vm5, %v8062_v61 }
 0x1df   : > { %6406 = vmatprep.mubr.msk.bf16.mxu1 %vm8206_vm5, %v8064_v18 }
 0x1e1   : > { %6263 = vmatmul.mubr.msk.bf16.gmra.mrb[56].mxu0 %vm8206_vm5, %v8064_v18 }
 0x1e2   : > { %6266 = vmatprep.mubr.msk.bf16.mxu0 %vm8206_vm5, %v8068_v9 }
 0x1e6   : > { %6407 = vmatmul.mubr.msk.bf16.gmra.mrb[8].mxu1 %vm8206_vm5, %v8068_v9 }
 0x1e7   : > { %6410 = vmatprep.mubr.msk.bf16.mxu1 %vm8206_vm5, %v8075_v40 }
 0x1e9   : > { %6267 = vmatmul.mubr.msk.bf16.gmra.mrb[60].mxu0 %vm8206_vm5, %v8075_v40 }
 0x1ea   : > { %6286 = vmatprep.mubr.msk.bf16.mxu0 %vm7798_vm4, %v7535_v29  ;;  %v6970_v29 = vld [vmem:[%s8879_s3 + $0x1c8] sm:$0xff]  }
 0x1ee   : > { %6411 = vmatmul.mubr.msk.bf16.gmra.mrb[12].mxu1 %vm8206_vm5, %v8081_v11 }
 0x1ef   : > { %6430 = vmatprep.mubr.msk.bf16.mxu1 %vm7798_vm4, %v7739_v43 }
 0x1f1   : > { %6287 = vmatmul.mubr.msk.bf16.vlgmr.msra.gmra.mrb[32].mxu0 %vm7798_vm4, %v7739_v43  ;;  %v6971_v43 = vld [vmem:[%s8879_s3 + $0x1d0] sm:$0xff]  }
 0x1f2   : > { %6290 = vmatprep.mubr.msk.bf16.mxu0 %vm7798_vm4, %v7753_v2 }
 0x1f6   : > { %6431 = vmatmul.mubr.msk.bf16.vlgmr.msra.gmra.mrb[16].mxu1 %vm7798_vm4, %v7753_v2  ;;  %v6972_v2 = vld [vmem:[%s8879_s3 + $0x1d8] sm:$0xff]  }
 0x1f7   : > { %6463 = vmatpush3.bf16.msra.mxu1 %v6969_v44  ;;  %6434 = vmatprep.mubr.msk.bf16.mxu1 %vm7798_vm4, %v7770_v55 }
 0x1f8   : > { %6464 = vmatprep.subr.bf16.mxu1 %v6970_v29 }
 0x1f9   : > { %6291 = vmatmul.mubr.msk.bf16.gmra.mrb[36].mxu0 %vm7798_vm4, %v7770_v55  ;;  %v6973_v55 = vld [vmem:[%s8879_s3 + $0x1e0] sm:$0xff]  }
 0x1fa   : > { %6294 = vmatprep.mubr.msk.bf16.mxu0 %vm7798_vm4, %v8978_v35 }
 0x1fb   : > { %6465 = vmatpush3.bf16.msra.mxu1 %v6970_v29 }
 0x1fc   : > { %6466 = vmatprep.subr.bf16.mxu1 %v6971_v43 }
 0x1fe   : > { %6435 = vmatmul.mubr.msk.bf16.gmra.mrb[20].mxu1 %vm7798_vm4, %v8978_v35  ;;  %v6974_v35 = vld [vmem:[%s8879_s3 + $0x1e8] sm:$0xff]  }
 0x1ff   : > { %6438 = vmatprep.mubr.msk.bf16.mxu1 %vm7798_vm4, %v7856_v53  ;;  %6467 = vmatpush3.bf16.msra.mxu1 %v6971_v43 }
 0x200   : > { %6468 = vmatprep.subr.bf16.mxu1 %v6972_v2 }
 0x201   : > { %6295 = vmatmul.mubr.msk.bf16.gmra.mrb[40].mxu0 %vm7798_vm4, %v7856_v53  ;;  %v6975_v53 = vld [vmem:[%s8879_s3 + $0x1f0] sm:$0xff]  }
 0x202   : > { %6298 = vmatprep.mubr.msk.bf16.mxu0 %vm7798_vm4, %v8981_v10 }
 0x203   : > { %6469 = vmatpush3.bf16.msra.mxu1 %v6972_v2 }
 0x204   : > { %6470 = vmatprep.subr.bf16.mxu1 %v6973_v55 }
 0x206   : > { %6439 = vmatmul.mubr.msk.bf16.gmra.mrb[24].mxu1 %vm7798_vm4, %v8981_v10  ;;  %v6976_v10 = vld [vmem:[%s8879_s3 + $0x1f8] sm:$0xff]  }
 0x207   : > { %6442 = vmatprep.mubr.msk.bf16.mxu1 %vm7798_vm4, %v8982_v46  ;;  %6471 = vmatpush3.bf16.msra.mxu1 %v6973_v55 }
 0x208   : > { %6472 = vmatprep.subr.bf16.mxu1 %v6974_v35 }
 0x209   : > { %6299 = vmatmul.mubr.msk.bf16.gmra.mrb[44].mxu0 %vm7798_vm4, %v8982_v46  ;;  %v6977_v46 = vld [vmem:[%s8879_s3 + $0x200] sm:$0xff]  }
 0x20b   : > { %6473 = vmatpush3.bf16.msra.mxu1 %v6974_v35 }
 0x20c   : > { %6474 = vmatprep.subr.bf16.mxu1 %v6975_v53 }
 0x20e   : > { %6443 = vmatmul.mubr.msk.bf16.gmra.mrb[28].mxu1 %vm7798_vm4, %v8985_v36 }
 0x20f   : > { %6446 = vmatprep.mubr.msk.bf16.mxu1 %vm7798_vm4, %v8986_v34  ;;  %6475 = vmatpush3.bf16.msra.mxu1 %v6975_v53 }
 0x210   : > { %6476 = vmatprep.subr.bf16.mxu1 %v6976_v10 }
 0x213   : > { %6477 = vmatpush3.bf16.msra.mxu1 %v6976_v10 }
 0x214   : > { %6510 = vmatprep.subr.bf16.mxu1 %v6977_v46 }
 0x216   : > { %6447 = vmatmul.mubr.msk.bf16.gmra.mrb[0].mxu1 %vm7798_vm4, %v8989_v49 }
 0x217   : > { %6450 = vmatprep.mubr.msk.bf16.mxu1 %vm7798_vm4, %v7835_v14  ;;  %v6978_v14 = vld [vmem:[%s8879_s3 + $0x208] sm:$0xff]  }
 0x21e   : > { %6451 = vmatmul.mubr.msk.bf16.gmra.mrb[4].mxu1 %vm7798_vm4, %v7938_v51 }
 0x21f   : > { %6454 = vmatprep.mubr.msk.bf16.mxu1 %vm7798_vm4, %v7926_v52  ;;  %v6979_v52 = vld [vmem:[%s8879_s3 + $0x210] sm:$0xff]  }
 0x226   : > { %6455 = vmatmul.mubr.msk.bf16.gmra.mrb[8].mxu1 %vm7798_vm4, %v8042_v60 }
 0x227   : > { %6458 = vmatprep.mubr.msk.bf16.mxu1 %vm7798_vm4, %v8032_v48 }
 0x22e   : > { %6459 = vmatmul.mubr.msk.bf16.gmra.mrb[12].mxu1 %vm7798_vm4, %v7506_v0  ;;  %v6980_v0 = vld [vmem:[%s8879_s3 + $0x218] sm:$0xff]  }
 0x22f   : > { %6478 = vmatprep.mubr.bf16.mxu1 %v7572_v16  ;;  %v6981_v16 = vld [vmem:[%s8879_s3 + $0x220] sm:$0xff]  }
 0x236   : > { %6479 = vmatmul.mubr.bf16.vlgmr.msra.gmra.mrb[16].mxu1 %v7595_v59  ;;  %v6982_v59 = vld [vmem:[%s8879_s3 + $0x228] sm:$0xff]  }
 0x237   : > { %6511 = vmatpush3.bf16.msra.mxu1 %v6977_v46  ;;  %6482 = vmatprep.mubr.bf16.mxu1 %v7625_v21  ;;  %v6983_v21 = vld [vmem:[%s8879_s3 + $0x230] sm:$0xff]  }
 0x238   : > { %6512 = vmatprep.subr.bf16.mxu1 %v6978_v14 }
 0x23b   : > { %6513 = vmatpush3.bf16.msra.mxu1 %v6978_v14 }
 0x23c   : > { %6514 = vmatprep.subr.bf16.mxu1 %v6979_v52 }
 0x23e   : > { %6483 = vmatmul.mubr.bf16.gmra.mrb[20].mxu1 %v7646_v24  ;;  %v6984_v24 = vld [vmem:[%s8879_s3 + $0x238] sm:$0xff]  }
 0x23f   : > { %6486 = vmatprep.mubr.bf16.mxu1 %v8979_v1  ;;  %6515 = vmatpush3.bf16.msra.mxu1 %v6979_v52 }
 0x240   : > { %6516 = vmatprep.subr.bf16.mxu1 %v6980_v0 }
 0x243   : > { %6517 = vmatpush3.bf16.msra.mxu1 %v6980_v0 }
 0x244   : > { %6518 = vmatprep.subr.bf16.mxu1 %v6981_v16 }
 0x246   : > { %6487 = vmatmul.mubr.bf16.gmra.mrb[24].mxu1 %v8980_v37 }
 0x247   : > { %6490 = vmatprep.mubr.bf16.mxu1 %v8983_v19  ;;  %6519 = vmatpush3.bf16.msra.mxu1 %v6981_v16 }
 0x248   : > { %6520 = vmatprep.subr.bf16.mxu1 %v6982_v59 }
 0x24b   : > { %6521 = vmatpush3.bf16.msra.mxu1 %v6982_v59 }
 0x24c   : > { %6522 = vmatprep.subr.bf16.mxu1 %v6983_v21 }
 0x24e   : > { %6491 = vmatmul.mubr.bf16.gmra.mrb[28].mxu1 %v8984_v42 }
 0x24f   : > { %6494 = vmatprep.mubr.bf16.mxu1 %v8987_v22  ;;  %6523 = vmatpush3.bf16.msra.mxu1 %v6983_v21 }
 0x250   : > { %6524 = vmatprep.subr.bf16.mxu1 %v6984_v24 }
 0x253   : > { %6525 = vmatpush3.bf16.msra.mxu1 %v6984_v24 }
 0x256   : > { %6495 = vmatmul.mubr.bf16.gmra.mrb[0].mxu1 %v8988_v57 }
 0x257   : > { %6498 = vmatprep.mubr.bf16.mxu1 %v8990_v6 }
 0x25e   : > { %6499 = vmatmul.mubr.bf16.gmra.mrb[4].mxu1 %v7904_v32 }
 0x25f   : > { %6502 = vmatprep.mubr.bf16.mxu1 %v7891_v30 }
 0x266   : > { %6503 = vmatmul.mubr.bf16.gmra.mrb[8].mxu1 %v8006_v39 }
 0x267   : > { %6506 = vmatprep.mubr.bf16.mxu1 %v8000_v41 }
 0x26e   : > { %6507 = vmatmul.mubr.bf16.gmra.mrb[12].mxu1 %v8994_v3 }
 0x26f   : > { %6526 = vmatprep.mubr.msk.bf16.mxu1 %vm8206_vm5, %v7930_v62 }
 0x276   : > { %6527 = vmatmul.mubr.msk.bf16.vlgmr.msra.gmra.mrb[16].mxu1 %vm8206_vm5, %v7942_v38 }
 0x277   : > { %6530 = vmatprep.mubr.msk.bf16.mxu1 %vm8206_vm5, %v7955_v25 }
 0x27e   : > { %6531 = vmatmul.mubr.msk.bf16.gmra.mrb[20].mxu1 %vm8206_vm5, %v7973_v15 }
 0x27f   : > { %6534 = vmatprep.mubr.msk.bf16.mxu1 %vm8206_vm5, %v7977_v63 }
 0x286   : > { %6535 = vmatmul.mubr.msk.bf16.gmra.mrb[24].mxu1 %vm8206_vm5, %v7988_v58 }
 0x287   : > { %6538 = vmatprep.mubr.msk.bf16.mxu1 %vm8206_vm5, %v8004_v7 }
 0x28e   : > { %6539 = vmatmul.mubr.msk.bf16.gmra.mrb[28].mxu1 %vm8206_vm5, %v8019_v45 }
 0x28f   : > { %6542 = vmatprep.mubr.msk.bf16.mxu1 %vm8206_vm5, %v8036_v8 }
 0x296   : > { %6543 = vmatmul.mubr.msk.bf16.gmra.mrb[0].mxu1 %vm8206_vm5, %v8040_v28 }
 0x297   : > { %6546 = vmatprep.mubr.msk.bf16.mxu1 %vm8206_vm5, %v8062_v61 }
 0x29e   : > { %6547 = vmatmul.mubr.msk.bf16.gmra.mrb[4].mxu1 %vm8206_vm5, %v8064_v18 }
 0x29f   : > { %6550 = vmatprep.mubr.msk.bf16.mxu1 %vm8206_vm5, %v8068_v9 }
 0x2a4   : > { %v8524_v30 = vpop.f32.mrb[48].mxu0 }
 0x2a5   : > { %v8526_v32 = vpop.f32.mrb[49].mxu0 }
 0x2a6   : > { %6551 = vmatmul.mubr.msk.bf16.gmra.mrb[8].mxu1 %vm8206_vm5, %v8075_v40  ;;  %v8531_v62 = vpop.f32.mrb[50].mxu0 }
 0x2a7   : > { %6554 = vmatprep.mubr.msk.bf16.mxu1 %vm8206_vm5, %v8081_v11  ;;  %v8536_v51 = vpop.f32.mrb[51].mxu0 }
 0x2ac   : > { %v8538_v38 = vpop.f32.mrb[52].mxu0 }
 0x2ad   : > { %v8540_v25 = vpop.f32.mrb[53].mxu0 }
 0x2ae   : > { %6555 = vmatmul.mubr.msk.bf16.gmra.mrb[12].mxu1 %vm8206_vm5, %v8199_v54  ;;  %v8545_v15 = vpop.f32.mrb[54].mxu0  ;;  %v6985_v54 = vld [vmem:[%s8881_s5] sm:$0xff]  }
 0x2af   : > { %v8547_v63 = vpop.f32.mrb[55].mxu0  ;;  %6558 = vmatprep.subr.bf16.mxu0 %v6985_v54 }
 0x2b0   : > { %6559 = vmatpush3.bf16.msra.mxu0 %v6985_v54 }
 0x2b1   : > { %6560 = vmatprep.subr.bf16.mxu0 %v6986_v50 }
 0x2b4   : > { %v8549_v58 = vpop.f32.mrb[56].mxu0  ;;  %6561 = vmatpush3.bf16.msra.mxu0 %v6986_v50 }
 0x2b5   : > { %v8551_v41 = vpop.f32.mrb[57].mxu0  ;;  %6562 = vmatprep.subr.bf16.mxu0 %v6987_v27 }
 0x2b6   : > { %v8553_v7 = vpop.f32.mrb[58].mxu0 }
 0x2b7   : > { %v8555_v39 = vpop.f32.mrb[59].mxu0 }
 0x2b8   : > { %6563 = vmatpush3.bf16.msra.mxu0 %v6987_v27 }
 0x2b9   : > { %6564 = vmatprep.subr.bf16.mxu0 %v6988_v23 }
 0x2bc   : > { %v8557_v45 = vpop.f32.mrb[60].mxu0  ;;  %6565 = vmatpush3.bf16.msra.mxu0 %v6988_v23 }
 0x2bd   : > { %v8559_v48 = vpop.f32.mrb[61].mxu0  ;;  %6566 = vmatprep.subr.bf16.mxu0 %v6989_v5 }
 0x2be   : > { %v8561_v8 = vpop.f32.mrb[62].mxu0 }
 0x2bf   : > { %v8563_v28 = vpop.f32.mrb[63].mxu0 }
 0x2c0   : > { %6567 = vmatpush3.bf16.msra.mxu0 %v6989_v5 }
 0x2c1   : > { %6568 = vmatprep.subr.bf16.mxu0 %v6990_v4 }
 0x2c4   : > { %v6288_v60 = vpop.f32.mrb[32].mxu0  ;;  %6569 = vmatpush3.bf16.msra.mxu0 %v6990_v4 }
 0x2c5   : > { %v2192_v61 = vpop.f32.mrb[33].mxu0  ;;  %6570 = vmatprep.subr.bf16.mxu0 %v6991_v56 }
 0x2c6   : > { %v6289_v18 = vpop.f32.mrb[34].mxu0 }
 0x2c7   : > { %v2195_v9 = vpop.f32.mrb[35].mxu0 }
 0x2c8   : > { %6571 = vmatpush3.bf16.msra.mxu0 %v6991_v56 }
 0x2c9   : > { %6572 = vmatprep.subr.bf16.mxu0 %v6992_v17 }
 0x2cc   : > { %v6292_v40 = vpop.f32.mrb[36].mxu0  ;;  %6573 = vmatpush3.bf16.msra.mxu0 %v6992_v17 }
 0x2cd   : > { %v2208_v11 = vpop.f32.mrb[37].mxu0 }
 0x2ce   : > { %v6293_v1 = vpop.f32.mrb[38].mxu0 }
 0x2cf   : > { %v8565_v37 = vpop.f32.mrb[39].mxu0 }
 0x2d4   : > { %v8567_v19 = vpop.f32.mrb[40].mxu0 }
 0x2d5   : > { %v8569_v42 = vpop.f32.mrb[41].mxu0 }
 0x2d6   : > { %v8571_v36 = vpop.f32.mrb[42].mxu0 }
 0x2d7   : > { %v8573_v34 = vpop.f32.mrb[43].mxu0 }
 0x2dc   : > { %v8575_v22 = vpop.f32.mrb[44].mxu0 }
 0x2dd   : > { %v8577_v57 = vpop.f32.mrb[45].mxu0 }
 0x2de   : > { %v8579_v49 = vpop.f32.mrb[46].mxu0 }
 0x2df   : > { %v8581_v6 = vpop.f32.mrb[47].mxu0 }
 0x349   : > { %v6528_v26 = vpop.f32.mrb[16].mxu1 }
 0x34a   : > { %v6622_v47 = vadd.f32 %v6528_v26, %v6288_v60  ;;  %v3915_v33 = vpop.f32.mrb[17].mxu1 }
 0x34b   : > { %v6623_v12 = vadd.f32 %v3915_v33, %v2192_v61  ;;  %v6529_v13 = vpop.f32.mrb[18].mxu1 }
 0x34c   : > { %v8613_v31 = vadd.f32 %v6622_v47, %v8610_v20  ;;  %v6624_v44 = vadd.f32 %v6529_v13, %v6289_v18  ;;  %v3918_v29 = vpop.f32.mrb[19].mxu1 }
 0x34d   : > { %v8616_v43 = vadd.f32 %v6623_v12, %v8610_v20  ;;  %v6625_v2 = vadd.f32 %v3918_v29, %v2195_v9 }
 0x34e   : > { %v5533_v55 = vmul.f32 -1.442695, %v8613_v31  ;;  %v8620_v35 = vadd.f32 %v6624_v44, %v8610_v20 }
 0x34f   : > { %v5531_v53 = vmul.f32 -1.442695, %v8616_v43  ;;  %v8624_v10 = vadd.f32 %v6625_v2, %v8610_v20 }
 0x350   : > { %7121 = vpow2.f32 %v5533_v55  ;;  %v5534_v46 = vmul.f32 -1.442695, %v8620_v35 }
 0x351   : > { %7123 = vpow2.f32 %v5531_v53  ;;  %v5532_v14 = vmul.f32 -1.442695, %v8624_v10  ;;  %v6532_v52 = vpop.f32.mrb[20].mxu1 }
 0x352   : > { %7125 = vpow2.f32 %v5534_v46  ;;  %v6626_v0 = vadd.f32 %v6532_v52, %v6292_v40  ;;  %v3931_v16 = vpop.f32.mrb[21].mxu1 }
 0x353   : > { %7127 = vpow2.f32 %v5532_v14  ;;  %v6627_v59 = vadd.f32 %v3931_v16, %v2208_v11  ;;  %v6533_v21 = vpop.f32.mrb[22].mxu1 }
 0x354   : > { %v8629_v24 = vadd.f32 %v6626_v0, %v8610_v20  ;;  %v6628_v3 = vadd.f32 %v6533_v21, %v6293_v1  ;;  %v3934_v60 = vpop.f32.mrb[23].mxu1 }
 0x355   : > { %v8632_v61 = vadd.f32 %v6627_v59, %v8610_v20  ;;  %v6629_v18 = vadd.f32 %v3934_v60, %v8565_v37 }
 0x356   : > { %v5537_v9 = vmul.f32 -1.442695, %v8629_v24  ;;  %v8637_v54 = vadd.f32 %v6628_v3, %v8610_v20 }
 0x357   : > { %v5535_v40 = vmul.f32 -1.442695, %v8632_v61  ;;  %v8641_v11 = vadd.f32 %v6629_v18, %v8610_v20 }
 0x358   : > { %7129 = vpow2.f32 %v5537_v9  ;;  %v5538_v50 = vmul.f32 -1.442695, %v8637_v54 }
 0x359   : > { %7131 = vpow2.f32 %v5535_v40  ;;  %v5536_v1 = vmul.f32 -1.442695, %v8641_v11  ;;  %v6536_v27 = vpop.f32.mrb[24].mxu1 }
 0x35a   : > { %v7122_v23 = vpop.eup %7121  ;;  %7133 = vpow2.f32 %v5538_v50  ;;  %v6630_v37 = vadd.f32 %v6536_v27, %v8567_v19  ;;  %v3947_v5 = vpop.f32.mrb[25].mxu1 }
 0x35b   : > { %v7124_v4 = vpop.eup %7123  ;;  %v4211_v56 = vadd.f32 1.0, %v7122_v23  ;;  %7135 = vpow2.f32 %v5536_v1  ;;  %v6631_v17 = vadd.f32 %v3947_v5, %v8569_v42  ;;  %v6537_v26 = vpop.f32.mrb[26].mxu1 }
 0x35c   : > { %v7126_v47 = vpop.eup %7125  ;;  %v4209_v33 = vadd.f32 1.0, %v7124_v4  ;;  %v8648_v12 = vadd.f32 %v6630_v37, %v8610_v20  ;;  %v6632_v13 = vadd.f32 %v6537_v26, %v8571_v36  ;;  %v3950_v44 = vpop.f32.mrb[27].mxu1 }
 0x35d   : > { %v7128_v29 = vpop.eup %7127  ;;  %7137 = vrcp.f32 %v4211_v56  ;;  %v4212_v2 = vadd.f32 1.0, %v7126_v47  ;;  %v8652_v19 = vadd.f32 %v6631_v17, %v8610_v20  ;;  %v6633_v55 = vadd.f32 %v3950_v44, %v8573_v34 }
 0x35e   : > { %7139 = vrcp.f32 %v4209_v33  ;;  %v4210_v53 = vadd.f32 1.0, %v7128_v29  ;;  %v5541_v42 = vmul.f32 -1.442695, %v8648_v12  ;;  %v8657_v46 = vadd.f32 %v6632_v13, %v8610_v20 }
 0x35f   : > { %7141 = vrcp.f32 %v4212_v2  ;;  %v5539_v14 = vmul.f32 -1.442695, %v8652_v19  ;;  %v8661_v36 = vadd.f32 %v6633_v55, %v8610_v20 }
 0x360   : > { %7143 = vrcp.f32 %v4210_v53  ;;  %v5542_v52 = vmul.f32 -1.442695, %v8657_v46 }
 0x361   : > { %7145 = vpow2.f32 %v5541_v42  ;;  %v5540_v0 = vmul.f32 -1.442695, %v8661_v36  ;;  %v6540_v34 = vpop.f32.mrb[28].mxu1 }
 0x362   : > { %v7130_v16 = vpop.eup %7129  ;;  %7147 = vpow2.f32 %v5539_v14  ;;  %v6634_v59 = vadd.f32 %v6540_v34, %v8575_v22  ;;  %v3963_v21 = vpop.f32.mrb[29].mxu1 }
 0x363   : > { %v7132_v3 = vpop.eup %7131  ;;  %v4215_v60 = vadd.f32 1.0, %v7130_v16  ;;  %7149 = vpow2.f32 %v5542_v52  ;;  %v6635_v18 = vadd.f32 %v3963_v21, %v8577_v57  ;;  %v6541_v9 = vpop.f32.mrb[30].mxu1 }
 0x364   : > { %v7134_v40 = vpop.eup %7133  ;;  %v4213_v50 = vadd.f32 1.0, %v7132_v3  ;;  %7151 = vpow2.f32 %v5540_v0  ;;  %v8668_v1 = vadd.f32 %v6634_v59, %v8610_v20  ;;  %v6636_v27 = vadd.f32 %v6541_v9, %v8579_v49  ;;  %v3966_v23 = vpop.f32.mrb[31].mxu1 }
 0x365   : > { %v7136_v37 = vpop.eup %7135  ;;  %7153 = vrcp.f32 %v4215_v60  ;;  %v4216_v5 = vadd.f32 1.0, %v7134_v40  ;;  %v8672_v22 = vadd.f32 %v6635_v18, %v8610_v20  ;;  %v6637_v4 = vadd.f32 %v3966_v23, %v8581_v6 }
 0x366   : > { %7155 = vrcp.f32 %v4213_v50  ;;  %v4214_v57 = vadd.f32 1.0, %v7136_v37  ;;  %v5545_v56 = vmul.f32 -1.442695, %v8668_v1  ;;  %v8677_v17 = vadd.f32 %v6636_v27, %v8610_v20 }
 0x367   : > { %v7138_v26 = vpop.eup %7137  ;;  %7157 = vrcp.f32 %v4216_v5  ;;  %v5543_v49 = vmul.f32 -1.442695, %v8672_v22  ;;  %v8681_v47 = vadd.f32 %v6637_v4, %v8610_v20 }
 0x368   : > { %v7140_v33 = vpop.eup %7139  ;;  %7159 = vrcp.f32 %v4214_v57  ;;  %v5546_v13 = vmul.f32 -1.442695, %v8677_v17  ;;  %v4307_v55 = vmul.f32 %v7138_v26, %v8613_v31 }
 0x369   : > { %v7142_v44 = vpop.eup %7141  ;;  %7161 = vpow2.f32 %v5545_v56  ;;  %v5544_v6 = vmul.f32 -1.442695, %v8681_v47  ;;  %v6544_v29 = vpop.f32.mrb[0].mxu1  ;;  %v4305_v0 = vmul.f32 %v7140_v33, %v8616_v43 }
 0x36a   : > { %v7144_v2 = vpop.eup %7143  ;;  %v4308_v53 = vmul.f32 %v7142_v44, %v8620_v35  ;;  %7163 = vpow2.f32 %v5543_v49  ;;  %v6638_v42 = vadd.f32 %v6544_v29, %v8524_v30  ;;  %v3979_v14 = vpop.f32.mrb[1].mxu1 }
 0x36b   : > { %v7146_v52 = vpop.eup %7145  ;;  %v4306_v34 = vmul.f32 %v7144_v2, %v8624_v10  ;;  %7165 = vpow2.f32 %v5546_v13  ;;  %v6639_v16 = vadd.f32 %v3979_v14, %v8526_v32  ;;  %v6545_v59 = vpop.f32.mrb[2].mxu1 }
 0x36c   : > { %v7148_v21 = vpop.eup %7147  ;;  %v4338_v3 = vpack.c.bf16 %v4308_v53, %v4307_v55  ;;  %v4219_v60 = vadd.f32 1.0, %v7146_v52  ;;  %7167 = vpow2.f32 %v5544_v6  ;;  %v8692_v31 = vadd.f32 %v6638_v42, %v8610_v20  ;;  %v3982_v35 = vpop.f32.mrb[3].mxu1 }
 0x36d   : > { %v7150_v18 = vpop.eup %7149  ;;  %v4217_v30 = vadd.f32 1.0, %v7148_v21  ;;  %v8695_v9 = vadd.f32 %v6639_v16, %v8610_v20  ;;  %v6640_v43 = vadd.f32 %v6545_v59, %v8531_v62  ;;  %v6641_v10 = vadd.f32 %v3982_v35, %v8536_v51 }
 0x36e   : > { %v7152_v40 = vpop.eup %7151  ;;  %7169 = vrcp.f32 %v4219_v60  ;;  %v4220_v32 = vadd.f32 1.0, %v7150_v18  ;;  %v5549_v50 = vmul.f32 -1.442695, %v8692_v31  ;;  %v4337_v27 = vpack.c.bf16 %v4306_v34, %v4305_v0 }
 0x36f   : > { %v7154_v23 = vpop.eup %7153  ;;  %7171 = vrcp.f32 %v4217_v30  ;;  %v4218_v37 = vadd.f32 1.0, %v7152_v40  ;;  %v5547_v5 = vmul.f32 -1.442695, %v8695_v9  ;;  %v8702_v4 = vadd.f32 %v6640_v43, %v8610_v20 }
 0x370   : > { %v7156_v57 = vpop.eup %7155  ;;  %7173 = vrcp.f32 %v4220_v32  ;;  %v8705_v62 = vadd.f32 %v6641_v10, %v8610_v20  ;;  %6574 = vmatprep.mubr.bf16.mxu0 %v4337_v27  ;;  %v4311_v56 = vmul.f32 %v7154_v23, %v8629_v24 }
 0x371   : > { %v7158_v51 = vpop.eup %7157  ;;  %7175 = vrcp.f32 %v4218_v37  ;;  %v5550_v26 = vmul.f32 -1.442695, %v8702_v4  ;;  %6575 = vmatmul.mubr.bf16.vlgmr.msra.gmra.mrb[64].mxu0 %v4338_v3  ;;  %v6548_v49 = vpop.f32.mrb[4].mxu1  ;;  %v4309_v13 = vmul.f32 %v7156_v57, %v8632_v61 }
 0x372   : > { %v7160_v33 = vpop.eup %7159  ;;  %7177 = vpow2.f32 %v5549_v50  ;;  %v5548_v44 = vmul.f32 -1.442695, %v8705_v62  ;;  %v6642_v6 = vadd.f32 %v6548_v49, %v8538_v38  ;;  %v3995_v29 = vpop.f32.mrb[5].mxu1  ;;  %v4312_v55 = vmul.f32 %v7158_v51, %v8637_v54 }
 0x373   : > { %v7162_v2 = vpop.eup %7161  ;;  %v4310_v53 = vmul.f32 %v7160_v33, %v8641_v11  ;;  %7179 = vpow2.f32 %v5547_v5  ;;  %v6643_v24 = vadd.f32 %v3995_v29, %v8540_v25  ;;  %v6549_v42 = vpop.f32.mrb[6].mxu1 }
 0x374   : > { %v7164_v14 = vpop.eup %7163  ;;  %v4223_v52 = vadd.f32 1.0, %v7162_v2  ;;  %7181 = vpow2.f32 %v5550_v26  ;;  %v8716_v61 = vadd.f32 %v6642_v6, %v8610_v20  ;;  %v6644_v0 = vadd.f32 %v6549_v42, %v8545_v15  ;;  %v3998_v34 = vpop.f32.mrb[7].mxu1 }
 0x375   : > { %v7166_v38 = vpop.eup %7165  ;;  %v4221_v16 = vadd.f32 1.0, %v7164_v14  ;;  %7183 = vpow2.f32 %v5548_v44  ;;  %v8720_v54 = vadd.f32 %v6643_v24, %v8610_v20  ;;  %v6645_v11 = vadd.f32 %v3998_v34, %v8547_v63 }
 0x376   : > { %v7168_v59 = vpop.eup %7167  ;;  %7185 = vrcp.f32 %v4223_v52  ;;  %v4224_v25 = vadd.f32 1.0, %v7166_v38  ;;  %v5553_v21 = vmul.f32 -1.442695, %v8716_v61  ;;  %v8725_v3 = vadd.f32 %v6644_v0, %v8610_v20 }
 0x377   : > { %7187 = vrcp.f32 %v4221_v16  ;;  %v4222_v60 = vadd.f32 1.0, %v7168_v59  ;;  %v5551_v15 = vmul.f32 -1.442695, %v8720_v54  ;;  %v8729_v35 = vadd.f32 %v6645_v11, %v8610_v20 }
 0x378   : > { %v7170_v18 = vpop.eup %7169  ;;  %7189 = vrcp.f32 %v4224_v25  ;;  %v5554_v30 = vmul.f32 -1.442695, %v8725_v3  ;;  %v4339_v63 = vpack.c.bf16 %v4310_v53, %v4309_v13  ;;  %v4340_v43 = vpack.c.bf16 %v4312_v55, %v4311_v56 }
 0x379   : > { %v7172_v10 = vpop.eup %7171  ;;  %7191 = vrcp.f32 %v4222_v60  ;;  %v5552_v40 = vmul.f32 -1.442695, %v8729_v35  ;;  %v6552_v32 = vpop.f32.mrb[8].mxu1  ;;  %v4315_v29 = vmul.f32 %v7170_v18, %v8648_v12 }
 0x37a   : > { %v7174_v50 = vpop.eup %7173  ;;  %7193 = vpow2.f32 %v5553_v21  ;;  %6578 = vmatprep.mubr.bf16.mxu0 %v4339_v63  ;;  %v6646_v27 = vadd.f32 %v6552_v32, %v8549_v58  ;;  %v4011_v23 = vpop.f32.mrb[9].mxu1  ;;  %v4313_v5 = vmul.f32 %v7172_v10, %v8652_v19 }
 0x37b   : > { %v7176_v37 = vpop.eup %7175  ;;  %v4316_v57 = vmul.f32 %v7174_v50, %v8657_v46  ;;  %7195 = vpow2.f32 %v5551_v15  ;;  %6579 = vmatmul.mubr.bf16.gmra.mrb[68].mxu0 %v4340_v43  ;;  %v6647_v51 = vadd.f32 %v4011_v23, %v8551_v41  ;;  %v6553_v56 = vpop.f32.mrb[10].mxu1 }
 0x37c   : > { %v7178_v26 = vpop.eup %7177  ;;  %v4314_v49 = vmul.f32 %v7176_v37, %v8661_v36  ;;  %7197 = vpow2.f32 %v5554_v30  ;;  %v8739_v33 = vadd.f32 %v6646_v27, %v8610_v20  ;;  %v6648_v58 = vadd.f32 %v6553_v56, %v8553_v7  ;;  %v4014_v13 = vpop.f32.mrb[11].mxu1 }
 0x37d   : > { %v7180_v44 = vpop.eup %7179  ;;  %v4227_v6 = vadd.f32 1.0, %v7178_v26  ;;  %7199 = vpow2.f32 %v5552_v40  ;;  %v8743_v19 = vadd.f32 %v6647_v51, %v8610_v20  ;;  %v6649_v46 = vadd.f32 %v4014_v13, %v8555_v39 }
 0x37e   : > { %v7182_v41 = vpop.eup %7181  ;;  %v4225_v2 = vadd.f32 1.0, %v7180_v44  ;;  %v8748_v36 = vadd.f32 %v6648_v58, %v8610_v20  ;;  %v4341_v55 = vpack.c.bf16 %v4314_v49, %v4313_v5  ;;  %v5557_v24 = vmul.f32 -1.442695, %v8739_v33 }
 0x37f   : > { %v7184_v53 = vpop.eup %7183  ;;  %7201 = vrcp.f32 %v4227_v6  ;;  %v4228_v7 = vadd.f32 1.0, %v7182_v41  ;;  %v8752_v42 = vadd.f32 %v6649_v46, %v8610_v20  ;;  %v5555_v39 = vmul.f32 -1.442695, %v8743_v19 }
 0x380   : > { %v7186_v14 = vpop.eup %7185  ;;  %7203 = vrcp.f32 %v4225_v2  ;;  %v4226_v52 = vadd.f32 1.0, %v7184_v53  ;;  %6582 = vmatprep.mubr.bf16.mxu0 %v4341_v55  ;;  %v4342_v12 = vpack.c.bf16 %v4316_v57, %v4315_v29  ;;  %v5558_v34 = vmul.f32 -1.442695, %v8748_v36 }
 0x381   : > { %v7188_v0 = vpop.eup %7187  ;;  %7205 = vrcp.f32 %v4228_v7  ;;  %v6556_v38 = vpop.f32.mrb[12].mxu1  ;;  %v5556_v11 = vmul.f32 -1.442695, %v8752_v42  ;;  %v4319_v60 = vmul.f32 %v7186_v14, %v8668_v1 }
 0x382   : > { %v7190_v16 = vpop.eup %7189  ;;  %7207 = vrcp.f32 %v4226_v52  ;;  %v6650_v59 = vadd.f32 %v6556_v38, %v8557_v45  ;;  %v4027_v25 = vpop.f32.mrb[13].mxu1  ;;  %v4317_v27 = vmul.f32 %v7188_v0, %v8672_v22 }
 0x383   : > { %v7192_v21 = vpop.eup %7191  ;;  %v4320_v15 = vmul.f32 %v7190_v16, %v8677_v17  ;;  %7209 = vpow2.f32 %v5557_v24  ;;  %6583 = vmatmul.mubr.bf16.gmra.mrb[72].mxu0 %v4342_v12  ;;  %v6651_v18 = vadd.f32 %v4027_v25, %v8559_v48  ;;  %v6557_v30 = vpop.f32.mrb[14].mxu1 }
 0x384   : > { %v7194_v63 = vpop.eup %7193  ;;  %v4318_v43 = vmul.f32 %v7192_v21, %v8681_v47  ;;  %7211 = vpow2.f32 %v5555_v39  ;;  %v8763_v10 = vadd.f32 %v6650_v59, %v8610_v20  ;;  %v6652_v45 = vadd.f32 %v6557_v30, %v8561_v8  ;;  %v4030_v40 = vpop.f32.mrb[15].mxu1 }
 0x385   : > { %v7196_v32 = vpop.eup %7195  ;;  %v4231_v50 = vadd.f32 1.0, %v7194_v63  ;;  %7213 = vpow2.f32 %v5558_v34  ;;  %v8767_v1 = vadd.f32 %v6651_v18, %v8610_v20  ;;  %v6653_v17 = vadd.f32 %v4030_v40, %v8563_v28 }
 0x386   : > { %v7198_v48 = vpop.eup %7197  ;;  %v4229_v23 = vadd.f32 1.0, %v7196_v32  ;;  %7215 = vpow2.f32 %v5556_v11  ;;  %v8772_v47 = vadd.f32 %v6652_v45, %v8610_v20  ;;  %v5561_v5 = vmul.f32 -1.442695, %v8763_v10 }
 0x387   : > { %v7200_v37 = vpop.eup %7199  ;;  %7217 = vrcp.f32 %v4231_v50  ;;  %v4232_v8 = vadd.f32 1.0, %v7198_v48  ;;  %v8776_v57 = vadd.f32 %v6653_v17, %v8610_v20  ;;  %v5559_v28 = vmul.f32 -1.442695, %v8767_v1 }
 0x388   : > { %7219 = vrcp.f32 %v4229_v23  ;;  %v4230_v51 = vadd.f32 1.0, %v7200_v37  ;;  %v4343_v56 = vpack.c.bf16 %v4318_v43, %v4317_v27  ;;  %v5562_v22 = vmul.f32 -1.442695, %v8772_v47 }
 0x389   : > { %v7202_v26 = vpop.eup %7201  ;;  %7221 = vrcp.f32 %v4232_v8  ;;  %v4344_v49 = vpack.c.bf16 %v4320_v15, %v4319_v60  ;;  %v5560_v13 = vmul.f32 -1.442695, %v8776_v57 }
 0x38a   : > { %v7204_v58 = vpop.eup %7203  ;;  %7223 = vrcp.f32 %v4230_v51  ;;  %6586 = vmatprep.mubr.bf16.mxu0 %v4343_v56  ;;  %v4323_v6 = vmul.f32 %v7202_v26, %v8692_v31  ;;  %v5784_v56 = vld [vmem:[%s7333_s12 + $0x8] sm:$0xff]   ;;  %v5641_v26 = vld [vmem:[%s7333_s12] sm:$0xff]  }
 0x38b   : > { %v7206_v44 = vpop.eup %7205  ;;  %7225 = vpow2.f32 %v5561_v5  ;;  %6587 = vmatmul.mubr.bf16.gmra.mrb[76].mxu0 %v4344_v49  ;;  %v4321_v29 = vmul.f32 %v7204_v58, %v8695_v9  ;;  %v5646_v49 = vunpack.c.l.bf16 %v5784_v56  ;;  %v5642_v58 = vunpack.c.l.bf16 %v5641_v26 }
 0x38c   : > { %v7208_v20 = vpop.eup %7207  ;;  %v4324_v46 = vmul.f32 %v7206_v44, %v8702_v4  ;;  %7227 = vpow2.f32 %v5559_v28 }
 0x38d   : > { %v7210_v41 = vpop.eup %7209  ;;  %v4322_v2 = vmul.f32 %v7208_v20, %v8705_v62  ;;  %7229 = vpow2.f32 %v5562_v22  ;;  %v8802_v22 = vld [vmem:[%s8882_s6] ss:$0 sm:$0xff]  ;;  %v5643_v20 = vunpack.c.h.bf16 %v5641_v26  ;;  %v5790_v26 = vld [vmem:[%s7333_s12 + $0x38] sm:$0xff]  }
 0x38e   : > { %v7212_v55 = vpop.eup %7211  ;;  %v4235_v53 = vadd.f32 1.0, %v7210_v41  ;;  %7231 = vpow2.f32 %v5560_v13  ;;  %v4346_v7 = vpack.c.bf16 %v4324_v46, %v4323_v6 }
 0x38f   : > { %v7214_v24 = vpop.eup %7213  ;;  %v4233_v14 = vadd.f32 1.0, %v7212_v55  ;;  %v4345_v52 = vpack.c.bf16 %v4322_v2, %v4321_v29 }
 0x390   : > { %v7216_v39 = vpop.eup %7215  ;;  %7233 = vrcp.f32 %v4235_v53  ;;  %v4236_v12 = vadd.f32 1.0, %v7214_v24 }
 0x391   : > { %v7218_v31 = vpop.eup %7217  ;;  %7235 = vrcp.f32 %v4233_v14  ;;  %v4234_v4 = vadd.f32 1.0, %v7216_v39  ;;  %6590 = vmatprep.mubr.bf16.mxu0 %v4345_v52  ;;  %v5785_v52 = vld [vmem:[%s7333_s12 + $0x10] sm:$0xff]  }
 0x392   : > { %v7220_v0 = vpop.eup %7219  ;;  %7237 = vrcp.f32 %v4236_v12  ;;  %v4327_v34 = vmul.f32 %v7218_v31, %v8716_v61 }
 0x393   : > { %v7222_v9 = vpop.eup %7221  ;;  %7239 = vrcp.f32 %v4234_v4  ;;  %6591 = vmatmul.mubr.bf16.gmra.mrb[80].mxu0 %v4346_v7  ;;  %v4325_v11 = vmul.f32 %v7220_v0, %v8720_v54  ;;  %v5786_v7 = vld [vmem:[%s7333_s12 + $0x18] sm:$0xff]  }
 0x394   : > { %v7224_v62 = vpop.eup %7223  ;;  %v4328_v38 = vmul.f32 %v7222_v9, %v8725_v3  ;;  %v5654_v4 = vunpack.c.l.bf16 %v5786_v7 }
 0x395   : > { %v7226_v16 = vpop.eup %7225  ;;  %v4326_v59 = vmul.f32 %v7224_v62, %v8729_v35  ;;  %v5650_v62 = vunpack.c.l.bf16 %v5785_v52 }
 0x396   : > { %v7228_v25 = vpop.eup %7227  ;;  %v4239_v21 = vadd.f32 1.0, %v7226_v16  ;;  %v4348_v60 = vpack.c.bf16 %v4328_v38, %v4327_v34  ;;  %v5655_v16 = vunpack.c.h.bf16 %v5786_v7 }
 0x397   : > { %v7230_v15 = vpop.eup %7229  ;;  %v4237_v18 = vadd.f32 1.0, %v7228_v25  ;;  %v4347_v30 = vpack.c.bf16 %v4326_v59, %v4325_v11  ;;  %v5651_v25 = vunpack.c.h.bf16 %v5785_v52 }
 0x398   : > { %v7232_v63 = vpop.eup %7231  ;;  %7241 = vrcp.f32 %v4239_v21  ;;  %v4240_v43 = vadd.f32 1.0, %v7230_v15 }
 0x399   : > { %7243 = vrcp.f32 %v4237_v18  ;;  %v4238_v45 = vadd.f32 1.0, %v7232_v63  ;;  %6594 = vmatprep.mubr.bf16.mxu0 %v4347_v30  ;;  %v5788_v63 = vld [vmem:[%s7333_s12 + $0x28] sm:$0xff]  }
 0x39a   : > { %v7234_v61 = vpop.eup %7233  ;;  %7245 = vrcp.f32 %v4240_v43 }
 0x39b   : > { %v7236_v3 = vpop.eup %7235  ;;  %7247 = vrcp.f32 %v4238_v45  ;;  %6595 = vmatmul.mubr.bf16.gmra.mrb[84].mxu0 %v4348_v60  ;;  %v4331_v35 = vmul.f32 %v7234_v61, %v8739_v33  ;;  %v5787_v45 = vld [vmem:[%s7333_s12 + $0x20] sm:$0xff]  }
 0x39c   : > { %v7238_v54 = vpop.eup %7237  ;;  %v4329_v50 = vmul.f32 %v7236_v3, %v8743_v19 }
 0x39d   : > { %v7240_v40 = vpop.eup %7239  ;;  %v4332_v32 = vmul.f32 %v7238_v54, %v8748_v36 }
 0x39e   : > { %v4330_v17 = vmul.f32 %v7240_v40, %v8752_v42  ;;  %v5662_v40 = vunpack.c.l.bf16 %v5788_v63 }
 0x39f   : > { %v4350_v48 = vpack.c.bf16 %v4332_v32, %v4331_v35 }
 0x3a0   : > { %v4349_v27 = vpack.c.bf16 %v4330_v17, %v4329_v50  ;;  %v5658_v17 = vunpack.c.l.bf16 %v5787_v45 }
 0x3a2   : > { %v7242_v23 = vpop.eup %7241  ;;  %6598 = vmatprep.mubr.bf16.mxu0 %v4349_v27 }
 0x3a3   : > { %v7244_v37 = vpop.eup %7243  ;;  %6599 = vmatmul.mubr.bf16.gmra.mrb[88].mxu0 %v4350_v48  ;;  %v4335_v51 = vmul.f32 %v7242_v23, %v8763_v10 }
 0x3a4   : > { %v7246_v8 = vpop.eup %7245  ;;  %v4333_v36 = vmul.f32 %v7244_v37, %v8767_v1  ;;  %v5663_v37 = vunpack.c.h.bf16 %v5788_v63 }
 0x3a5   : > { %v7248_v5 = vpop.eup %7247  ;;  %v4336_v33 = vmul.f32 %v7246_v8, %v8772_v47 }
 0x3a6   : > { %v4334_v19 = vmul.f32 %v7248_v5, %v8776_v57  ;;  %v5647_v57 = vunpack.c.h.bf16 %v5784_v56 }
 0x3a7   : > { %v4352_v28 = vpack.c.bf16 %v4336_v33, %v4335_v51  ;;  %v5659_v33 = vunpack.c.h.bf16 %v5787_v45 }
 0x3a8   : > { %v4351_v42 = vpack.c.bf16 %v4334_v19, %v4333_v36 }
 0x3aa   : > { %6602 = vmatprep.mubr.bf16.mxu0 %v4351_v42 }
 0x3ab   : > { %6603 = vmatmul.mubr.bf16.gmra.mrb[92].mxu0 %v4352_v28 }
 0x444   : > { %v6576_v10 = vpop.f32.mrb[64].mxu0 }
 0x445   : > { %v4467_v47 = vadd.f32 %v6576_v10, %v8802_v22  ;;  %v4458_v1 = vpop.f32.mrb[65].mxu0  ;;  %v5789_v10 = vld [vmem:[%s7333_s12 + $0x30] sm:$0xff]  }
 0x446   : > { %v4459_v13 = vadd.f32 %v8802_v22, %v4458_v1  ;;  %v6577_v44 = vpop.f32.mrb[66].mxu0 }
 0x447   : > { %v4651_v6 = vadd.f32 %v5646_v49, %v4467_v47  ;;  %v4470_v46 = vadd.f32 %v6577_v44, %v8802_v22  ;;  %v4461_v41 = vpop.f32.mrb[67].mxu0 }
 0x448   : > { %v4649_v29 = vadd.f32 %v5642_v58, %v4459_v13  ;;  %v4462_v2 = vadd.f32 %v8802_v22, %v4461_v41 }
 0x449   : > { %v4652_v55 = vadd.f32 %v5647_v57, %v4470_v46  ;;  %v4683_v24 = vmax.f32 %v4651_v6, 0.0  ;;  %v5670_v57 = vunpack.c.l.bf16 %v5790_v26  ;;  %v5666_v6 = vunpack.c.l.bf16 %v5789_v10 }
 0x44a   : > { %v4650_v53 = vadd.f32 %v5643_v20, %v4462_v2  ;;  %v4681_v39 = vmax.f32 %v4649_v29, 0.0  ;;  %v5671_v2 = vunpack.c.h.bf16 %v5790_v26 }
 0x44b   : > { %v4684_v14 = vmax.f32 %v4652_v55, 0.0 }
 0x44c   : > { %v4682_v12 = vmax.f32 %v4650_v53, 0.0 }
 0x44d   : > { %v5712_v31 = vpack.c.bf16 %v4684_v14, %v4683_v24  ;;  %v5667_v24 = vunpack.c.h.bf16 %v5789_v10 }
 0x44e   : > { %v5707_v0 = vpack.c.bf16 %v4682_v12, %v4681_v39  ;;  %v6580_v9 = vpop.f32.mrb[68].mxu0 }
 0x44f   : > { %5799 = vst [vmem:[%s8815_s17 + $0x8] sm:$0xff] %v5712_v31   ;;  %v4483_v34 = vadd.f32 %v6580_v9, %v8802_v22  ;;  %v4474_v38 = vpop.f32.mrb[69].mxu0  ;;  %v5791_v9 = vld [vmem:[%s7333_s12 + $0x40] sm:$0xff]  }
 0x450   : > { %5708 = vst [vmem:[%s8815_s17] sm:$0xff] %v5707_v0   ;;  %v4475_v11 = vadd.f32 %v8802_v22, %v4474_v38  ;;  %v6581_v59 = vpop.f32.mrb[70].mxu0 }
 0x451   : > { %v4655_v21 = vadd.f32 %v5654_v4, %v4483_v34  ;;  %v4486_v60 = vadd.f32 %v6581_v59, %v8802_v22  ;;  %v4477_v15 = vpop.f32.mrb[71].mxu0  ;;  %v5792_v4 = vld [vmem:[%s7333_s12 + $0x48] sm:$0xff]  }
 0x452   : > { %v4653_v18 = vadd.f32 %v5650_v62, %v4475_v11  ;;  %v4478_v30 = vadd.f32 %v8802_v22, %v4477_v15 }
 0x453   : > { %v4656_v43 = vadd.f32 %v5655_v16, %v4486_v60  ;;  %v4687_v3 = vmax.f32 %v4655_v21, 0.0  ;;  %v5678_v16 = vunpack.c.l.bf16 %v5792_v4  ;;  %v5674_v21 = vunpack.c.l.bf16 %v5791_v9 }
 0x454   : > { %v4654_v61 = vadd.f32 %v5651_v25, %v4478_v30  ;;  %v4685_v35 = vmax.f32 %v4653_v18, 0.0  ;;  %v5679_v30 = vunpack.c.h.bf16 %v5792_v4 }
 0x455   : > { %v4688_v54 = vmax.f32 %v4656_v43, 0.0 }
 0x456   : > { %v4686_v32 = vmax.f32 %v4654_v61, 0.0  ;;  %v6584_v50 = vpop.f32.mrb[72].mxu0  ;;  %v5675_v61 = vunpack.c.h.bf16 %v5791_v9 }
 0x457   : > { %v5722_v48 = vpack.c.bf16 %v4688_v54, %v4687_v3  ;;  %v4499_v27 = vadd.f32 %v6584_v50, %v8802_v22  ;;  %v4490_v23 = vpop.f32.mrb[73].mxu0  ;;  %v5794_v50 = vld [vmem:[%s7333_s12 + $0x58] sm:$0xff]  }
 0x458   : > { %v5717_v8 = vpack.c.bf16 %v4686_v32, %v4685_v35  ;;  %v4491_v5 = vadd.f32 %v8802_v22, %v4490_v23  ;;  %v6585_v51 = vpop.f32.mrb[74].mxu0 }
 0x459   : > { %5801 = vst [vmem:[%s8815_s17 + $0x18] sm:$0xff] %v5722_v48   ;;  %v4659_v36 = vadd.f32 %v5662_v40, %v4499_v27  ;;  %v4502_v19 = vadd.f32 %v6585_v51, %v8802_v22  ;;  %v4493_v28 = vpop.f32.mrb[75].mxu0  ;;  %v5793_v48 = vld [vmem:[%s7333_s12 + $0x50] sm:$0xff]  }
 0x45a   : > { %5800 = vst [vmem:[%s8815_s17 + $0x10] sm:$0xff] %v5717_v8   ;;  %v4657_v42 = vadd.f32 %v5658_v17, %v4491_v5  ;;  %v4494_v56 = vadd.f32 %v8802_v22, %v4493_v28  ;;  %v5686_v8 = vunpack.c.l.bf16 %v5794_v50 }
 0x45b   : > { %v4660_v49 = vadd.f32 %v5663_v37, %v4502_v19  ;;  %v4691_v47 = vmax.f32 %v4659_v36, 0.0  ;;  %v5682_v36 = vunpack.c.l.bf16 %v5793_v48 }
 0x45c   : > { %v4658_v58 = vadd.f32 %v5659_v33, %v4494_v56  ;;  %v4689_v13 = vmax.f32 %v4657_v42, 0.0  ;;  %v5687_v56 = vunpack.c.h.bf16 %v5794_v50 }
 0x45d   : > { %v4692_v1 = vmax.f32 %v4660_v49, 0.0 }
 0x45e   : > { %v4690_v44 = vmax.f32 %v4658_v58, 0.0  ;;  %v6588_v20 = vpop.f32.mrb[76].mxu0  ;;  %v5683_v58 = vunpack.c.h.bf16 %v5793_v48 }
 0x45f   : > { %v5732_v46 = vpack.c.bf16 %v4692_v1, %v4691_v47  ;;  %v4515_v41 = vadd.f32 %v6588_v20, %v8802_v22  ;;  %v4506_v29 = vpop.f32.mrb[77].mxu0  ;;  %v5796_v20 = vld [vmem:[%s7333_s12 + $0x68] sm:$0xff]  }
 0x460   : > { %v5727_v55 = vpack.c.bf16 %v4690_v44, %v4689_v13  ;;  %v4507_v53 = vadd.f32 %v8802_v22, %v4506_v29  ;;  %v6589_v7 = vpop.f32.mrb[78].mxu0 }
 0x461   : > { %5803 = vst [vmem:[%s8815_s17 + $0x28] sm:$0xff] %v5732_v46   ;;  %v4663_v14 = vadd.f32 %v5670_v57, %v4515_v41  ;;  %v4518_v52 = vadd.f32 %v6589_v7, %v8802_v22  ;;  %v4509_v39 = vpop.f32.mrb[79].mxu0  ;;  %v5795_v46 = vld [vmem:[%s7333_s12 + $0x60] sm:$0xff]  }
 0x462   : > { %5802 = vst [vmem:[%s8815_s17 + $0x20] sm:$0xff] %v5727_v55   ;;  %v4661_v12 = vadd.f32 %v5666_v6, %v4507_v53  ;;  %v4510_v31 = vadd.f32 %v8802_v22, %v4509_v39  ;;  %v5694_v55 = vunpack.c.l.bf16 %v5796_v20 }
 0x463   : > { %v4664_v0 = vadd.f32 %v5671_v2, %v4518_v52  ;;  %v4695_v34 = vmax.f32 %v4663_v14, 0.0  ;;  %v5690_v14 = vunpack.c.l.bf16 %v5795_v46 }
 0x464   : > { %v4662_v62 = vadd.f32 %v5667_v24, %v4510_v31  ;;  %v4693_v11 = vmax.f32 %v4661_v12, 0.0  ;;  %v5695_v31 = vunpack.c.h.bf16 %v5796_v20 }
 0x465   : > { %v4696_v38 = vmax.f32 %v4664_v0, 0.0 }
 0x466   : > { %v4694_v59 = vmax.f32 %v4662_v62, 0.0  ;;  %v6592_v25 = vpop.f32.mrb[80].mxu0  ;;  %v5691_v62 = vunpack.c.h.bf16 %v5795_v46 }
 0x467   : > { %v5742_v60 = vpack.c.bf16 %v4696_v38, %v4695_v34  ;;  %v4531_v15 = vadd.f32 %v6592_v25, %v8802_v22  ;;  %v4522_v18 = vpop.f32.mrb[81].mxu0  ;;  %v5798_v25 = vld [vmem:[%s7333_s12 + $0x78] sm:$0xff]  }
 0x468   : > { %v5737_v63 = vpack.c.bf16 %v4694_v59, %v4693_v11  ;;  %v4523_v43 = vadd.f32 %v8802_v22, %v4522_v18  ;;  %v6593_v45 = vpop.f32.mrb[82].mxu0 }
 0x469   : > { %5805 = vst [vmem:[%s8815_s17 + $0x38] sm:$0xff] %v5742_v60   ;;  %v4667_v3 = vadd.f32 %v5678_v16, %v4531_v15  ;;  %v4534_v54 = vadd.f32 %v6593_v45, %v8802_v22  ;;  %v4525_v40 = vpop.f32.mrb[83].mxu0  ;;  %v5797_v60 = vld [vmem:[%s7333_s12 + $0x70] sm:$0xff]  }
 0x46a   : > { %5804 = vst [vmem:[%s8815_s17 + $0x30] sm:$0xff] %v5737_v63   ;;  %v4665_v35 = vadd.f32 %v5674_v21, %v4523_v43  ;;  %v4526_v32 = vadd.f32 %v8802_v22, %v4525_v40  ;;  %v5702_v63 = vunpack.c.l.bf16 %v5798_v25 }
 0x46b   : > { %v4668_v17 = vadd.f32 %v5679_v30, %v4534_v54  ;;  %v4699_v23 = vmax.f32 %v4667_v3, 0.0  ;;  %v5698_v3 = vunpack.c.l.bf16 %v5797_v60 }
 0x46c   : > { %v4666_v27 = vadd.f32 %v5675_v61, %v4526_v32  ;;  %v4697_v5 = vmax.f32 %v4665_v35, 0.0  ;;  %v5703_v32 = vunpack.c.h.bf16 %v5798_v25 }
 0x46d   : > { %v4700_v37 = vmax.f32 %v4668_v17, 0.0 }
 0x46e   : > { %v4698_v51 = vmax.f32 %v4666_v27, 0.0  ;;  %v6596_v33 = vpop.f32.mrb[84].mxu0  ;;  %v5699_v27 = vunpack.c.h.bf16 %v5797_v60 }
 0x46f   : > { %v5752_v19 = vpack.c.bf16 %v4700_v37, %v4699_v23  ;;  %v4547_v28 = vadd.f32 %v6596_v33, %v8802_v22  ;;  %v4538_v42 = vpop.f32.mrb[85].mxu0 }
 0x470   : > { %v5747_v26 = vpack.c.bf16 %v4698_v51, %v4697_v5  ;;  %v4539_v49 = vadd.f32 %v8802_v22, %v4538_v42  ;;  %v6597_v10 = vpop.f32.mrb[86].mxu0 }
 0x471   : > { %5807 = vst [vmem:[%s8815_s17 + $0x48] sm:$0xff] %v5752_v19   ;;  %v4671_v47 = vadd.f32 %v5686_v8, %v4547_v28  ;;  %v4550_v1 = vadd.f32 %v6597_v10, %v8802_v22  ;;  %v4541_v57 = vpop.f32.mrb[87].mxu0 }
 0x472   : > { %5806 = vst [vmem:[%s8815_s17 + $0x40] sm:$0xff] %v5747_v26   ;;  %v4669_v13 = vadd.f32 %v5682_v36, %v4539_v49  ;;  %v4542_v44 = vadd.f32 %v8802_v22, %v4541_v57 }
 0x473   : > { %v4672_v6 = vadd.f32 %v5687_v56, %v4550_v1  ;;  %v4703_v29 = vmax.f32 %v4671_v47, 0.0 }
 0x474   : > { %v4670_v41 = vadd.f32 %v5683_v58, %v4542_v44  ;;  %v4701_v53 = vmax.f32 %v4669_v13, 0.0 }
 0x475   : > { %v4704_v2 = vmax.f32 %v4672_v6, 0.0 }
 0x476   : > { %v4702_v7 = vmax.f32 %v4670_v41, 0.0  ;;  %v6600_v24 = vpop.f32.mrb[88].mxu0 }
 0x477   : > { %v5762_v52 = vpack.c.bf16 %v4704_v2, %v4703_v29  ;;  %v4563_v39 = vadd.f32 %v6600_v24, %v8802_v22  ;;  %v4554_v12 = vpop.f32.mrb[89].mxu0 }
 0x478   : > { %v5757_v4 = vpack.c.bf16 %v4702_v7, %v4701_v53  ;;  %v4555_v0 = vadd.f32 %v8802_v22, %v4554_v12  ;;  %v6601_v9 = vpop.f32.mrb[90].mxu0 }
 0x479   : > { %5809 = vst [vmem:[%s8815_s17 + $0x58] sm:$0xff] %v5762_v52   ;;  %v4675_v34 = vadd.f32 %v5694_v55, %v4563_v39  ;;  %v4566_v38 = vadd.f32 %v6601_v9, %v8802_v22  ;;  %v4557_v16 = vpop.f32.mrb[91].mxu0 }
 0x47a   : > { %5808 = vst [vmem:[%s8815_s17 + $0x50] sm:$0xff] %v5757_v4   ;;  %v4673_v11 = vadd.f32 %v5690_v14, %v4555_v0  ;;  %v4558_v59 = vadd.f32 %v8802_v22, %v4557_v16 }
 0x47b   : > { %v4676_v21 = vadd.f32 %v5695_v31, %v4566_v38  ;;  %v4707_v18 = vmax.f32 %v4675_v34, 0.0 }
 0x47c   : > { %v4674_v15 = vadd.f32 %v5691_v62, %v4558_v59  ;;  %v4705_v43 = vmax.f32 %v4673_v11, 0.0 }
 0x47d   : > { %v4708_v30 = vmax.f32 %v4676_v21, 0.0 }
 0x47e   : > { %v4706_v45 = vmax.f32 %v4674_v15, 0.0  ;;  %v6604_v61 = vpop.f32.mrb[92].mxu0 }
 0x47f   : > { %v5772_v54 = vpack.c.bf16 %v4708_v30, %v4707_v18  ;;  %v4579_v40 = vadd.f32 %v6604_v61, %v8802_v22  ;;  %v4570_v35 = vpop.f32.mrb[93].mxu0 }
 0x480   : > { %v5767_v50 = vpack.c.bf16 %v4706_v45, %v4705_v43  ;;  %v4571_v17 = vadd.f32 %v8802_v22, %v4570_v35  ;;  %v6605_v48 = vpop.f32.mrb[94].mxu0 }
 0x481   : > { %5811 = vst [vmem:[%s8815_s17 + $0x68] sm:$0xff] %v5772_v54   ;;  %v4679_v23 = vadd.f32 %v5702_v63, %v4579_v40  ;;  %v4582_v37 = vadd.f32 %v6605_v48, %v8802_v22  ;;  %v4573_v8 = vpop.f32.mrb[95].mxu0 }
 0x482   : > { %5810 = vst [vmem:[%s8815_s17 + $0x60] sm:$0xff] %v5767_v50   ;;  %v4677_v5 = vadd.f32 %v5698_v3, %v4571_v17  ;;  %v4574_v51 = vadd.f32 %v8802_v22, %v4573_v8 }
 0x483   : > { %v4680_v33 = vadd.f32 %v5703_v32, %v4582_v37  ;;  %v4711_v19 = vmax.f32 %v4679_v23, 0.0 }
 0x484   : > { %v4678_v36 = vadd.f32 %v5699_v27, %v4574_v51  ;;  %v4709_v42 = vmax.f32 %v4677_v5, 0.0 }
 0x485   : > { %v4712_v28 = vmax.f32 %v4680_v33, 0.0 }
 0x486   : > { %v4710_v56 = vmax.f32 %v4678_v36, 0.0 }
 0x487   : > { %v5782_v26 = vpack.c.bf16 %v4712_v28, %v4711_v19 }
 0x488   : > { %v5777_v49 = vpack.c.bf16 %v4710_v56, %v4709_v42 }
 0x489   : > { %5813 = vst [vmem:[%s8815_s17 + $0x78] sm:$0xff] %v5782_v26  }
 0x48a   : > { %5812 = vst [vmem:[%s8815_s17 + $0x70] sm:$0xff] %v5777_v49  }
 0x48b PF: > { %s17_s24 = sadd.s32 1, %s7263_s24  }
 0x48c   : > { %p14_p4 = scmp.ge.s32.totalorder %s17_s24, 4  }
 0x48e   :  { %16 = sbr.rel (!%p14_p4) target bundleno = 1 (0x1), region = 89 }

// kernel: resnet_layer_forward.2
= control target key start
LH: loop header
LB: loop body
LE: loop exit
PB: predicated region body
PF: predicated region fallthrough
CT: control target
= control target key end

     0   :  { %s7782_s30 = smov 0   ;;  %s9354_s0 = inlined_call_operand.vmem [shape: bf16[2,16,16,128], index: 0, kind: input, shape index: {}]   ;;  %s9355_s1 = inlined_call_operand.vmem [shape: bf16[128,128], index: 1, kind: input, shape index: {}]   ;;  %s9356_s2 = inlined_call_operand.vmem [shape: f32[1,128], index: 2, kind: input, shape index: {}]   ;;  %s9357_s3 = inlined_call_operand.vmem [shape: bf16[9,128,128], index: 3, kind: input, shape index: {}]   ;;  %s9358_s4 = inlined_call_operand.vmem [shape: f32[1,128], index: 4, kind: input, shape index: {}]   ;;  %s9359_s5 = inlined_call_operand.vmem [shape: bf16[128,128], index: 5, kind: input, shape index: {}]   ;;  %s9360_s6 = inlined_call_operand.vmem [shape: f32[1,128], index: 6, kind: input, shape index: {}]   ;;  %s9361_s7 = inlined_call_operand.vmem [shape: bf16[128,128], index: 7, kind: input, shape index: {}]   ;;  %s9362_s8 = inlined_call_operand.vmem [shape: f32[1,128], index: 8, kind: input, shape index: {}]   ;;  %s9363_s9 = inlined_call_operand.vmem [shape: bf16[2,16,16,128], index: 9, kind: output, shape index: {}]  }
   0x1 LB: > { %s5278_s10 = sadd.s32 4294967295, %s7727_s30   ;;  %p5282_p0 = scmp.ge.s32.totalorder %s7727_s30, 1  ;;  %s7727_s30 = sphi %s7782_s30, %s19_s30  }
   0x2   : > { %p287_p1 = scmp.lt.s32.totalorder %s7727_s30, 3 }
   0x4   : > { %p288_p2 = pnand %p5282_p0, %p287_p1 }
   0x6   : > { %291 = sbr.rel (%p288_p2) target bundleno = 1228 (0x4cc), region = 56 }
   0xd   : > { %v7337_v0 = vld [vmem:[%s9355_s1] sm:$0xff]   ;;  %p323_p3 = scmp.lt.s32.totalorder %s5278_s10, 1  ;;  %v7338_v1 = vld [vmem:[%s9355_s1 + $0x8] sm:$0xff]   ;;  %v7339_v2 = vld [vmem:[%s9355_s1 + $0x10] sm:$0xff]   ;;  %v9364_v40 = vmov 0.0|0.0   ;;  %vm1020_vm0 = vcmask 1040384  }
   0xe   : > { %6398 = vmatprep.subr.bf16.mxu0 %v7337_v0  ;;  %v7340_v3 = vld [vmem:[%s9355_s1 + $0x18] sm:$0xff]   ;;  %v7341_v5 = vld [vmem:[%s9355_s1 + $0x20] sm:$0xff]   ;;  %v7342_v6 = vld [vmem:[%s9355_s1 + $0x28] sm:$0xff]   ;;  %vm7730_vm2 = vmmov 1   ;;  %vm1600_vm4 = vcmask 1046528  }
   0xf   : > { %s9449_s10 = smov (!%p323_p3, %s5278_s10), 1  ;;  %6399 = vmatpush3.bf16.msra.mxu0 %v7337_v0  ;;  %v7343_v7 = vld [vmem:[%s9355_s1 + $0x30] sm:$0xff]   ;;  %v7344_v8 = vld [vmem:[%s9355_s1 + $0x38] sm:$0xff]   ;;  %v7361_v24 = vld [vmem:[%s9357_s3 + $0x40] sm:$0xff]  }
  0x10   : > { %6400 = vmatprep.subr.bf16.mxu0 %v7338_v1  ;;  %s5981_s17 = sshll.u32 %s9449_s10, 7  ;;  %v7362_v25 = vld [vmem:[%s9357_s3 + $0xc0] sm:$0xff]   ;;  %v7363_v26 = vld [vmem:[%s9357_s3 + $0x48] sm:$0xff]   ;;  %v7365_v28 = vld [vmem:[%s9357_s3 + $0x50] sm:$0xff]  }
  0x11   : > { %s7807_s20 = scalar_lea.vmem %s9354_s0, %s5981_s17  ;;  %6590 = vmatprep.subr.bf16.mxu1 %v7362_v25  ;;  %v7364_v27 = vld [vmem:[%s9357_s3 + $0xc8] sm:$0xff]   ;;  %v7366_v29 = vld [vmem:[%s9357_s3 + $0xd0] sm:$0xff]   ;;  %v7367_v30 = vld [vmem:[%s9357_s3 + $0x58] sm:$0xff]   ;;  %s9305_s29 = scalar_lea.vmem %s9363_s9, %s5981_s17 }
  0x12   : > { %v7345_v4 = vld [vmem:[%s7807_s20] sm:$0xff]   ;;  %v7346_v9 = vld [vmem:[%s7807_s20 + $0x8] sm:$0xff]   ;;  %v7347_v10 = vld [vmem:[%s7807_s20 + $0x10] sm:$0xff]   ;;  %6591 = vmatpush3.bf16.msra.mxu1 %v7362_v25 }
  0x13   : > { %6401 = vmatpush3.bf16.msra.mxu0 %v7338_v1  ;;  %6414 = vmatprep.mubr.bf16.mxu0 %v7345_v4  ;;  %v7348_v11 = vld [vmem:[%s7807_s20 + $0x18] sm:$0xff]   ;;  %v7349_v12 = vld [vmem:[%s7807_s20 + $0x20] sm:$0xff]   ;;  %v7350_v13 = vld [vmem:[%s7807_s20 + $0x28] sm:$0xff]  }
  0x14   : > { %6402 = vmatprep.subr.bf16.mxu0 %v7339_v2  ;;  %v7351_v14 = vld [vmem:[%s7807_s20 + $0x30] sm:$0xff]   ;;  %v7352_v15 = vld [vmem:[%s7807_s20 + $0x38] sm:$0xff]   ;;  %v7353_v16 = vld [vmem:[%s7807_s20 + $0x40] sm:$0xff]   ;;  %6592 = vmatprep.subr.bf16.mxu1 %v7364_v27 }
  0x15   : > { %v7354_v17 = vld [vmem:[%s7807_s20 + $0x48] sm:$0xff]   ;;  %v7355_v18 = vld [vmem:[%s7807_s20 + $0x50] sm:$0xff]   ;;  %v7356_v19 = vld [vmem:[%s7807_s20 + $0x58] sm:$0xff]  }
  0x16   : > { %v7357_v20 = vld [vmem:[%s7807_s20 + $0x60] sm:$0xff]   ;;  %v7358_v21 = vld [vmem:[%s7807_s20 + $0x68] sm:$0xff]   ;;  %v7359_v22 = vld [vmem:[%s7807_s20 + $0x70] sm:$0xff]   ;;  %6593 = vmatpush3.bf16.msra.mxu1 %v7364_v27 }
  0x17   : > { %6403 = vmatpush3.bf16.msra.mxu0 %v7339_v2  ;;  %v7360_v23 = vld [vmem:[%s7807_s20 + $0x78] sm:$0xff]   ;;  %6594 = vmatprep.subr.bf16.mxu1 %v7366_v29  ;;  %v7369_v32 = vld [vmem:[%s9357_s3 + $0x60] sm:$0xff]   ;;  %v7371_v34 = vld [vmem:[%s9357_s3 + $0x68] sm:$0xff]  }
  0x18   : > { %6404 = vmatprep.subr.bf16.mxu0 %v7340_v3  ;;  %v7368_v31 = vld [vmem:[%s9357_s3 + $0xd8] sm:$0xff]   ;;  %v7370_v33 = vld [vmem:[%s9357_s3 + $0xe0] sm:$0xff]   ;;  %v7372_v35 = vld [vmem:[%s9357_s3 + $0xe8] sm:$0xff]  }
  0x19   : > { %v7373_v36 = vld [vmem:[%s9357_s3 + $0x70] sm:$0xff]   ;;  %v7375_v38 = vld [vmem:[%s9357_s3 + $0x78] sm:$0xff]   ;;  %v7892_v41 = vld [vmem:[%s9357_s3 + $0x100] sm:$0xff]  }
  0x1a   : > { %6595 = vmatpush3.bf16.msra.mxu1 %v7366_v29  ;;  %v7374_v37 = vld [vmem:[%s9357_s3 + $0xf0] sm:$0xff]   ;;  %v7376_v39 = vld [vmem:[%s9357_s3 + $0xf8] sm:$0xff]   ;;  %v7898_v42 = vld [vmem:[%s9357_s3] sm:$0xff]  }
  0x1b   : > { %6405 = vmatpush3.bf16.msra.mxu0 %v7340_v3  ;;  %6596 = vmatprep.subr.bf16.mxu1 %v7368_v31  ;;  %v7904_v43 = vld [vmem:[%s9356_s2] ss:$0 sm:$0xff]  ;;  %vm8040_vm1 = vmneg %vm1020_vm0 }
  0x1c   : > { %6406 = vmatprep.subr.bf16.mxu0 %v7341_v5  ;;  %vm8063_vm3 = vmpackc.low %vm7730_vm2, %vm8040_vm1 }
  0x1d   : > { %vm8691_vm5 = vmpackc.low %vm1600_vm4, %vm7730_vm2 }
  0x1e   : > { %6597 = vmatpush3.bf16.msra.mxu1 %v7368_v31 }
  0x1f   : > { %6407 = vmatpush3.bf16.msra.mxu0 %v7341_v5  ;;  %6598 = vmatprep.subr.bf16.mxu1 %v7370_v33 }
  0x20   : > { %6408 = vmatprep.subr.bf16.mxu0 %v7342_v6 }
  0x22   : > { %6599 = vmatpush3.bf16.msra.mxu1 %v7370_v33 }
  0x23   : > { %6409 = vmatpush3.bf16.msra.mxu0 %v7342_v6  ;;  %6600 = vmatprep.subr.bf16.mxu1 %v7372_v35 }
  0x24   : > { %6410 = vmatprep.subr.bf16.mxu0 %v7343_v7 }
  0x26   : > { %6601 = vmatpush3.bf16.msra.mxu1 %v7372_v35 }
  0x27   : > { %6411 = vmatpush3.bf16.msra.mxu0 %v7343_v7  ;;  %6602 = vmatprep.subr.bf16.mxu1 %v7374_v37 }
  0x28   : > { %6412 = vmatprep.subr.bf16.mxu0 %v7344_v8 }
  0x2a   : > { %6603 = vmatpush3.bf16.msra.mxu1 %v7374_v37 }
  0x2b   : > { %6413 = vmatpush3.bf16.msra.mxu0 %v7344_v8  ;;  %6604 = vmatprep.subr.bf16.mxu1 %v7376_v39 }
  0x2c   : > { %6446 = vmatprep.subr.bf16.mxu0 %v7361_v24 }
  0x2e   : > { %6415 = vmatmul.mubr.bf16.vlgmr.msra.gmra.mrb[0].mxu0 %v7346_v9  ;;  %6605 = vmatpush3.bf16.msra.mxu1 %v7376_v39 }
  0x2f   : > { %6418 = vmatprep.mubr.bf16.mxu0 %v7347_v10  ;;  %6447 = vmatpush3.bf16.msra.mxu0 %v7361_v24 }
  0x30   : > { %6448 = vmatprep.subr.bf16.mxu0 %v7363_v26  ;;  %6638 = vmatprep.subr.bf16.mxu1 %v7892_v41 }
  0x33   : > { %6449 = vmatpush3.bf16.msra.mxu0 %v7363_v26 }
  0x34   : > { %6450 = vmatprep.subr.bf16.mxu0 %v7365_v28 }
  0x36   : > { %6419 = vmatmul.mubr.bf16.gmra.mrb[4].mxu0 %v7348_v11 }
  0x37   : > { %6422 = vmatprep.mubr.bf16.mxu0 %v7349_v12  ;;  %6451 = vmatpush3.bf16.msra.mxu0 %v7365_v28 }
  0x38   : > { %6452 = vmatprep.subr.bf16.mxu0 %v7367_v30 }
  0x3b   : > { %6453 = vmatpush3.bf16.msra.mxu0 %v7367_v30 }
  0x3c   : > { %6454 = vmatprep.subr.bf16.mxu0 %v7369_v32 }
  0x3e   : > { %6423 = vmatmul.mubr.bf16.gmra.mrb[8].mxu0 %v7350_v13 }
  0x3f   : > { %6426 = vmatprep.mubr.bf16.mxu0 %v7351_v14  ;;  %6455 = vmatpush3.bf16.msra.mxu0 %v7369_v32 }
  0x40   : > { %6456 = vmatprep.subr.bf16.mxu0 %v7371_v34 }
  0x43   : > { %6457 = vmatpush3.bf16.msra.mxu0 %v7371_v34 }
  0x44   : > { %6458 = vmatprep.subr.bf16.mxu0 %v7373_v36 }
  0x46   : > { %6427 = vmatmul.mubr.bf16.gmra.mrb[12].mxu0 %v7352_v15 }
  0x47   : > { %6430 = vmatprep.mubr.bf16.mxu0 %v7353_v16  ;;  %6459 = vmatpush3.bf16.msra.mxu0 %v7373_v36 }
  0x48   : > { %6460 = vmatprep.subr.bf16.mxu0 %v7375_v38 }
  0x4b   : > { %6461 = vmatpush3.bf16.msra.mxu0 %v7375_v38 }
  0x4c   : > { %6494 = vmatprep.subr.bf16.mxu0 %v7898_v42 }
  0x4e   : > { %6431 = vmatmul.mubr.bf16.gmra.mrb[16].mxu0 %v7354_v17 }
  0x4f   : > { %6434 = vmatprep.mubr.bf16.mxu0 %v7355_v18 }
  0x56   : > { %6435 = vmatmul.mubr.bf16.gmra.mrb[20].mxu0 %v7356_v19 }
  0x57   : > { %6438 = vmatprep.mubr.bf16.mxu0 %v7357_v20 }
  0x5e   : > { %6439 = vmatmul.mubr.bf16.gmra.mrb[24].mxu0 %v7358_v21 }
  0x5f   : > { %6442 = vmatprep.mubr.bf16.mxu0 %v7359_v22 }
  0x66   : > { %6443 = vmatmul.mubr.bf16.gmra.mrb[28].mxu0 %v7360_v23 }
  0x67   : > { %6462 = vmatprep.mubr.bf16.mxu0 %v9364_v40 }
 0x101   : > { %v6416_v44 = vpop.f32.mrb[0].mxu0 }
 0x102   : > { %v7907_v45 = vadd.f32 %v6416_v44, %v7904_v43  ;;  %v567_v46 = vpop.f32.mrb[1].mxu0 }
 0x103   : > { %v7910_v47 = vadd.f32 %v7904_v43, %v567_v46  ;;  %v6417_v48 = vpop.f32.mrb[2].mxu0 }
 0x104   : > { %v5314_v49 = vmul.f32 -1.442695, %v7907_v45  ;;  %v7914_v50 = vadd.f32 %v6417_v48, %v7904_v43  ;;  %v570_v51 = vpop.f32.mrb[3].mxu0 }
 0x105   : > { %v5312_v52 = vmul.f32 -1.442695, %v7910_v47  ;;  %v7918_v53 = vadd.f32 %v7904_v43, %v570_v51 }
 0x106   : > { %7465 = vpow2.f32 %v5314_v49  ;;  %v5315_v54 = vmul.f32 -1.442695, %v7914_v50 }
 0x107   : > { %7467 = vpow2.f32 %v5312_v52  ;;  %v5313_v55 = vmul.f32 -1.442695, %v7918_v53 }
 0x108   : > { %7469 = vpow2.f32 %v5315_v54 }
 0x109   : > { %7471 = vpow2.f32 %v5313_v55  ;;  %v6420_v56 = vpop.f32.mrb[4].mxu0 }
 0x10a   : > { %v7923_v57 = vadd.f32 %v6420_v56, %v7904_v43  ;;  %v583_v58 = vpop.f32.mrb[5].mxu0 }
 0x10b   : > { %v7926_v59 = vadd.f32 %v7904_v43, %v583_v58  ;;  %v6421_v60 = vpop.f32.mrb[6].mxu0 }
 0x10c   : > { %v5318_v61 = vmul.f32 -1.442695, %v7923_v57  ;;  %v7930_v62 = vadd.f32 %v6421_v60, %v7904_v43  ;;  %v586_v63 = vpop.f32.mrb[7].mxu0 }
 0x10d   : > { %v5316_v0 = vmul.f32 -1.442695, %v7926_v59  ;;  %v7934_v1 = vadd.f32 %v7904_v43, %v586_v63 }
 0x10e   : > { %7473 = vpow2.f32 %v5318_v61  ;;  %v5319_v2 = vmul.f32 -1.442695, %v7930_v62 }
 0x10f   : > { %7475 = vpow2.f32 %v5316_v0  ;;  %v5317_v3 = vmul.f32 -1.442695, %v7934_v1 }
 0x110   : > { %v7466_v4 = vpop.eup %7465  ;;  %7477 = vpow2.f32 %v5319_v2 }
 0x111   : > { %v7468_v5 = vpop.eup %7467  ;;  %v792_v6 = vadd.f32 1.0, %v7466_v4  ;;  %7479 = vpow2.f32 %v5317_v3  ;;  %v6424_v7 = vpop.f32.mrb[8].mxu0 }
 0x112   : > { %v7470_v8 = vpop.eup %7469  ;;  %v790_v9 = vadd.f32 1.0, %v7468_v5  ;;  %v7939_v10 = vadd.f32 %v6424_v7, %v7904_v43  ;;  %v599_v11 = vpop.f32.mrb[9].mxu0 }
 0x113   : > { %v7472_v12 = vpop.eup %7471  ;;  %7481 = vrcp.f32 %v792_v6  ;;  %v793_v13 = vadd.f32 1.0, %v7470_v8  ;;  %v7942_v14 = vadd.f32 %v7904_v43, %v599_v11  ;;  %v6425_v15 = vpop.f32.mrb[10].mxu0 }
 0x114   : > { %7483 = vrcp.f32 %v790_v9  ;;  %v791_v16 = vadd.f32 1.0, %v7472_v12  ;;  %v5322_v17 = vmul.f32 -1.442695, %v7939_v10  ;;  %v7946_v18 = vadd.f32 %v6425_v15, %v7904_v43  ;;  %v602_v19 = vpop.f32.mrb[11].mxu0 }
 0x115   : > { %7485 = vrcp.f32 %v793_v13  ;;  %v5320_v20 = vmul.f32 -1.442695, %v7942_v14  ;;  %v7950_v21 = vadd.f32 %v7904_v43, %v602_v19 }
 0x116   : > { %7487 = vrcp.f32 %v791_v16  ;;  %v5323_v22 = vmul.f32 -1.442695, %v7946_v18 }
 0x117   : > { %7489 = vpow2.f32 %v5322_v17  ;;  %v5321_v23 = vmul.f32 -1.442695, %v7950_v21 }
 0x118   : > { %v7474_v24 = vpop.eup %7473  ;;  %7491 = vpow2.f32 %v5320_v20 }
 0x119   : > { %v7476_v25 = vpop.eup %7475  ;;  %v796_v26 = vadd.f32 1.0, %v7474_v24  ;;  %7493 = vpow2.f32 %v5323_v22  ;;  %v6428_v27 = vpop.f32.mrb[12].mxu0 }
 0x11a   : > { %v7478_v28 = vpop.eup %7477  ;;  %v794_v29 = vadd.f32 1.0, %v7476_v25  ;;  %7495 = vpow2.f32 %v5321_v23  ;;  %v7955_v30 = vadd.f32 %v6428_v27, %v7904_v43  ;;  %v615_v31 = vpop.f32.mrb[13].mxu0 }
 0x11b   : > { %v7480_v32 = vpop.eup %7479  ;;  %7497 = vrcp.f32 %v796_v26  ;;  %v797_v33 = vadd.f32 1.0, %v7478_v28  ;;  %v7958_v34 = vadd.f32 %v7904_v43, %v615_v31  ;;  %v6429_v35 = vpop.f32.mrb[14].mxu0 }
 0x11c   : > { %7499 = vrcp.f32 %v794_v29  ;;  %v795_v36 = vadd.f32 1.0, %v7480_v32  ;;  %v5326_v37 = vmul.f32 -1.442695, %v7955_v30  ;;  %v7962_v38 = vadd.f32 %v6429_v35, %v7904_v43  ;;  %v618_v39 = vpop.f32.mrb[15].mxu0 }
 0x11d   : > { %v7482_v44 = vpop.eup %7481  ;;  %7501 = vrcp.f32 %v797_v33  ;;  %v5324_v46 = vmul.f32 -1.442695, %v7958_v34  ;;  %v7966_v48 = vadd.f32 %v7904_v43, %v618_v39 }
 0x11e   : > { %v7484_v49 = vpop.eup %7483  ;;  %v7969_v51 = vmul.f32 %v7482_v44, %v7907_v45  ;;  %7503 = vrcp.f32 %v795_v36  ;;  %v5327_v52 = vmul.f32 -1.442695, %v7962_v38 }
 0x11f   : > { %v7486_v54 = vpop.eup %7485  ;;  %v7973_v55 = vmul.f32 %v7484_v49, %v7910_v47  ;;  %7505 = vpow2.f32 %v5326_v37  ;;  %v5325_v56 = vmul.f32 -1.442695, %v7966_v48  ;;  %v8236_v37 = vld [vmem:[%s9357_s3 + $0x80] sm:$0xff]  }
 0x120   : > { %v7488_v58 = vpop.eup %7487  ;;  %7507 = vpow2.f32 %v5324_v46  ;;  %v1027_v61 = vrot.slane %v7969_v51, 7  ;;  %v7983_v47 = vmul.f32 %v7486_v54, %v7914_v50  ;;  %v7383_v50 = vld [vmem:[%s9357_s3 + $0x8] sm:$0xff]  }
 0x121   : > { %v7490_v60 = vpop.eup %7489  ;;  %v7979_v45 = vmul.f32 %v7488_v58, %v7918_v53  ;;  %7509 = vpow2.f32 %v5327_v52  ;;  %v6432_v0 = vpop.f32.mrb[16].mxu0  ;;  %v1024_v11 = vrot.slane %v7973_v55, 7 }
 0x122   : > { %v7492_v2 = vpop.eup %7491  ;;  %v800_v4 = vadd.f32 1.0, %v7490_v60  ;;  %7511 = vpow2.f32 %v5325_v56  ;;  %v631_v5 = vpop.f32.mrb[17].mxu0  ;;  %v7990_v53 = vadd.f32 %v6432_v0, %v7904_v43  ;;  %v8019_v32 = vpack.c.bf16 %v7983_v47, %v7969_v51 }
 0x123   : > { %v7494_v6 = vpop.eup %7493  ;;  %v7987_v7 = vpack.c.bf16 %v7979_v45, %v7973_v55  ;;  %v798_v8 = vadd.f32 1.0, %v7492_v2  ;;  %v6433_v9 = vpop.f32.mrb[18].mxu0  ;;  %v7997_v15 = vadd.f32 %v7904_v43, %v631_v5  ;;  %v1028_v35 = vrot.slane %v7983_v47, 7 }
 0x124   : > { %v7496_v12 = vpop.eup %7495  ;;  %7513 = vrcp.f32 %v800_v4  ;;  %v801_v13 = vadd.f32 1.0, %v7494_v6  ;;  %v8000_v16 = vadd.f32 %v6433_v9, %v7904_v43  ;;  %v634_v17 = vpop.f32.mrb[19].mxu0  ;;  %v5330_v22 = vmul.f32 -1.442695, %v7990_v53  ;;  %v7386_v6 = vld [vmem:[%s9357_s3 + $0x18] sm:$0xff]  }
 0x125   : > { %v7498_v19 = vpop.eup %7497  ;;  %7515 = vrcp.f32 %v798_v8  ;;  %v799_v20 = vadd.f32 1.0, %v7496_v12  ;;  %v8004_v23 = vadd.f32 %v7904_v43, %v634_v17  ;;  %6463 = vmatmul.mubr.bf16.vlgmr.msra.gmra.mrb[32].mxu0 %v7987_v7  ;;  %v5328_v26 = vmul.f32 -1.442695, %v7997_v15 }
 0x126   : > { %v7500_v24 = vpop.eup %7499  ;;  %v8008_v25 = vmul.f32 %v7498_v19, %v7923_v57  ;;  %7517 = vrcp.f32 %v801_v13  ;;  %v5331_v27 = vmul.f32 -1.442695, %v8000_v16  ;;  %6495 = vmatpush3.bf16.msra.mxu0 %v7898_v42  ;;  %v7384_v57 = vld [vmem:[%s9357_s3 + $0x10] sm:$0xff]   ;;  %6466 = vmatprep.mubr.bf16.mxu0 %v8019_v32  ;;  %v1029_v17 = vsel %vm1020_vm0, %v1027_v61, %v1028_v35 }
 0x127   : > { %v7502_v28 = vpop.eup %7501  ;;  %v8014_v29 = vmul.f32 %v7500_v24, %v7926_v59  ;;  %7519 = vrcp.f32 %v799_v20  ;;  %v5329_v31 = vmul.f32 -1.442695, %v8004_v23  ;;  %6496 = vmatprep.subr.bf16.mxu0 %v7383_v50  ;;  %v7429_v24 = vld [vmem:[%s9357_s3 + $0x220] sm:$0xff]  }
 0x128   : > { %v7504_v33 = vpop.eup %7503  ;;  %v8027_v59 = vmul.f32 %v7502_v28, %v7930_v62  ;;  %7521 = vpow2.f32 %v5330_v22  ;;  %v1033_v39 = vrot.slane %v8008_v25, 7 }
 0x129   : > { %v7506_v36 = vpop.eup %7505  ;;  %7523 = vpow2.f32 %v5328_v26  ;;  %v6436_v46 = vpop.f32.mrb[20].mxu0  ;;  %v1030_v52 = vrot.slane %v8014_v29, 7  ;;  %v8037_v0 = vmul.f32 %v7504_v33, %v7934_v1 }
 0x12a   : > { %v7508_v49 = vpop.eup %7507  ;;  %v804_v56 = vadd.f32 1.0, %v7506_v36  ;;  %7525 = vpow2.f32 %v5331_v27  ;;  %v647_v62 = vpop.f32.mrb[21].mxu0  ;;  %6497 = vmatpush3.bf16.msra.mxu0 %v7383_v50  ;;  %v1034_v60 = vrot.slane %v8027_v59, 7  ;;  %v1025_v50 = vrot.slane %v7979_v45, 7  ;;  %v7387_v36 = vld [vmem:[%s9357_s3 + $0x20] sm:$0xff]  }
 0x12b   : > { %v7510_v58 = vpop.eup %7509  ;;  %v802_v2 = vadd.f32 1.0, %v7508_v49  ;;  %7527 = vpow2.f32 %v5329_v31  ;;  %v6437_v5 = vpop.f32.mrb[22].mxu0  ;;  %6498 = vmatprep.subr.bf16.mxu0 %v7384_v57  ;;  %v8049_v1 = vadd.f32 %v6436_v46, %v7904_v43  ;;  %v8055_v19 = vadd.f32 %v7904_v43, %v647_v62 }
 0x12c   : > { %v7512_v8 = vpop.eup %7511  ;;  %7529 = vrcp.f32 %v804_v56  ;;  %v805_v9 = vadd.f32 1.0, %v7510_v58  ;;  %v650_v12 = vpop.f32.mrb[23].mxu0  ;;  %v1026_v22 = vsel %vm1020_vm0, %v1024_v11, %v1025_v50  ;;  %v8070_v27 = vpack.c.bf16 %v1029_v17, %v1027_v61 }
 0x12d   : > { %7531 = vrcp.f32 %v802_v2  ;;  %v803_v13 = vadd.f32 1.0, %v7512_v8  ;;  %v5334_v26 = vmul.f32 -1.442695, %v8049_v1  ;;  %v8077_v33 = vpack.c.bf16 %v1026_v22, %v1024_v11  ;;  %v7378_v11 = vld [vmem:[%s9357_s3 + $0x108] sm:$0xff]  }
 0x12e   : > { %v7514_v20 = vpop.eup %7513  ;;  %7533 = vrcp.f32 %v805_v9  ;;  %6499 = vmatpush3.bf16.msra.mxu0 %v7384_v57  ;;  %v5332_v35 = vmul.f32 -1.442695, %v8055_v19  ;;  %v8090_v57 = vadd.f32 %v7904_v43, %v650_v12  ;;  %v1031_v62 = vrot.slane %v8037_v0, 7 }
 0x12f   : > { %v7516_v28 = vpop.eup %7515  ;;  %v8073_v31 = vmul.f32 %v7514_v20, %v7939_v10  ;;  %7535 = vrcp.f32 %v803_v13  ;;  %6500 = vmatprep.subr.bf16.mxu0 %v7386_v6  ;;  %v8087_v10 = vadd.f32 %v6437_v5, %v7904_v43  ;;  %6606 = vmatprep.mubr.msk.bf16.mxu1 %vm8063_vm3, %v8077_v33 }
 0x130   : > { %v7518_v46 = vpop.eup %7517  ;;  %v8084_v61 = vmul.f32 %v7516_v28, %v7942_v14  ;;  %7537 = vpow2.f32 %v5334_v26  ;;  %6607 = vmatmul.mubr.msk.bf16.vlgmr.msra.gmra.mrb[0].mxu1 %vm8063_vm3, %v8070_v27 }
 0x131   : > { %v7520_v49 = vpop.eup %7519  ;;  %v8098_v58 = vmul.f32 %v7518_v46, %v7946_v18  ;;  %7539 = vpow2.f32 %v5332_v35  ;;  %v6440_v14 = vpop.f32.mrb[24].mxu0  ;;  %v1039_v5 = vrot.slane %v8073_v31, 7  ;;  %v5335_v18 = vmul.f32 -1.442695, %v8087_v10  ;;  %6639 = vmatpush3.bf16.msra.mxu1 %v7892_v41 }
 0x132   : > { %v7522_v2 = vpop.eup %7521  ;;  %v8110_v9 = vpop.f32.mrb[25].mxu0  ;;  %6501 = vmatpush3.bf16.msra.mxu0 %v7386_v6  ;;  %v1036_v12 = vrot.slane %v8084_v61, 7  ;;  %v8115_v17 = vmul.f32 %v7520_v49, %v7950_v21  ;;  %v5333_v6 = vmul.f32 -1.442695, %v8090_v57  ;;  %6640 = vmatprep.subr.bf16.mxu1 %v7378_v11  ;;  %v7379_v21 = vld [vmem:[%s9357_s3 + $0x110] sm:$0xff]  }
 0x133   : > { %v7524_v50 = vpop.eup %7523  ;;  %v808_v20 = vadd.f32 1.0, %v7522_v2  ;;  %v8118_v22 = vpop.f32.mrb[26].mxu0  ;;  %6502 = vmatprep.subr.bf16.mxu0 %v7387_v36  ;;  %v1040_v28 = vrot.slane %v8098_v58, 7  ;;  %7541 = vpow2.f32 %v5335_v18  ;;  %v8129_v2 = vpack.c.bf16 %v8037_v0, %v8014_v29  ;;  %v7389_v18 = vld [vmem:[%s9357_s3 + $0x28] sm:$0xff]  }
 0x134   : > { %v7526_v26 = vpop.eup %7525  ;;  %v806_v35 = vadd.f32 1.0, %v7524_v50  ;;  %v8122_v46 = vpop.f32.mrb[27].mxu0  ;;  %v8133_v50 = vpack.c.bf16 %v8027_v59, %v8008_v25  ;;  %v8200_v4 = vadd.f32 %v8118_v22, %v7904_v43  ;;  %v7392_v22 = vld [vmem:[%s9357_s3 + $0x38] sm:$0xff]  }
 0x135   : > { %v7528_v49 = vpop.eup %7527  ;;  %7543 = vrcp.f32 %v808_v20  ;;  %v809_v41 = vadd.f32 1.0, %v7526_v26  ;;  %v1032_v20 = vsel %vm1020_vm0, %v1030_v52, %v1031_v62  ;;  %v8142_v26 = vadd.f32 %v6440_v14, %v7904_v43  ;;  %6467 = vmatmul.mubr.bf16.gmra.mrb[36].mxu0 %v8129_v2  ;;  %6641 = vmatpush3.bf16.msra.mxu1 %v7378_v11 }
 0x136   : > { %v7530_v40 = vpop.eup %7529  ;;  %7545 = vrcp.f32 %v806_v35  ;;  %v807_v8 = vadd.f32 1.0, %v7528_v49  ;;  %6503 = vmatpush3.bf16.msra.mxu0 %v7387_v36  ;;  %v8150_v56 = vpack.c.bf16 %v1032_v20, %v1030_v52  ;;  %v1035_v62 = vsel %vm1020_vm0, %v1033_v39, %v1034_v60  ;;  %v7390_v36 = vld [vmem:[%s9357_s3 + $0x30] sm:$0xff]   ;;  %6470 = vmatprep.mubr.bf16.mxu0 %v8133_v50  ;;  %v7380_v60 = vld [vmem:[%s9357_s3 + $0x118] sm:$0xff]  }
 0x137   : > { %v7532_v13 = vpop.eup %7531  ;;  %v8145_v44 = vmul.f32 %v7530_v40, %v7955_v30  ;;  %7547 = vrcp.f32 %v809_v41  ;;  %v5338_v52 = vmul.f32 -1.442695, %v8142_v26  ;;  %v8167_v14 = vpack.c.bf16 %v1035_v62, %v1033_v39  ;;  %6642 = vmatprep.subr.bf16.mxu1 %v7379_v21  ;;  %6504 = vmatprep.subr.bf16.mxu0 %v7389_v18 }
 0x138   : > { %v7534_v40 = vpop.eup %7533  ;;  %v8161_v30 = vmul.f32 %v7532_v13, %v7958_v34  ;;  %7549 = vrcp.f32 %v807_v8  ;;  %v1037_v34 = vrot.slane %v8115_v17, 7  ;;  %6610 = vmatprep.mubr.msk.bf16.mxu1 %vm8063_vm3, %v8150_v56  ;;  %v8190_v49 = vadd.f32 %v7904_v43, %v8110_v9  ;;  %v7382_v9 = vld [vmem:[%s9357_s3 + $0x120] sm:$0xff]  }
 0x139   : > { %v7536_v11 = vpop.eup %7535  ;;  %v8175_v8 = vmul.f32 %v7534_v40, %v7962_v38  ;;  %7551 = vpow2.f32 %v5333_v6  ;;  %v6444_v39 = vpop.f32.mrb[28].mxu0  ;;  %6611 = vmatmul.mubr.msk.bf16.gmra.mrb[4].mxu1 %vm8063_vm3, %v8167_v14 }
 0x13a   : > { %v7538_v13 = vpop.eup %7537  ;;  %7553 = vpow2.f32 %v5338_v52  ;;  %v679_v38 = vpop.f32.mrb[29].mxu0  ;;  %6505 = vmatpush3.bf16.msra.mxu0 %v7389_v18  ;;  %v1042_v62 = vrot.slane %v8161_v30, 7  ;;  %6643 = vmatpush3.bf16.msra.mxu1 %v7379_v21  ;;  %v8196_v20 = vmul.f32 %v7536_v11, %v7966_v48  ;;  %v5336_v21 = vmul.f32 -1.442695, %v8190_v49 }
 0x13b   : > { %v7540_v6 = vpop.eup %7539  ;;  %v812_v35 = vadd.f32 1.0, %v7538_v13  ;;  %v8192_v54 = vpop.f32.mrb[30].mxu0  ;;  %6506 = vmatprep.subr.bf16.mxu0 %v7390_v36  ;;  %v1046_v52 = vrot.slane %v8175_v8, 7  ;;  %6644 = vmatprep.subr.bf16.mxu1 %v7380_v60  ;;  %v8210_v13 = vadd.f32 %v7904_v43, %v8122_v46  ;;  %v8214_v48 = vpack.c.bf16 %v8115_v17, %v8084_v61 }
 0x13c   : > { %v810_v18 = vadd.f32 1.0, %v7540_v6  ;;  %v8202_v40 = vpop.f32.mrb[31].mxu0  ;;  %v5339_v6 = vmul.f32 -1.442695, %v8200_v4  ;;  %v1038_v46 = vsel %vm1020_vm0, %v1036_v12, %v1037_v34  ;;  %v8243_v34 = vadd.f32 %v6444_v39, %v7904_v43 }
 0x13d   : > { %7555 = vrcp.f32 %v812_v35  ;;  %9388 = vst [vmem:[#allocation3_spill] sm:$0xff] %v8214_v48  ;;  %v7542_v11 = vpop.eup %7541  ;;  %v8222_v35 = vpack.c.bf16 %v8098_v58, %v8073_v31  ;;  %v5337_v3 = vmul.f32 -1.442695, %v8210_v13  ;;  %6471 = vmatmul.mubr.bf16.gmra.mrb[40].mxu0 %v8214_v48 }
 0x13e   : > { %7557 = vrcp.f32 %v810_v18  ;;  %6507 = vmatpush3.bf16.msra.mxu0 %v7390_v36  ;;  %v813_v42 = vadd.f32 1.0, %v7542_v11  ;;  %v8231_v18 = vpack.c.bf16 %v1038_v46, %v1036_v12  ;;  %6645 = vmatpush3.bf16.msra.mxu1 %v7380_v60  ;;  %v1041_v12 = vsel %vm1020_vm0, %v1039_v5, %v1040_v28  ;;  %v7385_v28 = vld [vmem:[%s9357_s3 + $0x128] sm:$0xff]  }
 0x13f   : > { %9389 = vst [vmem:[#allocation4_spill] sm:$0xff] %v8222_v35  ;;  %v7544_v63 = vpop.eup %7543  ;;  %7559 = vpow2.f32 %v5336_v21  ;;  %6474 = vmatprep.mubr.bf16.mxu0 %v8222_v35  ;;  %6646 = vmatprep.subr.bf16.mxu1 %v7382_v9  ;;  %v5342_v46 = vmul.f32 -1.442695, %v8243_v34 }
 0x140   : > { %9390 = vst [vmem:[#allocation5_spill] sm:$0xff] %v8231_v18  ;;  %v7546_v41 = vpop.eup %7545  ;;  %v8239_v36 = vmul.f32 %v7544_v63, %v7990_v53  ;;  %7561 = vpow2.f32 %v5339_v6  ;;  %6614 = vmatprep.mubr.msk.bf16.mxu1 %vm8063_vm3, %v8231_v18  ;;  %v8258_v63 = vpack.c.bf16 %v1041_v12, %v1039_v5  ;;  %v8261_v53 = vadd.f32 %v7904_v43, %v679_v38 }
 0x141   : > { %v7548_v60 = vpop.eup %7547  ;;  %v8251_v21 = vmul.f32 %v7546_v41, %v7997_v15  ;;  %7563 = vrcp.f32 %v813_v42  ;;  %6508 = vmatprep.subr.bf16.mxu0 %v7392_v22  ;;  %v1043_v42 = vrot.slane %v8196_v20, 7  ;;  %v8288_v5 = vadd.f32 %v8192_v54, %v7904_v43 }
 0x142   : > { %9391 = vst [vmem:[#allocation6_spill] sm:$0xff] %v8258_v63  ;;  %v7550_v39 = vpop.eup %7549  ;;  %7565 = vpow2.f32 %v5337_v3  ;;  %6509 = vmatpush3.bf16.msra.mxu0 %v7392_v22  ;;  %6615 = vmatmul.mubr.msk.bf16.gmra.mrb[8].mxu1 %vm8063_vm3, %v8258_v63  ;;  %v8281_v22 = vmul.f32 %v7548_v60, %v8000_v16  ;;  %v5340_v38 = vmul.f32 -1.442695, %v8261_v53  ;;  %v8292_v16 = vadd.f32 %v7904_v43, %v8202_v40  ;;  %v7388_v60 = vld [vmem:[%s9357_s3 + $0x130] sm:$0xff]  }
 0x143   : > { %v7552_v11 = vpop.eup %7551  ;;  %v8272_v6 = vmul.f32 %v7550_v39, %v8004_v23  ;;  %6542 = vmatprep.subr.bf16.mxu0 %v8236_v37  ;;  %v1048_v3 = vrot.slane %v8251_v21, 7  ;;  %6647 = vmatpush3.bf16.msra.mxu1 %v7382_v9  ;;  %7567 = vpow2.f32 %v5342_v46  ;;  %v8296_v9 = vpack.c.bf16 %v8196_v20, %v8161_v30 }
 0x144   : > { %v7554_v12 = vpop.eup %7553  ;;  %v811_v15 = vadd.f32 1.0, %v7552_v11  ;;  %6648 = vmatprep.subr.bf16.mxu1 %v7385_v28  ;;  %v1044_v54 = vsel %vm1020_vm0, %v1042_v62, %v1043_v42  ;;  %v9394_v43 = vrot.slane %v8145_v44, 7  ;;  %v5341_v23 = vmul.f32 -1.442695, %v8292_v16 }
 0x145   : > { %v1049_v39 = vrot.slane %v8272_v6, 7  ;;  %v816_v41 = vadd.f32 1.0, %v7554_v12  ;;  %9392 = vst [vmem:[#allocation7_spill] sm:$0xff] %v8296_v9  ;;  %6475 = vmatmul.mubr.bf16.gmra.mrb[44].mxu0 %v8296_v9  ;;  %v1052_v42 = vrot.slane %v8281_v22, 7 }
 0x146   : > { %7569 = vrcp.f32 %v811_v15  ;;  %v8303_v15 = vpack.c.bf16 %v8175_v8, %v8145_v44  ;;  %v1047_v40 = vsel %vm1020_vm0, %v9394_v43, %v1046_v52  ;;  %v8323_v52 = vpack.c.bf16 %v1044_v54, %v1042_v62  ;;  %v7391_v62 = vld [vmem:[%s9357_s3 + $0x138] sm:$0xff]  }
 0x147   : > { %v7556_v11 = vpop.eup %7555  ;;  %7571 = vrcp.f32 %v816_v41  ;;  %v5343_v41 = vmul.f32 -1.442695, %v8288_v5  ;;  %6649 = vmatpush3.bf16.msra.mxu1 %v7385_v28 }
 0x148   : > { %9393 = vst [vmem:[#allocation8_spill] sm:$0xff] %v8303_v15  ;;  %v7558_v46 = vpop.eup %7557  ;;  %v8314_v12 = vmul.f32 %v7556_v11, %v8049_v1  ;;  %7573 = vpow2.f32 %v5340_v38  ;;  %6478 = vmatprep.mubr.bf16.mxu0 %v8303_v15  ;;  %9395 = vst [vmem:[#allocation9_spill] sm:$0xff] %v8323_v52  ;;  %v9396_v1 = vmov %v9394_v43  ;;  %v8331_v38 = vpack.c.bf16 %v8272_v6, %v8251_v21 }
 0x149   : > { %v7560_v35 = vpop.eup %7559  ;;  %v8327_v11 = vpack.c.bf16 %v1047_v40, %v9396_v1  ;;  %7575 = vpow2.f32 %v5343_v41  ;;  %6650 = vmatprep.subr.bf16.mxu1 %v7388_v60  ;;  %v8340_v1 = vmul.f32 %v7558_v46, %v8055_v19  ;;  %6618 = vmatprep.mubr.msk.bf16.mxu1 %vm8063_vm3, %v8323_v52  ;;  %v8353_v41 = vpack.c.bf16 %v8281_v22, %v8239_v36 }
 0x14a   : > { %v7562_v43 = vpop.eup %7561  ;;  %v814_v63 = vadd.f32 1.0, %v7560_v35  ;;  %v1057_v40 = vrot.slane %v8314_v12, 7  ;;  %7577 = vpow2.f32 %v5341_v23  ;;  %v1050_v19 = vsel %vm1020_vm0, %v1048_v3, %v1049_v39 }
 0x14b   : > { %9397 = vst [vmem:[#allocation10_spill] sm:$0xff] %v8327_v11  ;;  %v7564_v54 = vpop.eup %7563  ;;  %v817_v15 = vadd.f32 1.0, %v7562_v43  ;;  %6619 = vmatmul.mubr.msk.bf16.gmra.mrb[12].mxu1 %vm8063_vm3, %v8327_v11  ;;  %v8356_v46 = vpack.c.bf16 %v1050_v19, %v1048_v3  ;;  %v9399_v43 = vrot.slane %v8239_v36, 7  ;;  %v8374_v3 = vld [vmem:[%s9357_s3 + $0x140] sm:$0xff]   ;;  %v9403_v19 = vrot.slane %v7983_v47, 1 }
 0x14c   : > { %v7566_v28 = vpop.eup %7565  ;;  %v8346_v35 = vmul.f32 %v7564_v54, %v8087_v10  ;;  %7579 = vrcp.f32 %v814_v63  ;;  %6651 = vmatpush3.bf16.msra.mxu1 %v7388_v60  ;;  %v1054_v60 = vrot.slane %v8340_v1, 7  ;;  %v9408_v47 = vrot.slane %v8037_v0, 1 }
 0x14d   : > { %7581 = vrcp.f32 %v817_v15  ;;  %v815_v23 = vadd.f32 1.0, %v7566_v28  ;;  %9398 = vst [vmem:[#allocation11_spill] sm:$0xff] %v8356_v46  ;;  %v1053_v10 = vsel %vm1020_vm0, %v9399_v43, %v1052_v42  ;;  %v9400_v9 = vmov %v9399_v43  ;;  %6652 = vmatprep.subr.bf16.mxu1 %v7391_v62  ;;  %v7568_v15 = vpop.eup %7567  ;;  %6622 = vmatprep.mubr.msk.bf16.mxu1 %vm8063_vm3, %v8356_v46 }
 0x14e   : > { %v1058_v54 = vrot.slane %v8346_v35, 7  ;;  %v8365_v11 = vpack.c.bf16 %v1053_v10, %v9400_v9  ;;  %v8369_v39 = vpack.c.bf16 %v8346_v35, %v8314_v12  ;;  %v9401_v9 = vrot.slane %v7979_v45, 1  ;;  %6479 = vmatmul.mubr.bf16.gmra.mrb[48].mxu0 %v8331_v38 }
 0x14f   : > { %7583 = vrcp.f32 %v815_v23  ;;  %v9402_v42 = vrot.slane %v7973_v55, 1  ;;  %v9404_v43 = vrot.slane %v7969_v51, 1  ;;  %v820_v52 = vadd.f32 1.0, %v7568_v15  ;;  %6482 = vmatprep.mubr.bf16.mxu0 %v8353_v41 }
 0x150   : > { %v7570_v63 = vpop.eup %7569  ;;  %v1059_v23 = vsel %vm1020_vm0, %v1057_v40, %v1058_v54  ;;  %v9405_v46 = vmov %v9401_v9  ;;  %v9406_v55 = vmov %v9403_v19  ;;  %6653 = vmatpush3.bf16.msra.mxu1 %v7391_v62  ;;  %v9409_v54 = vrot.slane %v8014_v29, 1 }
 0x151   : > { %v1606_v28 = vsel %vm1600_vm4, %v9402_v42, %v9401_v9  ;;  %v1609_v10 = vsel %vm1600_vm4, %v9404_v43, %v9403_v19  ;;  %v7572_v9 = vpop.eup %7571  ;;  %v1634_v42 = vrot.slane %v8340_v1, 1  ;;  %v8403_v19 = vmul.f32 %v7570_v63, %v8090_v57  ;;  %6686 = vmatprep.subr.bf16.mxu1 %v8374_v3 }
 0x152   : > { %v8394_v18 = vpack.c.bf16 %v9405_v46, %v1606_v28  ;;  %v8398_v48 = vpack.c.bf16 %v9406_v55, %v1609_v10  ;;  %v8406_v15 = vpack.c.bf16 %v1059_v23, %v1057_v40  ;;  %v7574_v45 = vpop.eup %7573  ;;  %v8409_v46 = vmul.f32 %v7572_v9, %v8142_v26 }
 0x153   : > { %7585 = vrcp.f32 %v820_v52  ;;  %v1612_v28 = vsel %vm1600_vm4, %v9409_v54, %v9408_v47  ;;  %v9410_v57 = vrot.slane %v8027_v59, 1  ;;  %v9411_v63 = vrot.slane %v8008_v25, 1  ;;  %v7576_v10 = vpop.eup %7575  ;;  %6623 = vmatmul.mubr.msk.bf16.gmra.mrb[16].mxu1 %vm8063_vm3, %v8365_v11 }
 0x154   : > { %9407 = vst [vmem:[#allocation12_spill] sm:$0xff] %v8398_v48  ;;  %v1055_v62 = vrot.slane %v8403_v19, 7  ;;  %v1635_v26 = vrot.slane %v8403_v19, 1  ;;  %v818_v43 = vadd.f32 1.0, %v7574_v45  ;;  %v8426_v52 = vpack.c.bf16 %v8403_v19, %v8340_v1 }
 0x155   : > { %v1615_v40 = vsel %vm1600_vm4, %v9411_v63, %v9410_v57  ;;  %v1063_v29 = vrot.slane %v8409_v46, 7  ;;  %v1643_v23 = vrot.slane %v8409_v46, 1  ;;  %v9412_v25 = vmov %v9408_v47  ;;  %v7578_v47 = vpop.eup %7577 }
 0x156   : > { %v8435_v55 = vpack.c.bf16 %v9412_v25, %v1612_v28  ;;  %v9413_v9 = vmov %v9410_v57  ;;  %7587 = vrcp.f32 %v818_v43  ;;  %v821_v1 = vadd.f32 1.0, %v7576_v10  ;;  %v7580_v51 = vpop.eup %7579  ;;  %6483 = vmatmul.mubr.bf16.gmra.mrb[52].mxu0 %v8426_v52 }
 0x157   : > { %v8439_v45 = vpack.c.bf16 %v9413_v9, %v1615_v40  ;;  %v1056_v19 = vsel %vm1020_vm0, %v1054_v60, %v1055_v62  ;;  %v9414_v54 = vrot.slane %v8115_v17, 1  ;;  %v9415_v57 = vrot.slane %v8084_v61, 1  ;;  %v7582_v10 = vpop.eup %7581  ;;  %6486 = vmatprep.mubr.bf16.mxu0 %v8369_v39 }
 0x158   : > { %v819_v48 = vadd.f32 1.0, %v7578_v47  ;;  %v8447_v0 = vpack.c.bf16 %v1056_v19, %v1054_v60  ;;  %v9417_v40 = vrot.slane %v8098_v58, 1  ;;  %v9418_v43 = vrot.slane %v8073_v31, 1 }
 0x159   : > { %v1618_v63 = vsel %vm1600_vm4, %v9415_v57, %v9414_v54  ;;  %v9416_v28 = vmov %v9414_v54  ;;  %v910_v25 = vmul.f32 %v7580_v51, %v8190_v49  ;;  %7589 = vrcp.f32 %v821_v1  ;;  %v7584_v1 = vpop.eup %7583 }
 0x15a   : > { %v8451_v59 = vpack.c.bf16 %v9416_v28, %v1618_v63  ;;  %v1621_v62 = vsel %vm1600_vm4, %v9418_v43, %v9417_v40  ;;  %v9419_v61 = vmov %v9417_v40  ;;  %v9420_v60 = vrot.slane %v8196_v20, 1  ;;  %6626 = vmatprep.mubr.msk.bf16.mxu1 %vm8063_vm3, %v8447_v0 }
 0x15b   : > { %v8461_v9 = vpack.c.bf16 %v9419_v61, %v1621_v62  ;;  %v9421_v17 = vrot.slane %v8161_v30, 1  ;;  %v913_v19 = vmul.f32 %v7582_v10, %v8200_v4  ;;  %7591 = vrcp.f32 %v819_v48  ;;  %6627 = vmatmul.mubr.msk.bf16.gmra.mrb[20].mxu1 %vm8063_vm3, %v8406_v15 }
 0x15c   : > { %v9422_v31 = vmov %v9420_v60  ;;  %v9423_v49 = vrot.slane %v8175_v8, 1  ;;  %v9424_v51 = vrot.slane %v8145_v44, 1  ;;  %v1060_v54 = vrot.slane %v910_v25, 7 }
 0x15d   : > { %v1624_v47 = vsel %vm1600_vm4, %v9421_v17, %v9420_v60  ;;  %v1640_v4 = vrot.slane %v910_v25, 1  ;;  %v9426_v63 = vrot.slane %v8272_v6, 1  ;;  %v9427_v20 = vrot.slane %v8251_v21, 1 }
 0x15e   : > { %v8475_v58 = vpack.c.bf16 %v9422_v31, %v1624_v47  ;;  %v1627_v30 = vsel %vm1600_vm4, %v9424_v51, %v9423_v49  ;;  %v9425_v48 = vmov %v9423_v49  ;;  %v1064_v40 = vrot.slane %v913_v19, 7 }
 0x15f   : > { %v8485_v57 = vpack.c.bf16 %v9425_v48, %v1627_v30  ;;  %v1630_v28 = vsel %vm1600_vm4, %v9427_v20, %v9426_v63  ;;  %v1644_v43 = vrot.slane %v913_v19, 1  ;;  %v911_v44 = vmul.f32 %v7584_v1, %v8210_v13 }
 0x160   : > { %v8494_v62 = vpack.c.bf16 %v913_v19, %v8409_v46  ;;  %v9428_v10 = vmov %v9426_v63  ;;  %v9429_v8 = vrot.slane %v8281_v22, 1  ;;  %v9430_v60 = vrot.slane %v8239_v36, 1  ;;  %v7586_v46 = vpop.eup %7585 }
 0x161   : > { %v8498_v61 = vpack.c.bf16 %v9428_v10, %v1630_v28  ;;  %v1636_v21 = vsel %vm1600_vm4, %v1634_v42, %v1635_v26  ;;  %v9431_v47 = vrot.slane %v8346_v35, 1  ;;  %v9432_v31 = vrot.slane %v8314_v12, 1  ;;  %v7588_v28 = vpop.eup %7587 }
 0x162   : > { %v1633_v17 = vsel %vm1600_vm4, %v9430_v60, %v9429_v8  ;;  %v1061_v19 = vrot.slane %v911_v44, 7  ;;  %v1641_v49 = vrot.slane %v911_v44, 1  ;;  %v8514_v6 = vpack.c.bf16 %v911_v44, %v910_v25 }
 0x163   : > { %v1639_v13 = vsel %vm1600_vm4, %v9432_v31, %v9431_v47  ;;  %v1065_v36 = vsel %vm1020_vm0, %v1063_v29, %v1064_v40  ;;  %v9433_v42 = vmov %v9429_v8  ;;  %v8523_v12 = vpack.c.bf16 %v1635_v26, %v1636_v21  ;;  %v7590_v8 = vpop.eup %7589 }
 0x164   : > { %v8517_v51 = vpack.c.bf16 %v1065_v36, %v1063_v29  ;;  %v8521_v30 = vpack.c.bf16 %v9433_v42, %v1633_v17  ;;  %v1062_v1 = vsel %vm1020_vm0, %v1060_v54, %v1061_v19  ;;  %v9434_v48 = vmov %v9431_v47  ;;  %6487 = vmatmul.mubr.bf16.gmra.mrb[56].mxu0 %v8514_v6 }
 0x165   : > { %v8528_v63 = vpack.c.bf16 %v9434_v48, %v1639_v13  ;;  %v1642_v20 = vsel %vm1600_vm4, %v1640_v4, %v1641_v49  ;;  %v1645_v25 = vsel %vm1600_vm4, %v1643_v23, %v1644_v43  ;;  %v916_v29 = vmul.f32 %v7586_v46, %v8243_v34  ;;  %6490 = vmatprep.mubr.bf16.mxu0 %v8494_v62  ;;  %v7592_v34 = vpop.eup %7591 }
 0x166   : > { %v8533_v40 = vpack.c.bf16 %v1062_v1, %v1060_v54  ;;  %v7731_v22 = vmov 0.0   ;;  %v8536_v26 = vpack.c.bf16 %v1641_v49, %v1642_v20  ;;  %v914_v10 = vmul.f32 %v7588_v28, %v8261_v53  ;;  %v7394_v28 = vld [vmem:[%s9357_s3 + $0x148] sm:$0xff]  }
 0x167   : > { %v1021_v44 = vrot.slane %v7731_v22, 7  ;;  %v8540_v35 = vpack.c.bf16 %v1644_v43, %v1645_v25  ;;  %v917_v23 = vmul.f32 %v7590_v8, %v8288_v5  ;;  %v2080_v54 = vrot.slane %v916_v29, 7  ;;  %v7399_v25 = vld [vmem:[%s9357_s3 + $0x88] sm:$0xff]  }
 0x168   : > { %6630 = vmatprep.mubr.msk.bf16.mxu1 %vm8063_vm3, %v8533_v40  ;;  %v2724_v4 = vrot.slane %v916_v29, 1  ;;  %v915_v60 = vmul.f32 %v7592_v34, %v8292_v16  ;;  %v1066_v53 = vrot.slane %v914_v10, 7  ;;  %v1646_v31 = vrot.slane %v914_v10, 1  ;;  %v7405_v8 = vld [vmem:[%s9357_s3 + $0xa8] sm:$0xff]   ;;  %v9436_v34 = vld [vmem:[#allocation5_spill] sm:$0xff] }
 0x169   : > { %v8548_v17 = vpack.c.bf16 %v1021_v44, %v1021_v44  ;;  %v2081_v21 = vrot.slane %v917_v23, 7  ;;  %v2725_v43 = vrot.slane %v917_v23, 1  ;;  %6631 = vmatmul.mubr.msk.bf16.gmra.mrb[24].mxu1 %vm8063_vm3, %v8517_v51  ;;  %v8553_v47 = vpack.c.bf16 %v917_v23, %v916_v29  ;;  %v7403_v29 = vld [vmem:[%s9357_s3 + $0xa0] sm:$0xff]   ;;  %v9437_v23 = vld [vmem:[#allocation6_spill] sm:$0xff] }
 0x16a   : > { %v1067_v13 = vrot.slane %v915_v60, 7  ;;  %v1647_v46 = vrot.slane %v915_v60, 1  ;;  %v8555_v19 = vpack.c.bf16 %v915_v60, %v914_v10  ;;  %v9435_v44 = vld [vmem:[#allocation3_spill] sm:$0xff]  ;;  %v9438_v60 = vld [vmem:[#allocation4_spill] sm:$0xff] }
 0x16b   : > { %v2082_v5 = vsel %vm1020_vm0, %v2080_v54, %v2081_v21  ;;  %v2726_v16 = vsel %vm1600_vm4, %v2724_v4, %v2725_v43  ;;  %v7398_v10 = vld [vmem:[%s9357_s3 + $0x160] sm:$0xff]   ;;  %v7406_v4 = vld [vmem:[%s9357_s3 + $0xb0] sm:$0xff]  }
 0x16c   : > { %v1068_v49 = vsel %vm1020_vm0, %v1066_v53, %v1067_v13  ;;  %v8560_v36 = vpack.c.bf16 %v2082_v5, %v2080_v54  ;;  %v1648_v42 = vsel %vm1600_vm4, %v1646_v31, %v1647_v46  ;;  %v8563_v1 = vpack.c.bf16 %v2725_v43, %v2726_v16  ;;  %6491 = vmatmul.mubr.bf16.gmra.mrb[60].mxu0 %v8555_v19  ;;  %v7401_v54 = vld [vmem:[%s9357_s3 + $0x168] sm:$0xff]   ;;  %v7404_v21 = vld [vmem:[%s9357_s3 + $0x170] sm:$0xff]   ;;  %v7408_v43 = vld [vmem:[%s9357_s3 + $0xb8] sm:$0xff]  }
 0x16d   : > { %v8566_v48 = vpack.c.bf16 %v1068_v49, %v1066_v53  ;;  %v8568_v20 = vpack.c.bf16 %v1647_v46, %v1648_v42  ;;  %6510 = vmatprep.mubr.msk.bf16.mxu0 %vm8063_vm3, %v8548_v17  ;;  %v9439_v53 = vld [vmem:[#allocation7_spill] sm:$0xff]  ;;  %v9440_v31 = vld [vmem:[#allocation9_spill] sm:$0xff]  ;;  %v9441_v13 = vld [vmem:[#allocation10_spill] sm:$0xff]  ;;  %v1601_v42 = vrot.slane %v7731_v22, 1 }
 0x16e   : > { %v7407_v46 = vld [vmem:[%s9357_s3 + $0x178] sm:$0xff]   ;;  %v9442_v5 = vld [vmem:[#allocation8_spill] sm:$0xff]  ;;  %v7409_v16 = vld [vmem:[%s9357_s3 + $0x180] sm:$0xff]  }
 0x16f   : > { %6634 = vmatprep.mubr.msk.bf16.mxu1 %vm8063_vm3, %v8566_v48  ;;  %v9443_v49 = vld [vmem:[#allocation11_spill] sm:$0xff]  ;;  %v9446_v22 = vld [vmem:[#allocation12_spill] sm:$0xff] }
 0x171   : > { %6635 = vmatmul.mubr.msk.bf16.gmra.mrb[28].mxu1 %vm8063_vm3, %v8560_v36 }
 0x172   : > { %6654 = vmatprep.mubr.bf16.mxu1 %v7987_v7  ;;  %v7400_v7 = vld [vmem:[%s9357_s3 + $0x90] sm:$0xff]  }
 0x174   : > { %6511 = vmatmul.mubr.msk.bf16.vlgmr.msra.gmra.mrb[32].mxu0 %vm8063_vm3, %v8077_v33  ;;  %v7402_v33 = vld [vmem:[%s9357_s3 + $0x98] sm:$0xff]  }
 0x175   : > { %6514 = vmatprep.mubr.msk.bf16.mxu0 %vm8063_vm3, %v8070_v27  ;;  %6543 = vmatpush3.bf16.msra.mxu0 %v8236_v37  ;;  %v7395_v37 = vld [vmem:[%s9357_s3 + $0x150] sm:$0xff]  }
 0x176   : > { %6544 = vmatprep.subr.bf16.mxu0 %v7399_v25 }
 0x179   : > { %6655 = vmatmul.mubr.bf16.vlgmr.msra.gmra.mrb[0].mxu1 %v8019_v32  ;;  %6545 = vmatpush3.bf16.msra.mxu0 %v7399_v25  ;;  %v8684_v25 = vpack.c.bf16 %v1601_v42, %v1601_v42  ;;  %v7437_v42 = vld [vmem:[%s9359_s5 + $0x20] sm:$0xff]  }
 0x17a   : > { %6687 = vmatpush3.bf16.msra.mxu1 %v8374_v3  ;;  %6658 = vmatprep.mubr.bf16.mxu1 %v8129_v2  ;;  %v7396_v3 = vld [vmem:[%s9357_s3 + $0x158] sm:$0xff]  }
 0x17b   : > { %6688 = vmatprep.subr.bf16.mxu1 %v7394_v28  ;;  %6546 = vmatprep.subr.bf16.mxu0 %v7400_v7 }
 0x17c   : > { %6515 = vmatmul.mubr.msk.bf16.gmra.mrb[36].mxu0 %vm8063_vm3, %v8150_v56 }
 0x17d   : > { %6518 = vmatprep.mubr.msk.bf16.mxu0 %vm8063_vm3, %v8167_v14  ;;  %6547 = vmatpush3.bf16.msra.mxu0 %v7400_v7  ;;  %v7410_v7 = vld [vmem:[%s9357_s3 + $0x188] sm:$0xff]  }
 0x17e   : > { %6689 = vmatpush3.bf16.msra.mxu1 %v7394_v28  ;;  %6548 = vmatprep.subr.bf16.mxu0 %v7402_v33  ;;  %v7439_v28 = vld [vmem:[%s9359_s5 + $0x30] sm:$0xff]  }
 0x17f   : > { %6690 = vmatprep.subr.bf16.mxu1 %v7395_v37 }
 0x181   : > { %6659 = vmatmul.mubr.bf16.gmra.mrb[4].mxu1 %v8133_v50  ;;  %6549 = vmatpush3.bf16.msra.mxu0 %v7402_v33  ;;  %v7413_v33 = vld [vmem:[%s9357_s3 + $0x1a0] sm:$0xff]  }
 0x182   : > { %6662 = vmatprep.mubr.bf16.mxu1 %v9435_v44  ;;  %6691 = vmatpush3.bf16.msra.mxu1 %v7395_v37  ;;  %v7412_v37 = vld [vmem:[%s9357_s3 + $0x198] sm:$0xff]  }
 0x183   : > { %6692 = vmatprep.subr.bf16.mxu1 %v7396_v3  ;;  %6550 = vmatprep.subr.bf16.mxu0 %v7403_v29 }
 0x184   : > { %6519 = vmatmul.mubr.msk.bf16.gmra.mrb[40].mxu0 %vm8063_vm3, %v9436_v34 }
 0x185   : > { %6522 = vmatprep.mubr.msk.bf16.mxu0 %vm8063_vm3, %v9437_v23  ;;  %6551 = vmatpush3.bf16.msra.mxu0 %v7403_v29  ;;  %v7415_v29 = vld [vmem:[%s9357_s3 + $0x1b0] sm:$0xff]  }
 0x186   : > { %6693 = vmatpush3.bf16.msra.mxu1 %v7396_v3  ;;  %6552 = vmatprep.subr.bf16.mxu0 %v7405_v8  ;;  %v7414_v3 = vld [vmem:[%s9357_s3 + $0x1a8] sm:$0xff]  }
 0x187   : > { %6694 = vmatprep.subr.bf16.mxu1 %v7398_v10 }
 0x189   : > { %6663 = vmatmul.mubr.bf16.gmra.mrb[8].mxu1 %v9438_v60  ;;  %6553 = vmatpush3.bf16.msra.mxu0 %v7405_v8  ;;  %v7417_v8 = vld [vmem:[%s9357_s3 + $0x1c0] sm:$0xff]  }
 0x18a   : > { %6666 = vmatprep.mubr.bf16.mxu1 %v9439_v53  ;;  %6695 = vmatpush3.bf16.msra.mxu1 %v7398_v10  ;;  %v7416_v10 = vld [vmem:[%s9357_s3 + $0x1b8] sm:$0xff]  }
 0x18b   : > { %6696 = vmatprep.subr.bf16.mxu1 %v7401_v54  ;;  %6554 = vmatprep.subr.bf16.mxu0 %v7406_v4 }
 0x18c   : > { %6523 = vmatmul.mubr.msk.bf16.gmra.mrb[44].mxu0 %vm8063_vm3, %v9440_v31 }
 0x18d   : > { %6526 = vmatprep.mubr.msk.bf16.mxu0 %vm8063_vm3, %v9441_v13  ;;  %6555 = vmatpush3.bf16.msra.mxu0 %v7406_v4  ;;  %v7419_v4 = vld [vmem:[%s9357_s3 + $0x1d0] sm:$0xff]  }
 0x18e   : > { %6697 = vmatpush3.bf16.msra.mxu1 %v7401_v54  ;;  %6556 = vmatprep.subr.bf16.mxu0 %v7408_v43  ;;  %v7418_v54 = vld [vmem:[%s9357_s3 + $0x1c8] sm:$0xff]  }
 0x18f   : > { %6698 = vmatprep.subr.bf16.mxu1 %v7404_v21 }
 0x191   : > { %6667 = vmatmul.mubr.bf16.gmra.mrb[12].mxu1 %v9442_v5  ;;  %6557 = vmatpush3.bf16.msra.mxu0 %v7408_v43 }
 0x192   : > { %6670 = vmatprep.mubr.bf16.mxu1 %v8331_v38  ;;  %6699 = vmatpush3.bf16.msra.mxu1 %v7404_v21  ;;  %v7425_v21 = vld [vmem:[%s9357_s3 + $0x200] sm:$0xff]  }
 0x193   : > { %6700 = vmatprep.subr.bf16.mxu1 %v7407_v46 }
 0x194   : > { %6527 = vmatmul.mubr.msk.bf16.gmra.mrb[48].mxu0 %vm8063_vm3, %v9443_v49 }
 0x195   : > { %6530 = vmatprep.mubr.msk.bf16.mxu0 %vm8063_vm3, %v8365_v11 }
 0x196   : > { %6701 = vmatpush3.bf16.msra.mxu1 %v7407_v46 }
 0x197   : > { %6734 = vmatprep.subr.bf16.mxu1 %v7409_v16 }
 0x199   : > { %6671 = vmatmul.mubr.bf16.gmra.mrb[16].mxu1 %v8353_v41 }
 0x19a   : > { %6674 = vmatprep.mubr.bf16.mxu1 %v8426_v52 }
 0x19c   : > { %6531 = vmatmul.mubr.msk.bf16.gmra.mrb[52].mxu0 %vm8063_vm3, %v8447_v0 }
 0x19d   : > { %6534 = vmatprep.mubr.msk.bf16.mxu0 %vm8063_vm3, %v8406_v15 }
 0x1a1   : > { %6675 = vmatmul.mubr.bf16.gmra.mrb[20].mxu1 %v8369_v39 }
 0x1a2   : > { %6678 = vmatprep.mubr.bf16.mxu1 %v8514_v6 }
 0x1a4   : > { %6535 = vmatmul.mubr.msk.bf16.gmra.mrb[56].mxu0 %vm8063_vm3, %v8533_v40 }
 0x1a5   : > { %6538 = vmatprep.mubr.msk.bf16.mxu0 %vm8063_vm3, %v8517_v51 }
 0x1a9   : > { %6679 = vmatmul.mubr.bf16.gmra.mrb[24].mxu1 %v8494_v62 }
 0x1aa   : > { %6682 = vmatprep.mubr.bf16.mxu1 %v8555_v19 }
 0x1ac   : > { %6539 = vmatmul.mubr.msk.bf16.gmra.mrb[60].mxu0 %vm8063_vm3, %v8566_v48 }
 0x1ad   : > { %6558 = vmatprep.mubr.msk.bf16.mxu0 %vm8691_vm5, %v8684_v25 }
 0x1b1   : > { %6683 = vmatmul.mubr.bf16.gmra.mrb[28].mxu1 %v8553_v47 }
 0x1b2   : > { %6702 = vmatprep.mubr.msk.bf16.mxu1 %vm8691_vm5, %v8394_v18 }
 0x1b4   : > { %6559 = vmatmul.mubr.msk.bf16.vlgmr.msra.gmra.mrb[32].mxu0 %vm8691_vm5, %v8394_v18  ;;  %v7411_v18 = vld [vmem:[%s9357_s3 + $0x190] sm:$0xff]  }
 0x1b5   : > { %6562 = vmatprep.mubr.msk.bf16.mxu0 %vm8691_vm5, %v9446_v22 }
 0x1b9   : > { %6703 = vmatmul.mubr.msk.bf16.vlgmr.msra.gmra.mrb[0].mxu1 %vm8691_vm5, %v9446_v22 }
 0x1ba   : > { %6735 = vmatpush3.bf16.msra.mxu1 %v7409_v16  ;;  %6706 = vmatprep.mubr.msk.bf16.mxu1 %vm8691_vm5, %v8435_v55 }
 0x1bb   : > { %6736 = vmatprep.subr.bf16.mxu1 %v7410_v7 }
 0x1bc   : > { %6563 = vmatmul.mubr.msk.bf16.gmra.mrb[36].mxu0 %vm8691_vm5, %v8435_v55 }
 0x1bd   : > { %6566 = vmatprep.mubr.msk.bf16.mxu0 %vm8691_vm5, %v8439_v45 }
 0x1be   : > { %6737 = vmatpush3.bf16.msra.mxu1 %v7410_v7  ;;  %v9056_v7 = vld [vmem:[%s9361_s7] sm:$0xff]  }
 0x1bf   : > { %6738 = vmatprep.subr.bf16.mxu1 %v7411_v18 }
 0x1c1   : > { %6707 = vmatmul.mubr.msk.bf16.gmra.mrb[4].mxu1 %vm8691_vm5, %v8439_v45 }
 0x1c2   : > { %6710 = vmatprep.mubr.msk.bf16.mxu1 %vm8691_vm5, %v8451_v59  ;;  %6739 = vmatpush3.bf16.msra.mxu1 %v7411_v18 }
 0x1c3   : > { %6740 = vmatprep.subr.bf16.mxu1 %v7412_v37 }
 0x1c4   : > { %6567 = vmatmul.mubr.msk.bf16.gmra.mrb[40].mxu0 %vm8691_vm5, %v8451_v59 }
 0x1c5   : > { %6570 = vmatprep.mubr.msk.bf16.mxu0 %vm8691_vm5, %v8461_v9 }
 0x1c6   : > { %6741 = vmatpush3.bf16.msra.mxu1 %v7412_v37  ;;  %v9062_v37 = vld [vmem:[%s9358_s4] ss:$0 sm:$0xff] }
 0x1c7   : > { %6742 = vmatprep.subr.bf16.mxu1 %v7413_v33 }
 0x1c9   : > { %6711 = vmatmul.mubr.msk.bf16.gmra.mrb[8].mxu1 %vm8691_vm5, %v8461_v9 }
 0x1ca   : > { %6714 = vmatprep.mubr.msk.bf16.mxu1 %vm8691_vm5, %v8475_v58  ;;  %6743 = vmatpush3.bf16.msra.mxu1 %v7413_v33 }
 0x1cb   : > { %6744 = vmatprep.subr.bf16.mxu1 %v7414_v3 }
 0x1cc   : > { %6571 = vmatmul.mubr.msk.bf16.gmra.mrb[44].mxu0 %vm8691_vm5, %v8475_v58 }
 0x1cd   : > { %6574 = vmatprep.mubr.msk.bf16.mxu0 %vm8691_vm5, %v8485_v57 }
 0x1ce   : > { %6745 = vmatpush3.bf16.msra.mxu1 %v7414_v3 }
 0x1cf   : > { %6746 = vmatprep.subr.bf16.mxu1 %v7415_v29 }
 0x1d1   : > { %6715 = vmatmul.mubr.msk.bf16.gmra.mrb[12].mxu1 %vm8691_vm5, %v8485_v57 }
 0x1d2   : > { %6718 = vmatprep.mubr.msk.bf16.mxu1 %vm8691_vm5, %v8498_v61  ;;  %6747 = vmatpush3.bf16.msra.mxu1 %v7415_v29 }
 0x1d3   : > { %6748 = vmatprep.subr.bf16.mxu1 %v7416_v10 }
 0x1d4   : > { %6575 = vmatmul.mubr.msk.bf16.gmra.mrb[48].mxu0 %vm8691_vm5, %v8498_v61 }
 0x1d5   : > { %6578 = vmatprep.mubr.msk.bf16.mxu0 %vm8691_vm5, %v8521_v30 }
 0x1d6   : > { %6749 = vmatpush3.bf16.msra.mxu1 %v7416_v10 }
 0x1d7   : > { %6782 = vmatprep.subr.bf16.mxu1 %v7417_v8 }
 0x1d9   : > { %6719 = vmatmul.mubr.msk.bf16.gmra.mrb[16].mxu1 %vm8691_vm5, %v8521_v30 }
 0x1da   : > { %6722 = vmatprep.mubr.msk.bf16.mxu1 %vm8691_vm5, %v8523_v12 }
 0x1dc   : > { %6579 = vmatmul.mubr.msk.bf16.gmra.mrb[52].mxu0 %vm8691_vm5, %v8523_v12 }
 0x1dd   : > { %6582 = vmatprep.mubr.msk.bf16.mxu0 %vm8691_vm5, %v8528_v63 }
 0x1e1   : > { %6723 = vmatmul.mubr.msk.bf16.gmra.mrb[20].mxu1 %vm8691_vm5, %v8528_v63 }
 0x1e2   : > { %6726 = vmatprep.mubr.msk.bf16.mxu1 %vm8691_vm5, %v8536_v26 }
 0x1e4   : > { %6583 = vmatmul.mubr.msk.bf16.gmra.mrb[56].mxu0 %vm8691_vm5, %v8536_v26 }
 0x1e5   : > { %6586 = vmatprep.mubr.msk.bf16.mxu0 %vm8691_vm5, %v8540_v35 }
 0x1e9   : > { %6727 = vmatmul.mubr.msk.bf16.gmra.mrb[24].mxu1 %vm8691_vm5, %v8540_v35 }
 0x1ea   : > { %6730 = vmatprep.mubr.msk.bf16.mxu1 %vm8691_vm5, %v8568_v20 }
 0x1ec   : > { %6587 = vmatmul.mubr.msk.bf16.gmra.mrb[60].mxu0 %vm8691_vm5, %v8568_v20 }
 0x1f1   : > { %6731 = vmatmul.mubr.msk.bf16.gmra.mrb[28].mxu1 %vm8691_vm5, %v8563_v1 }
 0x1f2   : > { %6750 = vmatprep.mubr.msk.bf16.mxu1 %vm8063_vm3, %v8070_v27  ;;  %v7420_v27 = vld [vmem:[%s9357_s3 + $0x1d8] sm:$0xff]  }
 0x1f9   : > { %6751 = vmatmul.mubr.msk.bf16.vlgmr.msra.gmra.mrb[0].mxu1 %vm8063_vm3, %v8150_v56  ;;  %v7421_v56 = vld [vmem:[%s9357_s3 + $0x1e0] sm:$0xff]  }
 0x1fa   : > { %6783 = vmatpush3.bf16.msra.mxu1 %v7417_v8  ;;  %6754 = vmatprep.mubr.msk.bf16.mxu1 %vm8063_vm3, %v8167_v14  ;;  %v7422_v14 = vld [vmem:[%s9357_s3 + $0x1e8] sm:$0xff]  }
 0x1fb   : > { %6784 = vmatprep.subr.bf16.mxu1 %v7418_v54 }
 0x1fe   : > { %6785 = vmatpush3.bf16.msra.mxu1 %v7418_v54 }
 0x1ff   : > { %6786 = vmatprep.subr.bf16.mxu1 %v7419_v4 }
 0x201   : > { %6755 = vmatmul.mubr.msk.bf16.gmra.mrb[4].mxu1 %vm8063_vm3, %v9436_v34  ;;  %v7423_v34 = vld [vmem:[%s9357_s3 + $0x1f0] sm:$0xff]  }
 0x202   : > { %6758 = vmatprep.mubr.msk.bf16.mxu1 %vm8063_vm3, %v9437_v23  ;;  %6787 = vmatpush3.bf16.msra.mxu1 %v7419_v4  ;;  %v7424_v23 = vld [vmem:[%s9357_s3 + $0x1f8] sm:$0xff]  }
 0x203   : > { %6788 = vmatprep.subr.bf16.mxu1 %v7420_v27 }
 0x206   : > { %6789 = vmatpush3.bf16.msra.mxu1 %v7420_v27 }
 0x207   : > { %6790 = vmatprep.subr.bf16.mxu1 %v7421_v56 }
 0x209   : > { %6759 = vmatmul.mubr.msk.bf16.gmra.mrb[8].mxu1 %vm8063_vm3, %v9440_v31 }
 0x20a   : > { %6762 = vmatprep.mubr.msk.bf16.mxu1 %vm8063_vm3, %v9441_v13  ;;  %6791 = vmatpush3.bf16.msra.mxu1 %v7421_v56 }
 0x20b   : > { %6792 = vmatprep.subr.bf16.mxu1 %v7422_v14 }
 0x20e   : > { %6793 = vmatpush3.bf16.msra.mxu1 %v7422_v14 }
 0x20f   : > { %6794 = vmatprep.subr.bf16.mxu1 %v7423_v34 }
 0x211   : > { %6763 = vmatmul.mubr.msk.bf16.gmra.mrb[12].mxu1 %vm8063_vm3, %v9443_v49 }
 0x212   : > { %6766 = vmatprep.mubr.msk.bf16.mxu1 %vm8063_vm3, %v8365_v11  ;;  %6795 = vmatpush3.bf16.msra.mxu1 %v7423_v34  ;;  %v7426_v11 = vld [vmem:[%s9357_s3 + $0x208] sm:$0xff]  }
 0x213   : > { %6796 = vmatprep.subr.bf16.mxu1 %v7424_v23 }
 0x216   : > { %6797 = vmatpush3.bf16.msra.mxu1 %v7424_v23 }
 0x217   : > { %6830 = vmatprep.subr.bf16.mxu1 %v7425_v21 }
 0x219   : > { %6767 = vmatmul.mubr.msk.bf16.gmra.mrb[16].mxu1 %vm8063_vm3, %v8447_v0  ;;  %v7430_v0 = vld [vmem:[%s9357_s3 + $0x228] sm:$0xff]  }
 0x21a   : > { %6770 = vmatprep.mubr.msk.bf16.mxu1 %vm8063_vm3, %v8406_v15  ;;  %v7427_v15 = vld [vmem:[%s9357_s3 + $0x210] sm:$0xff]  }
 0x221   : > { %6771 = vmatmul.mubr.msk.bf16.gmra.mrb[20].mxu1 %vm8063_vm3, %v8533_v40  ;;  %v7431_v40 = vld [vmem:[%s9357_s3 + $0x230] sm:$0xff]  }
 0x222   : > { %6774 = vmatprep.mubr.msk.bf16.mxu1 %vm8063_vm3, %v8517_v51  ;;  %v7435_v51 = vld [vmem:[%s9359_s5 + $0x10] sm:$0xff]  }
 0x229   : > { %6775 = vmatmul.mubr.msk.bf16.gmra.mrb[24].mxu1 %vm8063_vm3, %v8566_v48  ;;  %v9447_v48 = vmov 0.0|0.0  }
 0x22a   : > { %6778 = vmatprep.mubr.msk.bf16.mxu1 %vm8063_vm3, %v8560_v36  ;;  %v7432_v36 = vld [vmem:[%s9357_s3 + $0x238] sm:$0xff]  }
 0x231   : > { %6779 = vmatmul.mubr.msk.bf16.gmra.mrb[28].mxu1 %vm8063_vm3, %v8548_v17  ;;  %v7436_v17 = vld [vmem:[%s9359_s5 + $0x18] sm:$0xff]  }
 0x232   : > { %6798 = vmatprep.mubr.bf16.mxu1 %v8019_v32  ;;  %v7428_v32 = vld [vmem:[%s9357_s3 + $0x218] sm:$0xff]  }
 0x239   : > { %6799 = vmatmul.mubr.bf16.vlgmr.msra.gmra.mrb[0].mxu1 %v8129_v2  ;;  %v7433_v2 = vld [vmem:[%s9359_s5] sm:$0xff]  }
 0x23a   : > { %6831 = vmatpush3.bf16.msra.mxu1 %v7425_v21  ;;  %6802 = vmatprep.mubr.bf16.mxu1 %v8133_v50  ;;  %v7434_v50 = vld [vmem:[%s9359_s5 + $0x8] sm:$0xff]  }
 0x23b   : > { %6832 = vmatprep.subr.bf16.mxu1 %v7426_v11  ;;  %6878 = vmatprep.subr.bf16.mxu0 %v7433_v2 }
 0x23c   : > { %6879 = vmatpush3.bf16.msra.mxu0 %v7433_v2 }
 0x23d   : > { %6880 = vmatprep.subr.bf16.mxu0 %v7434_v50 }
 0x23e   : > { %6833 = vmatpush3.bf16.msra.mxu1 %v7426_v11 }
 0x23f   : > { %6834 = vmatprep.subr.bf16.mxu1 %v7427_v15 }
 0x240   : > { %6881 = vmatpush3.bf16.msra.mxu0 %v7434_v50 }
 0x241   : > { %6803 = vmatmul.mubr.bf16.gmra.mrb[4].mxu1 %v9435_v44  ;;  %6882 = vmatprep.subr.bf16.mxu0 %v7435_v51 }
 0x242   : > { %6806 = vmatprep.mubr.bf16.mxu1 %v9438_v60  ;;  %6835 = vmatpush3.bf16.msra.mxu1 %v7427_v15 }
 0x243   : > { %6836 = vmatprep.subr.bf16.mxu1 %v7428_v32 }
 0x244   : > { %6883 = vmatpush3.bf16.msra.mxu0 %v7435_v51 }
 0x245   : > { %6884 = vmatprep.subr.bf16.mxu0 %v7436_v17 }
 0x246   : > { %6837 = vmatpush3.bf16.msra.mxu1 %v7428_v32 }
 0x247   : > { %6838 = vmatprep.subr.bf16.mxu1 %v7429_v24 }
 0x248   : > { %6885 = vmatpush3.bf16.msra.mxu0 %v7436_v17 }
 0x249   : > { %6807 = vmatmul.mubr.bf16.gmra.mrb[8].mxu1 %v9439_v53  ;;  %6886 = vmatprep.subr.bf16.mxu0 %v7437_v42 }
 0x24a   : > { %6810 = vmatprep.mubr.bf16.mxu1 %v9442_v5  ;;  %6839 = vmatpush3.bf16.msra.mxu1 %v7429_v24 }
 0x24b   : > { %6840 = vmatprep.subr.bf16.mxu1 %v7430_v0 }
 0x24c   : > { %6887 = vmatpush3.bf16.msra.mxu0 %v7437_v42 }
 0x24e   : > { %6841 = vmatpush3.bf16.msra.mxu1 %v7430_v0 }
 0x24f   : > { %6842 = vmatprep.subr.bf16.mxu1 %v7431_v40 }
 0x251   : > { %6811 = vmatmul.mubr.bf16.gmra.mrb[12].mxu1 %v8331_v38 }
 0x252   : > { %6814 = vmatprep.mubr.bf16.mxu1 %v8353_v41  ;;  %6843 = vmatpush3.bf16.msra.mxu1 %v7431_v40 }
 0x253   : > { %6844 = vmatprep.subr.bf16.mxu1 %v7432_v36 }
 0x256   : > { %6845 = vmatpush3.bf16.msra.mxu1 %v7432_v36 }
 0x259   : > { %6815 = vmatmul.mubr.bf16.gmra.mrb[16].mxu1 %v8426_v52 }
 0x25a   : > { %6818 = vmatprep.mubr.bf16.mxu1 %v8369_v39 }
 0x261   : > { %6819 = vmatmul.mubr.bf16.gmra.mrb[20].mxu1 %v8514_v6 }
 0x262   : > { %6822 = vmatprep.mubr.bf16.mxu1 %v8494_v62 }
 0x269   : > { %6823 = vmatmul.mubr.bf16.gmra.mrb[24].mxu1 %v8555_v19 }
 0x26a   : > { %6826 = vmatprep.mubr.bf16.mxu1 %v8553_v47 }
 0x271   : > { %6827 = vmatmul.mubr.bf16.gmra.mrb[28].mxu1 %v9447_v48 }
 0x272   : > { %6846 = vmatprep.mubr.msk.bf16.mxu1 %vm8691_vm5, %v9446_v22  ;;  %v7440_v22 = vld [vmem:[%s9359_s5 + $0x38] sm:$0xff]  }
 0x279   : > { %6847 = vmatmul.mubr.msk.bf16.vlgmr.msra.gmra.mrb[0].mxu1 %vm8691_vm5, %v8435_v55 }
 0x27a   : > { %6850 = vmatprep.mubr.msk.bf16.mxu1 %vm8691_vm5, %v8439_v45 }
 0x281   : > { %6851 = vmatmul.mubr.msk.bf16.gmra.mrb[4].mxu1 %vm8691_vm5, %v8451_v59 }
 0x282   : > { %6854 = vmatprep.mubr.msk.bf16.mxu1 %vm8691_vm5, %v8461_v9 }
 0x287   : > { %v6560_v38 = vpop.f32.mrb[32].mxu0 }
 0x288   : > { %v1812_v41 = vpop.f32.mrb[33].mxu0 }
 0x289   : > { %6855 = vmatmul.mubr.msk.bf16.gmra.mrb[8].mxu1 %vm8691_vm5, %v8475_v58  ;;  %v6561_v39 = vpop.f32.mrb[34].mxu0 }
 0x28a   : > { %6858 = vmatprep.mubr.msk.bf16.mxu1 %vm8691_vm5, %v8485_v57  ;;  %v1815_v52 = vpop.f32.mrb[35].mxu0 }
 0x28f   : > { %v8958_v55 = vpop.f32.mrb[36].mxu0 }
 0x290   : > { %v8960_v45 = vpop.f32.mrb[37].mxu0 }
 0x291   : > { %6859 = vmatmul.mubr.msk.bf16.gmra.mrb[12].mxu1 %vm8691_vm5, %v8498_v61  ;;  %v8965_v59 = vpop.f32.mrb[38].mxu0 }
 0x292   : > { %6862 = vmatprep.mubr.msk.bf16.mxu1 %vm8691_vm5, %v8521_v30  ;;  %v8970_v9 = vpop.f32.mrb[39].mxu0 }
 0x297   : > { %v8972_v58 = vpop.f32.mrb[40].mxu0 }
 0x298   : > { %v8974_v57 = vpop.f32.mrb[41].mxu0 }
 0x299   : > { %6863 = vmatmul.mubr.msk.bf16.gmra.mrb[16].mxu1 %vm8691_vm5, %v8523_v12  ;;  %v8979_v62 = vpop.f32.mrb[42].mxu0 }
 0x29a   : > { %6866 = vmatprep.mubr.msk.bf16.mxu1 %vm8691_vm5, %v8528_v63  ;;  %v8984_v61 = vpop.f32.mrb[43].mxu0 }
 0x29f   : > { %v8986_v6 = vpop.f32.mrb[44].mxu0 }
 0x2a0   : > { %v8988_v30 = vpop.f32.mrb[45].mxu0 }
 0x2a1   : > { %6867 = vmatmul.mubr.msk.bf16.gmra.mrb[20].mxu1 %vm8691_vm5, %v8536_v26  ;;  %v8993_v47 = vpop.f32.mrb[46].mxu0 }
 0x2a2   : > { %6870 = vmatprep.mubr.msk.bf16.mxu1 %vm8691_vm5, %v8540_v35  ;;  %v8998_v12 = vpop.f32.mrb[47].mxu0 }
 0x2a7   : > { %v9000_v19 = vpop.f32.mrb[48].mxu0 }
 0x2a8   : > { %v9002_v63 = vpop.f32.mrb[49].mxu0 }
 0x2a9   : > { %6871 = vmatmul.mubr.msk.bf16.gmra.mrb[24].mxu1 %vm8691_vm5, %v8568_v20  ;;  %v9007_v44 = vpop.f32.mrb[50].mxu0 }
 0x2aa   : > { %6874 = vmatprep.mubr.msk.bf16.mxu1 %vm8691_vm5, %v8563_v1  ;;  %v9012_v26 = vpop.f32.mrb[51].mxu0 }
 0x2af   : > { %v9014_v60 = vpop.f32.mrb[52].mxu0 }
 0x2b0   : > { %v9016_v35 = vpop.f32.mrb[53].mxu0 }
 0x2b1   : > { %6875 = vmatmul.mubr.msk.bf16.gmra.mrb[28].mxu1 %vm8691_vm5, %v8684_v25  ;;  %v9021_v53 = vpop.f32.mrb[54].mxu0  ;;  %v7438_v25 = vld [vmem:[%s9359_s5 + $0x28] sm:$0xff]  }
 0x2b2   : > { %v9023_v43 = vpop.f32.mrb[55].mxu0  ;;  %6888 = vmatprep.subr.bf16.mxu0 %v7438_v25 }
 0x2b3   : > { %6889 = vmatpush3.bf16.msra.mxu0 %v7438_v25 }
 0x2b4   : > { %6890 = vmatprep.subr.bf16.mxu0 %v7439_v28 }
 0x2b7   : > { %v9025_v20 = vpop.f32.mrb[56].mxu0  ;;  %6891 = vmatpush3.bf16.msra.mxu0 %v7439_v28 }
 0x2b8   : > { %v9027_v31 = vpop.f32.mrb[57].mxu0  ;;  %6892 = vmatprep.subr.bf16.mxu0 %v7440_v22 }
 0x2b9   : > { %v9029_v13 = vpop.f32.mrb[58].mxu0 }
 0x2ba   : > { %v9031_v1 = vpop.f32.mrb[59].mxu0 }
 0x2bb   : > { %6893 = vmatpush3.bf16.msra.mxu0 %v7440_v22 }
 0x2bc   : > { %6926 = vmatprep.subr.bf16.mxu0 %v9056_v7 }
 0x2bf   : > { %v9033_v46 = vpop.f32.mrb[60].mxu0 }
 0x2c0   : > { %v9035_v5 = vpop.f32.mrb[61].mxu0 }
 0x2c1   : > { %v9037_v16 = vpop.f32.mrb[62].mxu0 }
 0x2c2   : > { %v9039_v49 = vpop.f32.mrb[63].mxu0 }
 0x34c   : > { %v6848_v18 = vpop.f32.mrb[0].mxu1 }
 0x34d   : > { %v6974_v33 = vadd.f32 %v6848_v18, %v6560_v38  ;;  %v3969_v3 = vpop.f32.mrb[1].mxu1 }
 0x34e   : > { %v6975_v29 = vadd.f32 %v3969_v3, %v1812_v41  ;;  %v6849_v10 = vpop.f32.mrb[2].mxu1 }
 0x34f   : > { %v9065_v8 = vadd.f32 %v6974_v33, %v9062_v37  ;;  %v6976_v54 = vadd.f32 %v6849_v10, %v6561_v39  ;;  %v3972_v4 = vpop.f32.mrb[3].mxu1 }
 0x350   : > { %v9068_v27 = vadd.f32 %v6975_v29, %v9062_v37  ;;  %v6977_v56 = vadd.f32 %v3972_v4, %v1815_v52 }
 0x351   : > { %v5883_v14 = vmul.f32 -1.442695, %v9065_v8  ;;  %v9072_v34 = vadd.f32 %v6976_v54, %v9062_v37 }
 0x352   : > { %v5881_v23 = vmul.f32 -1.442695, %v9068_v27  ;;  %v9076_v21 = vadd.f32 %v6977_v56, %v9062_v37 }
 0x353   : > { %7593 = vpow2.f32 %v5883_v14  ;;  %v5884_v11 = vmul.f32 -1.442695, %v9072_v34 }
 0x354   : > { %7595 = vpow2.f32 %v5881_v23  ;;  %v5882_v15 = vmul.f32 -1.442695, %v9076_v21  ;;  %v6852_v32 = vpop.f32.mrb[4].mxu1 }
 0x355   : > { %7597 = vpow2.f32 %v5884_v11  ;;  %v6978_v24 = vadd.f32 %v6852_v32, %v8958_v55  ;;  %v3985_v2 = vpop.f32.mrb[5].mxu1 }
 0x356   : > { %7599 = vpow2.f32 %v5882_v15  ;;  %v6979_v50 = vadd.f32 %v3985_v2, %v8960_v45  ;;  %v6853_v0 = vpop.f32.mrb[6].mxu1 }
 0x357   : > { %v9083_v51 = vadd.f32 %v6978_v24, %v9062_v37  ;;  %v6980_v40 = vadd.f32 %v6853_v0, %v8965_v59  ;;  %v3988_v17 = vpop.f32.mrb[7].mxu1 }
 0x358   : > { %v9087_v36 = vadd.f32 %v6979_v50, %v9062_v37  ;;  %v6981_v48 = vadd.f32 %v3988_v17, %v8970_v9 }
 0x359   : > { %v5887_v38 = vmul.f32 -1.442695, %v9083_v51  ;;  %v9092_v41 = vadd.f32 %v6980_v40, %v9062_v37 }
 0x35a   : > { %v5885_v39 = vmul.f32 -1.442695, %v9087_v36  ;;  %v9096_v52 = vadd.f32 %v6981_v48, %v9062_v37 }
 0x35b   : > { %7601 = vpow2.f32 %v5887_v38  ;;  %v5888_v55 = vmul.f32 -1.442695, %v9092_v41 }
 0x35c   : > { %7603 = vpow2.f32 %v5885_v39  ;;  %v5886_v45 = vmul.f32 -1.442695, %v9096_v52  ;;  %v6856_v59 = vpop.f32.mrb[8].mxu1 }
 0x35d   : > { %v7594_v42 = vpop.eup %7593  ;;  %7605 = vpow2.f32 %v5888_v55  ;;  %v6982_v9 = vadd.f32 %v6856_v59, %v8972_v58  ;;  %v4001_v25 = vpop.f32.mrb[9].mxu1 }
 0x35e   : > { %v7596_v28 = vpop.eup %7595  ;;  %v4265_v22 = vadd.f32 1.0, %v7594_v42  ;;  %7607 = vpow2.f32 %v5886_v45  ;;  %v6983_v18 = vadd.f32 %v4001_v25, %v8974_v57  ;;  %v6857_v33 = vpop.f32.mrb[10].mxu1 }
 0x35f   : > { %v7598_v3 = vpop.eup %7597  ;;  %v4263_v29 = vadd.f32 1.0, %v7596_v28  ;;  %v9103_v10 = vadd.f32 %v6982_v9, %v9062_v37  ;;  %v6984_v54 = vadd.f32 %v6857_v33, %v8979_v62  ;;  %v4004_v4 = vpop.f32.mrb[11].mxu1 }
 0x360   : > { %v7600_v56 = vpop.eup %7599  ;;  %7609 = vrcp.f32 %v4265_v22  ;;  %v4266_v14 = vadd.f32 1.0, %v7598_v3  ;;  %v9107_v58 = vadd.f32 %v6983_v18, %v9062_v37  ;;  %v6985_v23 = vadd.f32 %v4004_v4, %v8984_v61 }
 0x361   : > { %7611 = vrcp.f32 %v4263_v29  ;;  %v4264_v11 = vadd.f32 1.0, %v7600_v56  ;;  %v5891_v57 = vmul.f32 -1.442695, %v9103_v10  ;;  %v9112_v15 = vadd.f32 %v6984_v54, %v9062_v37 }
 0x362   : > { %7613 = vrcp.f32 %v4266_v14  ;;  %v5889_v32 = vmul.f32 -1.442695, %v9107_v58  ;;  %v9116_v62 = vadd.f32 %v6985_v23, %v9062_v37 }
 0x363   : > { %7615 = vrcp.f32 %v4264_v11  ;;  %v5892_v24 = vmul.f32 -1.442695, %v9112_v15 }
 0x364   : > { %7617 = vpow2.f32 %v5891_v57  ;;  %v5890_v2 = vmul.f32 -1.442695, %v9116_v62  ;;  %v6860_v61 = vpop.f32.mrb[12].mxu1 }
 0x365   : > { %v7602_v50 = vpop.eup %7601  ;;  %7619 = vpow2.f32 %v5889_v32  ;;  %v6986_v0 = vadd.f32 %v6860_v61, %v8986_v6  ;;  %v4017_v40 = vpop.f32.mrb[13].mxu1 }
 0x366   : > { %v7604_v17 = vpop.eup %7603  ;;  %v4269_v48 = vadd.f32 1.0, %v7602_v50  ;;  %7621 = vpow2.f32 %v5892_v24  ;;  %v6987_v38 = vadd.f32 %v4017_v40, %v8988_v30  ;;  %v6861_v39 = vpop.f32.mrb[14].mxu1 }
 0x367   : > { %v7606_v55 = vpop.eup %7605  ;;  %v4267_v45 = vadd.f32 1.0, %v7604_v17  ;;  %7623 = vpow2.f32 %v5890_v2  ;;  %v9123_v59 = vadd.f32 %v6986_v0, %v9062_v37  ;;  %v6988_v42 = vadd.f32 %v6861_v39, %v8993_v47  ;;  %v4020_v9 = vpop.f32.mrb[15].mxu1 }
 0x368   : > { %v7608_v25 = vpop.eup %7607  ;;  %7625 = vrcp.f32 %v4269_v48  ;;  %v4270_v28 = vadd.f32 1.0, %v7606_v55  ;;  %v9127_v6 = vadd.f32 %v6987_v38, %v9062_v37  ;;  %v6989_v22 = vadd.f32 %v4020_v9, %v8998_v12 }
 0x369   : > { %7627 = vrcp.f32 %v4267_v45  ;;  %v4268_v30 = vadd.f32 1.0, %v7608_v25  ;;  %v5895_v18 = vmul.f32 -1.442695, %v9123_v59  ;;  %v9132_v33 = vadd.f32 %v6988_v42, %v9062_v37 }
 0x36a   : > { %v7610_v3 = vpop.eup %7609  ;;  %7629 = vrcp.f32 %v4270_v28  ;;  %v5893_v47 = vmul.f32 -1.442695, %v9127_v6  ;;  %v9136_v29 = vadd.f32 %v6989_v22, %v9062_v37 }
 0x36b   : > { %v7612_v54 = vpop.eup %7611  ;;  %7631 = vrcp.f32 %v4268_v30  ;;  %v5896_v4 = vmul.f32 -1.442695, %v9132_v33  ;;  %v4361_v11 = vmul.f32 %v7610_v3, %v9065_v8 }
 0x36c   : > { %v7614_v56 = vpop.eup %7613  ;;  %7633 = vpow2.f32 %v5895_v18  ;;  %v5894_v12 = vmul.f32 -1.442695, %v9136_v29  ;;  %v6864_v14 = vpop.f32.mrb[16].mxu1  ;;  %v4359_v61 = vmul.f32 %v7612_v54, %v9068_v27 }
 0x36d   : > { %v7616_v23 = vpop.eup %7615  ;;  %v4362_v57 = vmul.f32 %v7614_v56, %v9072_v34  ;;  %7635 = vpow2.f32 %v5893_v47  ;;  %v6990_v32 = vadd.f32 %v6864_v14, %v9000_v19  ;;  %v4033_v24 = vpop.f32.mrb[17].mxu1 }
 0x36e   : > { %v7618_v2 = vpop.eup %7617  ;;  %v4360_v50 = vmul.f32 %v7616_v23, %v9076_v21  ;;  %7637 = vpow2.f32 %v5896_v4  ;;  %v6991_v0 = vadd.f32 %v4033_v24, %v9002_v63  ;;  %v6865_v40 = vpop.f32.mrb[18].mxu1 }
 0x36f   : > { %v7620_v17 = vpop.eup %7619  ;;  %v4392_v48 = vpack.c.bf16 %v4362_v57, %v4361_v11  ;;  %v4273_v38 = vadd.f32 1.0, %v7618_v2  ;;  %7639 = vpow2.f32 %v5894_v12  ;;  %v9147_v8 = vadd.f32 %v6990_v32, %v9062_v37  ;;  %v4036_v34 = vpop.f32.mrb[19].mxu1 }
 0x370   : > { %v7622_v39 = vpop.eup %7621  ;;  %v4271_v19 = vadd.f32 1.0, %v7620_v17  ;;  %v9150_v55 = vadd.f32 %v6991_v0, %v9062_v37  ;;  %v6992_v27 = vadd.f32 %v6865_v40, %v9007_v44  ;;  %v6993_v21 = vadd.f32 %v4036_v34, %v9012_v26  ;;  %v7442_v44 = vld [vmem:[%s9361_s7 + $0x8] sm:$0xff]  }
 0x371   : > { %v7624_v45 = vpop.eup %7623  ;;  %7641 = vrcp.f32 %v4273_v38  ;;  %v4274_v63 = vadd.f32 1.0, %v7622_v39  ;;  %v5899_v42 = vmul.f32 -1.442695, %v9147_v8  ;;  %v4391_v9 = vpack.c.bf16 %v4360_v50, %v4359_v61 }
 0x372   : > { %v7626_v25 = vpop.eup %7625  ;;  %7643 = vrcp.f32 %v4271_v19  ;;  %v4272_v28 = vadd.f32 1.0, %v7624_v45  ;;  %v5897_v22 = vmul.f32 -1.442695, %v9150_v55  ;;  %v9157_v30 = vadd.f32 %v6992_v27, %v9062_v37 }
 0x373   : > { %v7628_v18 = vpop.eup %7627  ;;  %7645 = vrcp.f32 %v4274_v63  ;;  %v9163_v26 = vadd.f32 %v6993_v21, %v9062_v37  ;;  %6894 = vmatprep.mubr.bf16.mxu0 %v4391_v9  ;;  %v4365_v47 = vmul.f32 %v7626_v25, %v9083_v51 }
 0x374   : > { %v7630_v3 = vpop.eup %7629  ;;  %7647 = vrcp.f32 %v4272_v28  ;;  %v5900_v54 = vmul.f32 -1.442695, %v9157_v30  ;;  %6895 = vmatmul.mubr.bf16.vlgmr.msra.gmra.mrb[64].mxu0 %v4392_v48  ;;  %v6868_v4 = vpop.f32.mrb[20].mxu1  ;;  %v4363_v12 = vmul.f32 %v7628_v18, %v9087_v36  ;;  %v7443_v36 = vld [vmem:[%s9361_s7 + $0x10] sm:$0xff]  }
 0x375   : > { %v7632_v56 = vpop.eup %7631  ;;  %7649 = vpow2.f32 %v5899_v42  ;;  %v5898_v14 = vmul.f32 -1.442695, %v9163_v26  ;;  %6927 = vmatpush3.bf16.msra.mxu0 %v9056_v7  ;;  %v6994_v23 = vadd.f32 %v6868_v4, %v9014_v60  ;;  %v4049_v11 = vpop.f32.mrb[21].mxu1  ;;  %v4366_v32 = vmul.f32 %v7630_v3, %v9092_v41 }
 0x376   : > { %v7634_v57 = vpop.eup %7633  ;;  %v4364_v51 = vmul.f32 %v7632_v56, %v9096_v52  ;;  %7651 = vpow2.f32 %v5897_v22  ;;  %v6995_v24 = vadd.f32 %v4049_v11, %v9016_v35  ;;  %v6869_v2 = vpop.f32.mrb[22].mxu1  ;;  %6928 = vmatprep.subr.bf16.mxu0 %v7442_v44  ;;  %v7445_v56 = vld [vmem:[%s9361_s7 + $0x20] sm:$0xff]  }
 0x377   : > { %v7636_v61 = vpop.eup %7635  ;;  %v4277_v50 = vadd.f32 1.0, %v7634_v57  ;;  %7653 = vpow2.f32 %v5900_v54  ;;  %v9178_v60 = vadd.f32 %v6994_v23, %v9062_v37  ;;  %v6996_v7 = vadd.f32 %v6869_v2, %v9021_v53  ;;  %v4052_v41 = vpop.f32.mrb[23].mxu1 }
 0x378   : > { %v7638_v0 = vpop.eup %7637  ;;  %v4275_v52 = vadd.f32 1.0, %v7636_v61  ;;  %7655 = vpow2.f32 %v5898_v14  ;;  %v9182_v35 = vadd.f32 %v6995_v24, %v9062_v37  ;;  %v6997_v40 = vadd.f32 %v4052_v41, %v9023_v43  ;;  %v7444_v43 = vld [vmem:[%s9361_s7 + $0x18] sm:$0xff]  }
 0x379   : > { %v7640_v17 = vpop.eup %7639  ;;  %7657 = vrcp.f32 %v4277_v50  ;;  %v4278_v48 = vadd.f32 1.0, %v7638_v0  ;;  %v5903_v38 = vmul.f32 -1.442695, %v9178_v60  ;;  %v9187_v34 = vadd.f32 %v6996_v7, %v9062_v37  ;;  %6929 = vmatpush3.bf16.msra.mxu0 %v7442_v44 }
 0x37a   : > { %7659 = vrcp.f32 %v4275_v52  ;;  %v4276_v53 = vadd.f32 1.0, %v7640_v17  ;;  %v5901_v39 = vmul.f32 -1.442695, %v9182_v35  ;;  %v9191_v19 = vadd.f32 %v6997_v40, %v9062_v37  ;;  %6930 = vmatprep.subr.bf16.mxu0 %v7443_v36 }
 0x37b   : > { %v7642_v27 = vpop.eup %7641  ;;  %7661 = vrcp.f32 %v4278_v48  ;;  %v5904_v21 = vmul.f32 -1.442695, %v9187_v34  ;;  %v4393_v45 = vpack.c.bf16 %v4364_v51, %v4363_v12  ;;  %v4394_v63 = vpack.c.bf16 %v4366_v32, %v4365_v47 }
 0x37c   : > { %v7644_v42 = vpop.eup %7643  ;;  %7663 = vrcp.f32 %v4276_v53  ;;  %v5902_v9 = vmul.f32 -1.442695, %v9191_v19  ;;  %v6872_v25 = vpop.f32.mrb[24].mxu1  ;;  %v4369_v51 = vmul.f32 %v7642_v27, %v9103_v10 }
 0x37d   : > { %v7646_v28 = vpop.eup %7645  ;;  %7665 = vpow2.f32 %v5903_v38  ;;  %6898 = vmatprep.mubr.bf16.mxu0 %v4393_v45  ;;  %v6998_v22 = vadd.f32 %v6872_v25, %v9025_v20  ;;  %v4065_v44 = vpop.f32.mrb[25].mxu1  ;;  %6931 = vmatpush3.bf16.msra.mxu0 %v7443_v36  ;;  %v4367_v3 = vmul.f32 %v7644_v42, %v9107_v58  ;;  %v7447_v42 = vld [vmem:[%s9361_s7 + $0x30] sm:$0xff]  }
 0x37e   : > { %v7648_v18 = vpop.eup %7647  ;;  %v4370_v54 = vmul.f32 %v7646_v28, %v9112_v15  ;;  %7667 = vpow2.f32 %v5901_v39  ;;  %6899 = vmatmul.mubr.bf16.gmra.mrb[68].mxu0 %v4394_v63  ;;  %v6999_v47 = vadd.f32 %v4065_v44, %v9027_v31  ;;  %v6873_v4 = vpop.f32.mrb[26].mxu1  ;;  %6932 = vmatprep.subr.bf16.mxu0 %v7444_v43 }
 0x37f   : > { %v7650_v12 = vpop.eup %7649  ;;  %v4368_v20 = vmul.f32 %v7648_v18, %v9116_v62  ;;  %7669 = vpow2.f32 %v5904_v21  ;;  %v9207_v14 = vadd.f32 %v6998_v22, %v9062_v37  ;;  %v7000_v58 = vadd.f32 %v6873_v4, %v9029_v13  ;;  %v4068_v15 = vpop.f32.mrb[27].mxu1 }
 0x380   : > { %v7652_v23 = vpop.eup %7651  ;;  %v4281_v11 = vadd.f32 1.0, %v7650_v12  ;;  %7671 = vpow2.f32 %v5902_v9  ;;  %v9211_v31 = vadd.f32 %v6999_v47, %v9062_v37  ;;  %v7001_v57 = vadd.f32 %v4068_v15, %v9031_v1  ;;  %v7446_v1 = vld [vmem:[%s9361_s7 + $0x28] sm:$0xff]  }
 0x381   : > { %v7654_v32 = vpop.eup %7653  ;;  %v4279_v24 = vadd.f32 1.0, %v7652_v23  ;;  %v9216_v62 = vadd.f32 %v7000_v58, %v9062_v37  ;;  %v4395_v2 = vpack.c.bf16 %v4368_v20, %v4367_v3  ;;  %6933 = vmatpush3.bf16.msra.mxu0 %v7444_v43  ;;  %v5907_v61 = vmul.f32 -1.442695, %v9207_v14 }
 0x382   : > { %v7656_v36 = vpop.eup %7655  ;;  %7673 = vrcp.f32 %v4281_v11  ;;  %v4282_v13 = vadd.f32 1.0, %v7654_v32  ;;  %v9220_v50 = vadd.f32 %v7001_v57, %v9062_v37  ;;  %6934 = vmatprep.subr.bf16.mxu0 %v7445_v56  ;;  %v5905_v41 = vmul.f32 -1.442695, %v9211_v31 }
 0x383   : > { %v7658_v10 = vpop.eup %7657  ;;  %7675 = vrcp.f32 %v4279_v24  ;;  %v4280_v7 = vadd.f32 1.0, %v7656_v36  ;;  %6902 = vmatprep.mubr.bf16.mxu0 %v4395_v2  ;;  %v4396_v0 = vpack.c.bf16 %v4370_v54, %v4369_v51  ;;  %v5908_v40 = vmul.f32 -1.442695, %v9216_v62 }
 0x384   : > { %v7660_v52 = vpop.eup %7659  ;;  %7677 = vrcp.f32 %v4282_v13  ;;  %v6876_v17 = vpop.f32.mrb[28].mxu1  ;;  %v5906_v38 = vmul.f32 -1.442695, %v9220_v50  ;;  %v4373_v27 = vmul.f32 %v7658_v10, %v9123_v59 }
 0x385   : > { %v7662_v48 = vpop.eup %7661  ;;  %7679 = vrcp.f32 %v4280_v7  ;;  %v7002_v53 = vadd.f32 %v6876_v17, %v9033_v46  ;;  %v4081_v39 = vpop.f32.mrb[29].mxu1  ;;  %6935 = vmatpush3.bf16.msra.mxu0 %v7445_v56  ;;  %v4371_v3 = vmul.f32 %v7660_v52, %v9127_v6 }
 0x386   : > { %v7664_v43 = vpop.eup %7663  ;;  %v4374_v21 = vmul.f32 %v7662_v48, %v9132_v33  ;;  %7681 = vpow2.f32 %v5907_v61  ;;  %6903 = vmatmul.mubr.bf16.gmra.mrb[72].mxu0 %v4396_v0  ;;  %v7003_v45 = vadd.f32 %v4081_v39, %v9035_v5  ;;  %v6877_v63 = vpop.f32.mrb[30].mxu1  ;;  %6936 = vmatprep.subr.bf16.mxu0 %v7446_v1 }
 0x387   : > { %v7666_v9 = vpop.eup %7665  ;;  %v4372_v46 = vmul.f32 %v7664_v43, %v9136_v29  ;;  %7683 = vpow2.f32 %v5905_v41  ;;  %v9237_v25 = vadd.f32 %v7002_v53, %v9062_v37  ;;  %v7004_v59 = vadd.f32 %v6877_v63, %v9037_v16  ;;  %v4084_v33 = vpop.f32.mrb[31].mxu1 }
 0x388   : > { %v7668_v28 = vpop.eup %7667  ;;  %v4285_v22 = vadd.f32 1.0, %v7666_v9  ;;  %7685 = vpow2.f32 %v5908_v40  ;;  %v9241_v5 = vadd.f32 %v7003_v45, %v9062_v37  ;;  %v7005_v44 = vadd.f32 %v4084_v33, %v9039_v49  ;;  %v7448_v49 = vld [vmem:[%s9361_s7 + $0x38] sm:$0xff]  }
 0x389   : > { %v7670_v18 = vpop.eup %7669  ;;  %v4283_v54 = vadd.f32 1.0, %v7668_v28  ;;  %7687 = vpow2.f32 %v5906_v38  ;;  %v9246_v29 = vadd.f32 %v7004_v59, %v9062_v37  ;;  %6937 = vmatpush3.bf16.msra.mxu0 %v7446_v1  ;;  %v5911_v4 = vmul.f32 -1.442695, %v9237_v25 }
 0x38a   : > { %v7672_v47 = vpop.eup %7671  ;;  %7689 = vrcp.f32 %v4285_v22  ;;  %v4286_v16 = vadd.f32 1.0, %v7670_v18  ;;  %v9250_v56 = vadd.f32 %v7005_v44, %v9062_v37  ;;  %6938 = vmatprep.subr.bf16.mxu0 %v7447_v42  ;;  %v5909_v12 = vmul.f32 -1.442695, %v9241_v5 }
 0x38b   : > { %7691 = vrcp.f32 %v4283_v54  ;;  %v4284_v6 = vadd.f32 1.0, %v7672_v47  ;;  %v4397_v20 = vpack.c.bf16 %v4372_v46, %v4371_v3  ;;  %v5912_v15 = vmul.f32 -1.442695, %v9246_v29 }
 0x38c   : > { %v7674_v58 = vpop.eup %7673  ;;  %7693 = vrcp.f32 %v4286_v16  ;;  %v4398_v23 = vpack.c.bf16 %v4374_v21, %v4373_v27  ;;  %v5910_v37 = vmul.f32 -1.442695, %v9250_v56 }
 0x38d   : > { %v7676_v11 = vpop.eup %7675  ;;  %7695 = vrcp.f32 %v4284_v6  ;;  %6906 = vmatprep.mubr.bf16.mxu0 %v4397_v20  ;;  %6939 = vmatpush3.bf16.msra.mxu0 %v7447_v42  ;;  %v4377_v51 = vmul.f32 %v7674_v58, %v9147_v8  ;;  %v7449_v20 = vld [vmem:[%s7807_s20] sm:$0xff]   ;;  %v7450_v58 = vld [vmem:[%s7807_s20 + $0x8] sm:$0xff]  }
 0x38e   : > { %v7678_v57 = vpop.eup %7677  ;;  %7697 = vpow2.f32 %v5911_v4  ;;  %6907 = vmatmul.mubr.bf16.gmra.mrb[76].mxu0 %v4398_v23  ;;  %6940 = vmatprep.subr.bf16.mxu0 %v7448_v49  ;;  %v4375_v36 = vmul.f32 %v7676_v11, %v9150_v55  ;;  %v7456_v23 = vld [vmem:[%s7807_s20 + $0x38] sm:$0xff]   ;;  %v7457_v11 = vld [vmem:[%s7807_s20 + $0x40] sm:$0xff]  }
 0x38f   : > { %v7680_v32 = vpop.eup %7679  ;;  %v4378_v24 = vmul.f32 %v7678_v57, %v9157_v30  ;;  %7699 = vpow2.f32 %v5909_v12  ;;  %v7459_v57 = vld [vmem:[%s7807_s20 + $0x50] sm:$0xff]  }
 0x390   : > { %v7682_v2 = vpop.eup %7681  ;;  %v4376_v13 = vmul.f32 %v7680_v32, %v9163_v26  ;;  %7701 = vpow2.f32 %v5912_v15  ;;  %v7451_v15 = vld [vmem:[%s7807_s20 + $0x10] sm:$0xff]   ;;  %v7460_v32 = vld [vmem:[%s7807_s20 + $0x58] sm:$0xff]  }
 0x391   : > { %v7684_v61 = vpop.eup %7683  ;;  %v4289_v1 = vadd.f32 1.0, %v7682_v2  ;;  %7703 = vpow2.f32 %v5910_v37  ;;  %v4400_v10 = vpack.c.bf16 %v4378_v24, %v4377_v51  ;;  %6941 = vmatpush3.bf16.msra.mxu0 %v7448_v49  ;;  %v7458_v37 = vld [vmem:[%s7807_s20 + $0x48] sm:$0xff]   ;;  %v7461_v51 = vld [vmem:[%s7807_s20 + $0x60] sm:$0xff]   ;;  %v7463_v2 = vld [vmem:[%s7807_s20 + $0x70] sm:$0xff]  }
 0x392   : > { %v7686_v7 = vpop.eup %7685  ;;  %v4287_v41 = vadd.f32 1.0, %v7684_v61  ;;  %v4399_v0 = vpack.c.bf16 %v4376_v13, %v4375_v36  ;;  %v7462_v24 = vld [vmem:[%s7807_s20 + $0x68] sm:$0xff]   ;;  %v7464_v36 = vld [vmem:[%s7807_s20 + $0x78] sm:$0xff]   ;;  %v5913_v13 = vld [vmem:[%s9360_s6] ss:$0 sm:$0xff] }
 0x393   : > { %v7688_v52 = vpop.eup %7687  ;;  %7705 = vrcp.f32 %v4289_v1  ;;  %v4290_v8 = vadd.f32 1.0, %v7686_v7  ;;  %v5922_v61 = vld [vmem:[%s9362_s8] ss:$0 sm:$0xff] }
 0x394   : > { %v7690_v40 = vpop.eup %7689  ;;  %7707 = vrcp.f32 %v4287_v41  ;;  %v4288_v30 = vadd.f32 1.0, %v7688_v52  ;;  %6910 = vmatprep.mubr.bf16.mxu0 %v4399_v0  ;;  %v9296_v1 = vadd.f32 %v5922_v61, %v5913_v13 }
 0x395   : > { %v7692_v17 = vpop.eup %7691  ;;  %7709 = vrcp.f32 %v4290_v8  ;;  %v4381_v48 = vmul.f32 %v7690_v40, %v9178_v60 }
 0x396   : > { %v7694_v55 = vpop.eup %7693  ;;  %7711 = vrcp.f32 %v4288_v30  ;;  %6911 = vmatmul.mubr.bf16.gmra.mrb[80].mxu0 %v4400_v10  ;;  %v4379_v39 = vmul.f32 %v7692_v17, %v9182_v35 }
 0x397   : > { %v7696_v26 = vpop.eup %7695  ;;  %v4382_v38 = vmul.f32 %v7694_v55, %v9187_v34 }
 0x398   : > { %v7698_v53 = vpop.eup %7697  ;;  %v4380_v43 = vmul.f32 %v7696_v26, %v9191_v19 }
 0x399   : > { %v7700_v27 = vpop.eup %7699  ;;  %v4293_v21 = vadd.f32 1.0, %v7698_v53  ;;  %v4402_v45 = vpack.c.bf16 %v4382_v38, %v4381_v48 }
 0x39a   : > { %v7702_v63 = vpop.eup %7701  ;;  %v4291_v42 = vadd.f32 1.0, %v7700_v27  ;;  %v4401_v9 = vpack.c.bf16 %v4380_v43, %v4379_v39 }
 0x39b   : > { %v7704_v46 = vpop.eup %7703  ;;  %7713 = vrcp.f32 %v4293_v21  ;;  %v4294_v59 = vadd.f32 1.0, %v7702_v63 }
 0x39c   : > { %7715 = vrcp.f32 %v4291_v42  ;;  %v4292_v33 = vadd.f32 1.0, %v7704_v46  ;;  %6914 = vmatprep.mubr.bf16.mxu0 %v4401_v9 }
 0x39d   : > { %v7706_v60 = vpop.eup %7705  ;;  %7717 = vrcp.f32 %v4294_v59 }
 0x39e   : > { %v7708_v34 = vpop.eup %7707  ;;  %7719 = vrcp.f32 %v4292_v33  ;;  %6915 = vmatmul.mubr.bf16.gmra.mrb[84].mxu0 %v4402_v45  ;;  %v4385_v19 = vmul.f32 %v7706_v60, %v9207_v14 }
 0x39f   : > { %v7710_v35 = vpop.eup %7709  ;;  %v4383_v44 = vmul.f32 %v7708_v34, %v9211_v31 }
 0x3a0   : > { %v7712_v28 = vpop.eup %7711  ;;  %v4386_v22 = vmul.f32 %v7710_v35, %v9216_v62 }
 0x3a1   : > { %v4384_v18 = vmul.f32 %v7712_v28, %v9220_v50 }
 0x3a2   : > { %v4404_v3 = vpack.c.bf16 %v4386_v22, %v4385_v19 }
 0x3a3   : > { %v4403_v54 = vpack.c.bf16 %v4384_v18, %v4383_v44 }
 0x3a5   : > { %v7714_v47 = vpop.eup %7713  ;;  %6918 = vmatprep.mubr.bf16.mxu0 %v4403_v54 }
 0x3a6   : > { %v7716_v16 = vpop.eup %7715  ;;  %6919 = vmatmul.mubr.bf16.gmra.mrb[88].mxu0 %v4404_v3  ;;  %v4389_v14 = vmul.f32 %v7714_v47, %v9237_v25  ;;  %v7452_v25 = vld [vmem:[%s7807_s20 + $0x18] sm:$0xff]  }
 0x3a7   : > { %v7718_v4 = vpop.eup %7717  ;;  %v4387_v31 = vmul.f32 %v7716_v16, %v9241_v5  ;;  %v7453_v5 = vld [vmem:[%s7807_s20 + $0x20] sm:$0xff]  }
 0x3a8   : > { %v7720_v49 = vpop.eup %7719  ;;  %v4390_v62 = vmul.f32 %v7718_v4, %v9246_v29  ;;  %v7454_v29 = vld [vmem:[%s7807_s20 + $0x28] sm:$0xff]  }
 0x3a9   : > { %v4388_v50 = vmul.f32 %v7720_v49, %v9250_v56  ;;  %v7455_v56 = vld [vmem:[%s7807_s20 + $0x30] sm:$0xff]  }
 0x3aa   : > { %v4406_v6 = vpack.c.bf16 %v4390_v62, %v4389_v14 }
 0x3ab   : > { %v4405_v12 = vpack.c.bf16 %v4388_v50, %v4387_v31 }
 0x3ad   : > { %6922 = vmatprep.mubr.bf16.mxu0 %v4405_v12 }
 0x3ae   : > { %6923 = vmatmul.mubr.bf16.gmra.mrb[92].mxu0 %v4406_v6 }
 0x3af   : > { %6942 = vmatprep.mubr.bf16.mxu0 %v7449_v20 }
 0x3b6   : > { %6943 = vmatmul.mubr.bf16.vlgmr.msra.gmra.mrb[64].mxu0 %v7450_v58 }
 0x3b7   : > { %6946 = vmatprep.mubr.bf16.mxu0 %v7451_v15 }
 0x3be   : > { %6947 = vmatmul.mubr.bf16.gmra.mrb[68].mxu0 %v7452_v25 }
 0x3bf   : > { %6950 = vmatprep.mubr.bf16.mxu0 %v7453_v5 }
 0x3c6   : > { %6951 = vmatmul.mubr.bf16.gmra.mrb[72].mxu0 %v7454_v29 }
 0x3c7   : > { %6954 = vmatprep.mubr.bf16.mxu0 %v7455_v56 }
 0x3ce   : > { %6955 = vmatmul.mubr.bf16.gmra.mrb[76].mxu0 %v7456_v23 }
 0x3cf   : > { %6958 = vmatprep.mubr.bf16.mxu0 %v7457_v11 }
 0x3d6   : > { %6959 = vmatmul.mubr.bf16.gmra.mrb[80].mxu0 %v7458_v37 }
 0x3d7   : > { %6962 = vmatprep.mubr.bf16.mxu0 %v7459_v57 }
 0x3de   : > { %6963 = vmatmul.mubr.bf16.gmra.mrb[84].mxu0 %v7460_v32 }
 0x3df   : > { %6966 = vmatprep.mubr.bf16.mxu0 %v7461_v51 }
 0x3e6   : > { %6967 = vmatmul.mubr.bf16.gmra.mrb[88].mxu0 %v7462_v24 }
 0x3e7   : > { %6970 = vmatprep.mubr.bf16.mxu0 %v7463_v2 }
 0x3ee   : > { %6971 = vmatmul.mubr.bf16.gmra.mrb[92].mxu0 %v7464_v36 }
 0x489   : > { %v6944_v10 = vpop.f32.mrb[64].mxu0 }
 0x48a   : > { %v7006_v7 = vadd.f32 %v6944_v10, %v5913_v13  ;;  %v4872_v41 = vpop.f32.mrb[65].mxu0 }
 0x48b   : > { %v7008_v0 = vadd.f32 %v5913_v13, %v4872_v41  ;;  %v6945_v52 = vpop.f32.mrb[66].mxu0 }
 0x48c   : > { %v7007_v8 = vadd.f32 %v7006_v7, %v5922_v61  ;;  %v7011_v40 = vadd.f32 %v9296_v1, %v6945_v52  ;;  %v4875_v30 = vpop.f32.mrb[67].mxu0 }
 0x48d   : > { %v7009_v17 = vadd.f32 %v7008_v0, %v5922_v61  ;;  %v7013_v55 = vadd.f32 %v9296_v1, %v4875_v30 }
 0x48e   : > { %v5033_v26 = vmax.f32 %v7007_v8, 0.0  ;;  %v5034_v48 = vmax.f32 %v7011_v40, 0.0 }
 0x48f   : > { %v5031_v38 = vmax.f32 %v7009_v17, 0.0  ;;  %v5032_v53 = vmax.f32 %v7013_v55, 0.0 }
 0x490   : > { %v6023_v39 = vpack.c.bf16 %v5034_v48, %v5033_v26 }
 0x491   : > { %v6018_v43 = vpack.c.bf16 %v5032_v53, %v5031_v38  ;;  %v6948_v27 = vpop.f32.mrb[68].mxu0 }
 0x492   : > { %6095 = vst [vmem:[%s9305_s29 + $0x8] sm:$0xff] %v6023_v39   ;;  %v7015_v21 = vadd.f32 %v9296_v1, %v6948_v27  ;;  %v4888_v45 = vpop.f32.mrb[69].mxu0 }
 0x493   : > { %6019 = vst [vmem:[%s9305_s29] sm:$0xff] %v6018_v43   ;;  %v7017_v63 = vadd.f32 %v9296_v1, %v4888_v45  ;;  %v6949_v42 = vpop.f32.mrb[70].mxu0 }
 0x494   : > { %v7019_v9 = vadd.f32 %v9296_v1, %v6949_v42  ;;  %v4891_v46 = vpop.f32.mrb[71].mxu0  ;;  %v5037_v33 = vmax.f32 %v7015_v21, 0.0 }
 0x495   : > { %v7021_v59 = vadd.f32 %v9296_v1, %v4891_v46  ;;  %v5035_v34 = vmax.f32 %v7017_v63, 0.0 }
 0x496   : > { %v5038_v60 = vmax.f32 %v7019_v9, 0.0 }
 0x497   : > { %v5036_v35 = vmax.f32 %v7021_v59, 0.0 }
 0x498   : > { %v6033_v28 = vpack.c.bf16 %v5038_v60, %v5037_v33 }
 0x499   : > { %v6028_v19 = vpack.c.bf16 %v5036_v35, %v5035_v34  ;;  %v6952_v22 = vpop.f32.mrb[72].mxu0 }
 0x49a   : > { %6097 = vst [vmem:[%s9305_s29 + $0x18] sm:$0xff] %v6033_v28   ;;  %v7023_v44 = vadd.f32 %v9296_v1, %v6952_v22  ;;  %v4904_v18 = vpop.f32.mrb[73].mxu0 }
 0x49b   : > { %6096 = vst [vmem:[%s9305_s29 + $0x10] sm:$0xff] %v6028_v19   ;;  %v7025_v3 = vadd.f32 %v9296_v1, %v4904_v18  ;;  %v6953_v54 = vpop.f32.mrb[74].mxu0 }
 0x49c   : > { %v7027_v47 = vadd.f32 %v9296_v1, %v6953_v54  ;;  %v4907_v16 = vpop.f32.mrb[75].mxu0  ;;  %v5041_v49 = vmax.f32 %v7023_v44, 0.0 }
 0x49d   : > { %v7029_v4 = vadd.f32 %v9296_v1, %v4907_v16  ;;  %v5039_v62 = vmax.f32 %v7025_v3, 0.0 }
 0x49e   : > { %v5042_v14 = vmax.f32 %v7027_v47, 0.0 }
 0x49f   : > { %v5040_v31 = vmax.f32 %v7029_v4, 0.0 }
 0x4a0   : > { %v6043_v50 = vpack.c.bf16 %v5042_v14, %v5041_v49 }
 0x4a1   : > { %v6038_v6 = vpack.c.bf16 %v5040_v31, %v5039_v62  ;;  %v6956_v12 = vpop.f32.mrb[76].mxu0 }
 0x4a2   : > { %6099 = vst [vmem:[%s9305_s29 + $0x28] sm:$0xff] %v6043_v50   ;;  %v7031_v20 = vadd.f32 %v9296_v1, %v6956_v12  ;;  %v4920_v58 = vpop.f32.mrb[77].mxu0 }
 0x4a3   : > { %6098 = vst [vmem:[%s9305_s29 + $0x20] sm:$0xff] %v6038_v6   ;;  %v7033_v15 = vadd.f32 %v9296_v1, %v4920_v58  ;;  %v6957_v25 = vpop.f32.mrb[78].mxu0 }
 0x4a4   : > { %v7035_v5 = vadd.f32 %v9296_v1, %v6957_v25  ;;  %v4923_v29 = vpop.f32.mrb[79].mxu0  ;;  %v5045_v23 = vmax.f32 %v7031_v20, 0.0 }
 0x4a5   : > { %v7037_v56 = vadd.f32 %v9296_v1, %v4923_v29  ;;  %v5043_v37 = vmax.f32 %v7033_v15, 0.0 }
 0x4a6   : > { %v5046_v11 = vmax.f32 %v7035_v5, 0.0 }
 0x4a7   : > { %v5044_v57 = vmax.f32 %v7037_v56, 0.0 }
 0x4a8   : > { %v6053_v32 = vpack.c.bf16 %v5046_v11, %v5045_v23 }
 0x4a9   : > { %v6048_v51 = vpack.c.bf16 %v5044_v57, %v5043_v37  ;;  %v6960_v24 = vpop.f32.mrb[80].mxu0 }
 0x4aa   : > { %6101 = vst [vmem:[%s9305_s29 + $0x38] sm:$0xff] %v6053_v32   ;;  %v7039_v2 = vadd.f32 %v9296_v1, %v6960_v24  ;;  %v4936_v36 = vpop.f32.mrb[81].mxu0 }
 0x4ab   : > { %6100 = vst [vmem:[%s9305_s29 + $0x30] sm:$0xff] %v6048_v51   ;;  %v7041_v13 = vadd.f32 %v9296_v1, %v4936_v36  ;;  %v6961_v61 = vpop.f32.mrb[82].mxu0 }
 0x4ac   : > { %v7043_v10 = vadd.f32 %v9296_v1, %v6961_v61  ;;  %v4939_v7 = vpop.f32.mrb[83].mxu0  ;;  %v5049_v0 = vmax.f32 %v7039_v2, 0.0 }
 0x4ad   : > { %v7045_v41 = vadd.f32 %v9296_v1, %v4939_v7  ;;  %v5047_v8 = vmax.f32 %v7041_v13, 0.0 }
 0x4ae   : > { %v5050_v52 = vmax.f32 %v7043_v10, 0.0 }
 0x4af   : > { %v5048_v40 = vmax.f32 %v7045_v41, 0.0 }
 0x4b0   : > { %v6063_v30 = vpack.c.bf16 %v5050_v52, %v5049_v0 }
 0x4b1   : > { %v6058_v17 = vpack.c.bf16 %v5048_v40, %v5047_v8  ;;  %v6964_v55 = vpop.f32.mrb[84].mxu0 }
 0x4b2   : > { %6103 = vst [vmem:[%s9305_s29 + $0x48] sm:$0xff] %v6063_v30   ;;  %v7047_v26 = vadd.f32 %v9296_v1, %v6964_v55  ;;  %v4952_v48 = vpop.f32.mrb[85].mxu0 }
 0x4b3   : > { %6102 = vst [vmem:[%s9305_s29 + $0x40] sm:$0xff] %v6058_v17   ;;  %v7049_v38 = vadd.f32 %v9296_v1, %v4952_v48  ;;  %v6965_v53 = vpop.f32.mrb[86].mxu0 }
 0x4b4   : > { %v7051_v39 = vadd.f32 %v9296_v1, %v6965_v53  ;;  %v4955_v43 = vpop.f32.mrb[87].mxu0  ;;  %v5053_v21 = vmax.f32 %v7047_v26, 0.0 }
 0x4b5   : > { %v7053_v27 = vadd.f32 %v9296_v1, %v4955_v43  ;;  %v5051_v63 = vmax.f32 %v7049_v38, 0.0 }
 0x4b6   : > { %v5054_v45 = vmax.f32 %v7051_v39, 0.0 }
 0x4b7   : > { %v5052_v42 = vmax.f32 %v7053_v27, 0.0 }
 0x4b8   : > { %v6073_v9 = vpack.c.bf16 %v5054_v45, %v5053_v21 }
 0x4b9   : > { %v6068_v46 = vpack.c.bf16 %v5052_v42, %v5051_v63  ;;  %v6968_v59 = vpop.f32.mrb[88].mxu0 }
 0x4ba   : > { %6105 = vst [vmem:[%s9305_s29 + $0x58] sm:$0xff] %v6073_v9   ;;  %v7055_v33 = vadd.f32 %v9296_v1, %v6968_v59  ;;  %v4968_v60 = vpop.f32.mrb[89].mxu0 }
 0x4bb   : > { %6104 = vst [vmem:[%s9305_s29 + $0x50] sm:$0xff] %v6068_v46   ;;  %v7057_v34 = vadd.f32 %v9296_v1, %v4968_v60  ;;  %v6969_v35 = vpop.f32.mrb[90].mxu0 }
 0x4bc   : > { %v7059_v28 = vadd.f32 %v9296_v1, %v6969_v35  ;;  %v4971_v19 = vpop.f32.mrb[91].mxu0  ;;  %v5057_v44 = vmax.f32 %v7055_v33, 0.0 }
 0x4bd   : > { %v7061_v22 = vadd.f32 %v9296_v1, %v4971_v19  ;;  %v5055_v3 = vmax.f32 %v7057_v34, 0.0 }
 0x4be   : > { %v5058_v18 = vmax.f32 %v7059_v28, 0.0 }
 0x4bf   : > { %v5056_v54 = vmax.f32 %v7061_v22, 0.0 }
 0x4c0   : > { %v6083_v47 = vpack.c.bf16 %v5058_v18, %v5057_v44 }
 0x4c1   : > { %v6078_v16 = vpack.c.bf16 %v5056_v54, %v5055_v3  ;;  %v6972_v4 = vpop.f32.mrb[92].mxu0 }
 0x4c2   : > { %6107 = vst [vmem:[%s9305_s29 + $0x68] sm:$0xff] %v6083_v47   ;;  %v7063_v49 = vadd.f32 %v9296_v1, %v6972_v4  ;;  %v4984_v14 = vpop.f32.mrb[93].mxu0 }
 0x4c3   : > { %6106 = vst [vmem:[%s9305_s29 + $0x60] sm:$0xff] %v6078_v16   ;;  %v7065_v62 = vadd.f32 %v9296_v1, %v4984_v14  ;;  %v6973_v31 = vpop.f32.mrb[94].mxu0 }
 0x4c4   : > { %v7067_v50 = vadd.f32 %v9296_v1, %v6973_v31  ;;  %v4987_v6 = vpop.f32.mrb[95].mxu0  ;;  %v5061_v20 = vmax.f32 %v7063_v49, 0.0 }
 0x4c5   : > { %v7069_v12 = vadd.f32 %v9296_v1, %v4987_v6  ;;  %v5059_v15 = vmax.f32 %v7065_v62, 0.0 }
 0x4c6   : > { %v5062_v58 = vmax.f32 %v7067_v50, 0.0 }
 0x4c7   : > { %v5060_v25 = vmax.f32 %v7069_v12, 0.0 }
 0x4c8   : > { %v6093_v5 = vpack.c.bf16 %v5062_v58, %v5061_v20 }
 0x4c9   : > { %v6088_v29 = vpack.c.bf16 %v5060_v25, %v5059_v15 }
 0x4ca   : > { %6109 = vst [vmem:[%s9305_s29 + $0x78] sm:$0xff] %v6093_v5  }
 0x4cb   : > { %6108 = vst [vmem:[%s9305_s29 + $0x70] sm:$0xff] %v6088_v29  }
 0x4cc PF: > { %s19_s30 = sadd.s32 1, %s7727_s30  }
 0x4cd   : > { %p16_p4 = scmp.ge.s32.totalorder %s19_s30, 4  }
 0x4cf   :  { %18 = sbr.rel (!%p16_p4) target bundleno = 1 (0x1), region = 97 }

</bundles_post_ra>
